<compile_context>
chip_gen: v7x
topology: tpu7x:2x2x1
jax: 0.10.0
libtpu: 0.0.40
codegen_flags: <defaults>
</compile_context>

<pallas_src>
import jax
import jax.numpy as jnp
from jax.experimental import pallas as pl
from jax.experimental.pallas import tpu as pltpu

# ----------------------------- model sizes -----------------------------------
G = 8            # graphs per batch
N = 32           # nodes per graph
E = 64           # edges per graph
F_IN = 4         # in_feats
HID = 16         # hidden_feats
C = 8            # num_classes
FH = F_IN * HID  # 64 = nn1 output width
OUT_W = 128      # lane-dense output width (log-probs live in lanes [0, C))


def _pick_graphs_per_step():
    """1 grid step on single-TC chips (v5e/v6e); 2 parallel steps otherwise (v7x has
    2 TensorCores per chip, v4/v5p megacore also shards parallel grid dims)."""
    try:
        kind = jax.devices()[0].device_kind.lower()
    except Exception:
        return G // 2
    if ("v5 lite" in kind) or ("v5e" in kind) or ("v6" in kind):
        return G          # grid=(1,)
    return G // 2         # grid=(2,)


GPS = _pick_graphs_per_step()   # graphs per grid step
assert G % GPS == 0
STEPS = G // GPS
GN = GPS * N                    # nodes per step (block-diagonal "big graph")
GE = GPS * E                    # edges per step

# ------------------- bf16 MXU-weight slab layout (width FH) -------------------
ROW_W2 = 0                      # rows [0, 64)   : w2 [FH, FH]
ROW_WG = FH                     # rows [64, 80)  : wg [HID, C] at lanes [0, C)
ROW_ROOT = FH + HID             # rows [80, 84)  : root [F_IN, HID] at lanes [0, HID)
ROW_REP = FH + HID + 16         # rows [96, 100) : rep = kron(I4, ones(1,16)) [F_IN, FH]
PM_ROWS = FH + HID + 32         # 112

# ------------------- f32 VPU-param slab layout (width FH) ---------------------
ROW_W1, ROW_B1, ROW_B2, ROW_BNN, ROW_BG = 0, 1, 2, 3, 4
PF_ROWS = 8


# ----------------------------- Pallas kernel ----------------------------------
def gcn_edge_kernel(pf_ref,    # [PF_ROWS, FH] f32   VPU params
                    pm_ref,    # [PM_ROWS, FH] bf16  MXU weights
                    x_ref,     # [GN, F_IN]    f32   node features (GPS graphs stacked)
                    ea_ref,    # [GE, 1]       f32   edge_attr
                    src_ref,   # [GE, 1]       f32   src node id + local_graph*N
                    dst_ref,   # [1, GE]       f32   dst node id + local_graph*N
                    out_ref):  # [GN, OUT_W]   f32   log-probs in lanes [0, C)
    f32, bf16 = jnp.float32, jnp.bfloat16

    # --- unpack parameters (static slices, fetched once per core) ---
    w1 = pf_ref[ROW_W1:ROW_W1 + 1, :]                      # [1, FH]
    b1 = pf_ref[ROW_B1:ROW_B1 + 1, :]
    b2 = pf_ref[ROW_B2:ROW_B2 + 1, :]
    bnn = pf_ref[ROW_BNN:ROW_BNN + 1, 0:HID]               # [1, HID]
    bg = pf_ref[ROW_BG:ROW_BG + 1, 0:C]                    # [1, C]

    w2 = pm_ref[ROW_W2:ROW_W2 + FH, :]                     # [FH, FH] bf16
    wg = pm_ref[ROW_WG:ROW_WG + HID, 0:C]                  # [HID, C] bf16
    root = pm_ref[ROW_ROOT:ROW_ROOT + F_IN, 0:HID]         # [F_IN, HID] bf16
    rep = pm_ref[ROW_REP:ROW_REP + F_IN, :]                # [F_IN, FH] bf16

    x = x_ref[...]                                         # [GN, F_IN] f32
    ea = ea_ref[...]                                       # [GE, 1]
    src = src_ref[...]                                     # [GE, 1]
    dst = dst_ref[...]                                     # [1, GE]

    # --- one-hot gather/scatter matrices from iota compares (exact small-int floats) ---
    node_l = jax.lax.broadcasted_iota(jnp.int32, (GE, GN), 1).astype(f32)
    src_oh = jnp.where(src == node_l, 1.0, 0.0).astype(bf16)      # [GE, GN] gather
    node_s = jax.lax.broadcasted_iota(jnp.int32, (GN, GE), 0).astype(f32)
    dst_oh = jnp.where(dst == node_s, 1.0, 0.0)                   # [GN, GE] scatter (f32)

    # NNConv 'mean' aggregation matrix: rows scaled by 1/in-degree (0-degree rows stay 0)
    deg_in = jnp.sum(dst_oh, axis=1, keepdims=True)               # [GN, 1]
    a_mean = (dst_oh * (1.0 / jnp.maximum(deg_in, 1.0))).astype(bf16)

    # --- nn1(edge_attr): per-edge Theta, stacked over all graphs of the step ---
    h1 = jnp.maximum(ea * w1 + b1, 0.0)                           # [GE, FH] f32 (VPU)
    theta = jnp.dot(h1.astype(bf16), w2,
                    preferred_element_type=f32) + b2              # [GE, FH]

    # --- x[src] replicated per hidden unit: gather + repeat fused into two MXU dots ---
    xrep = jnp.dot(x.astype(bf16), rep, preferred_element_type=f32)          # [GN, FH]
    x_src_rep = jnp.dot(src_oh, xrep.astype(bf16), preferred_element_type=f32)  # [GE, FH]

    # NNConv message: x_src[f] * Theta[f*HID + h]; the F_IN-fold happens post-aggregation
    prod = (x_src_rep * theta).astype(bf16)                       # [GE, FH]

    # --- mean aggregation (block-diagonal across graphs) + fold + root + bias + ReLU ---
    agg = jnp.dot(a_mean, prod, preferred_element_type=f32)       # [GN, FH]
    aggr = (agg[:, 0:HID] + agg[:, HID:2 * HID]
            + agg[:, 2 * HID:3 * HID] + agg[:, 3 * HID:4 * HID])  # [GN, HID]
    root_term = jnp.dot(x.astype(bf16), root, preferred_element_type=f32)    # [GN, HID]
    h = jnp.maximum(aggr + root_term + bnn, 0.0)                  # [GN, HID]

    # TODO(synk): F.dropout(p=0.5, training=self.training) — eval-mode identity here.

    # --- GCNConv: D^-1/2 (A + I) D^-1/2 (h @ Wg) + bg ---
    adj = jnp.dot(dst_oh.astype(bf16), src_oh, preferred_element_type=f32)   # [GN, GN]
    eye = jnp.where(jax.lax.broadcasted_iota(jnp.int32, (GN, GN), 0)
                    == jax.lax.broadcasted_iota(jnp.int32, (GN, GN), 1), 1.0, 0.0)
    adj = adj + eye
    dinv = jax.lax.rsqrt(jnp.sum(adj, axis=1, keepdims=True))     # [GN, 1]
    hw = jnp.dot(h.astype(bf16), wg, preferred_element_type=f32)  # [GN, C]
    # D^-1/2 Adj D^-1/2 hw  ==  dinv * (Adj @ (dinv * hw))   (no column-vector transpose)
    z = dinv * jnp.dot(adj.astype(bf16), (dinv * hw).astype(bf16),
                       preferred_element_type=f32) + bg           # [GN, C]

    # --- log_softmax over classes (dim=1) ---
    m = jnp.max(z, axis=1, keepdims=True)
    lse = m + jnp.log(jnp.sum(jnp.exp(z - m), axis=1, keepdims=True))
    logp = z - lse

    # lane-dense store: pad classes to 128 lanes -> single unmasked writeback slab
    out_ref[...] = jnp.concatenate(
        [logp, jnp.zeros((GN, OUT_W - C), f32)], axis=1)


# --------------------------- parameter packing ---------------------------------
def pack_params(params):
    pf = jnp.zeros((PF_ROWS, FH), jnp.float32)
    pf = pf.at[ROW_W1, :].set(params["w1"][0])
    pf = pf.at[ROW_B1, :].set(params["b1"][0])
    pf = pf.at[ROW_B2, :].set(params["b2"][0])
    pf = pf.at[ROW_BNN, 0:HID].set(params["bnn"][0])
    pf = pf.at[ROW_BG, 0:C].set(params["bg"][0])

    pm = jnp.zeros((PM_ROWS, FH), jnp.float32)
    pm = pm.at[ROW_W2:ROW_W2 + FH, :].set(params["w2"])
    pm = pm.at[ROW_WG:ROW_WG + HID, 0:C].set(params["wg"])
    pm = pm.at[ROW_ROOT:ROW_ROOT + F_IN, 0:HID].set(params["root"])
    rep = jnp.kron(jnp.eye(F_IN, dtype=jnp.float32), jnp.ones((1, HID), jnp.float32))
    pm = pm.at[ROW_REP:ROW_REP + F_IN, :].set(rep)       # rep[f, f*HID + h] = 1
    return pf, pm.astype(jnp.bfloat16)


# --------------------------- wrapper (reshape-only glue) -----------------------
@jax.jit
def gcn_edge_forward(xs, edge_indices, edge_attrs, params):
    """xs: [G,N,F_IN] f32, edge_indices: [G,2,E] int32, edge_attrs: [G,E,1] f32."""
    srcs = edge_indices[:, 0, :]                                   # [G, E]
    dsts = edge_indices[:, 1, :]
    # Graphs within a grid step form one block-diagonal "big graph": offset node ids.
    goff = (jnp.arange(G, dtype=srcs.dtype) % GPS)[:, None] * N    # [G, 1]
    src_b = (srcs + goff).astype(jnp.float32).reshape(STEPS, GE, 1)
    dst_b = (dsts + goff).astype(jnp.float32).reshape(STEPS, 1, GE)
    ea_b = edge_attrs.reshape(STEPS, GE, 1)
    x_b = xs.reshape(STEPS, GN, F_IN)
    pf, pm = pack_params(params)

    flops_per_step = 2 * (GE * FH * FH + GN * F_IN * FH + GE * GN * FH
                          + GN * GE * FH + GN * F_IN * HID + GN * GE * GN
                          + GN * HID * C + GN * GN * C)
    cost = pl.CostEstimate(
        flops=STEPS * flops_per_step,
        transcendentals=STEPS * GN * (C + 2),
        bytes_accessed=(4 * (PF_ROWS * FH + G * (N * F_IN + 3 * E) + G * N * OUT_W)
                        + 2 * PM_ROWS * FH),
    )

    out = pl.pallas_call(
        gcn_edge_kernel,
        out_shape=jax.ShapeDtypeStruct((G * N, OUT_W), jnp.float32),
        grid=(STEPS,),
        in_specs=[
            pl.BlockSpec((PF_ROWS, FH), lambda s: (0, 0)),         # f32 params (fetched once)
            pl.BlockSpec((PM_ROWS, FH), lambda s: (0, 0)),         # bf16 MXU weights (once)
            pl.BlockSpec((None, GN, F_IN), lambda s: (s, 0, 0)),   # node features
            pl.BlockSpec((None, GE, 1), lambda s: (s, 0, 0)),      # edge_attr
            pl.BlockSpec((None, GE, 1), lambda s: (s, 0, 0)),      # src ids (sublane-major)
            pl.BlockSpec((None, 1, GE), lambda s: (s, 0, 0)),      # dst ids (lane-major)
        ],
        out_specs=pl.BlockSpec((GN, OUT_W), lambda s: (s, 0)),
        compiler_params=pltpu.CompilerParams(dimension_semantics=("parallel",)),
        cost_estimate=cost,
    )(pf, pm, x_b, ea_b, src_b, dst_b)

    return out[:, 0:C].reshape(G, N, C)


# ----------------------------- parameter init ---------------------------------
def init_params(key):
    ks = jax.random.split(key, 8)
    s = 0.1
    return {
        # nn1 = Sequential(Linear(1, FH), ReLU, Linear(FH, FH))
        "w1": jax.random.normal(ks[0], (1, FH), jnp.float32) * s,
        "b1": jax.random.normal(ks[1], (1, FH), jnp.float32) * s,
        "w2": jax.random.normal(ks[2], (FH, FH), jnp.float32) * s,
        "b2": jax.random.normal(ks[3], (1, FH), jnp.float32) * s,
        # NNConv root weight + bias
        "root": jax.random.normal(ks[4], (F_IN, HID), jnp.float32) * s,
        "bnn": jax.random.normal(ks[5], (1, HID), jnp.float32) * s,
        # GCNConv weight + bias
        "wg": jax.random.normal(ks[6], (HID, C), jnp.float32) * s,
        "bg": jax.random.normal(ks[7], (1, C), jnp.float32) * s,
    }


# ----------------------------- pure-JAX f32 reference --------------------------
def reference_forward(x, src, dst, edge_attr, params):
    h1 = jnp.maximum(edge_attr * params["w1"] + params["b1"], 0.0)
    theta = h1 @ params["w2"] + params["b2"]
    x_src = x[src]
    msg = jnp.einsum("ef,efh->eh", x_src, theta.reshape(E, F_IN, HID))
    deg_in = jnp.zeros((N,), jnp.float32).at[dst].add(1.0)
    agg = jnp.zeros((N, HID), jnp.float32).at[dst].add(msg)
    agg = agg / jnp.maximum(deg_in, 1.0)[:, None]
    h = jnp.maximum(agg + x @ params["root"] + params["bnn"], 0.0)
    loop = jnp.arange(N, dtype=src.dtype)
    src2 = jnp.concatenate([src, loop])
    dst2 = jnp.concatenate([dst, loop])
    deg = jnp.zeros((N,), jnp.float32).at[dst2].add(1.0)
    dinv = 1.0 / jnp.sqrt(deg)
    norm = dinv[src2] * dinv[dst2]
    a_hat = jnp.zeros((N, N), jnp.float32).at[dst2, src2].add(norm)
    z = a_hat @ (h @ params["wg"]) + params["bg"]
    return jax.nn.log_softmax(z, axis=1)


# ----------------------------- main --------------------------------------------
if __name__ == "__main__":
    key = jax.random.PRNGKey(0)
    k_x, k_src, k_dst, k_ea, k_p = jax.random.split(key, 5)

    xs = jax.random.normal(k_x, (G, N, F_IN), jnp.float32)
    srcs = jax.random.randint(k_src, (G, E), 0, N, dtype=jnp.int32)
    dsts = jax.random.randint(k_dst, (G, E), 0, N, dtype=jnp.int32)
    edge_indices = jnp.stack([srcs, dsts], axis=1)                # [G, 2, E]
    edge_attrs = jax.random.normal(k_ea, (G, E, 1), jnp.float32)  # [G, E, 1]

    params = init_params(k_p)

    out = gcn_edge_forward(xs, edge_indices, edge_attrs, params)
    out = jax.block_until_ready(out)
    assert out.shape == (G, N, C)

    # rows of log_softmax should exponentiate-sum to ~1
    row_sums = jnp.exp(out).sum(axis=-1)
    assert bool(jnp.all(jnp.abs(row_sums - 1.0) < 1e-3))

    # compare against an f32 reference (kernel uses bf16 MXU operands, f32 accumulation)
    ref = jax.vmap(reference_forward, in_axes=(0, 0, 0, 0, None))(
        xs, srcs, dsts, edge_attrs, params)
    max_err = float(jnp.max(jnp.abs(out - ref)))
    assert max_err < 0.05, f"max abs error vs f32 reference: {max_err}"

    print("KERNEL_OK")
</pallas_src>

<mosaic_0001>
module attributes {stable_mosaic.version = 11 : i64} {
  func.func @gcn_edge_kernel(%arg0: i32, %arg1: memref<8x64xf32, #tpu.memory_space<vmem>>, %arg2: memref<112x64xbf16, #tpu.memory_space<vmem>>, %arg3: memref<1x128x4xf32, #tpu.memory_space<vmem>>, %arg4: memref<1x256x1xf32, #tpu.memory_space<vmem>>, %arg5: memref<1x256x1xf32, #tpu.memory_space<vmem>>, %arg6: memref<1x1x256xf32, #tpu.memory_space<vmem>>, %arg7: memref<128x128xf32, #tpu.memory_space<vmem>>) attributes {dimension_semantics = [#tpu.dimension_semantics<parallel>], iteration_bounds = array<i64: 2>, scalar_prefetch = 0 : i64, scratch_operands = 0 : i64, tpu.core_type = #tpu.core_type<tc>, window_params = [{pipeline_mode = #tpu.pipeline_mode<synchronous>, transform_indices = @transform_0, window_bounds = array<i64: 8, 64>}, {pipeline_mode = #tpu.pipeline_mode<synchronous>, transform_indices = @transform_1, window_bounds = array<i64: 112, 64>}, {transform_indices = @transform_2, window_bounds = array<i64: 1, 128, 4>}, {transform_indices = @transform_3, window_bounds = array<i64: 1, 256, 1>}, {transform_indices = @transform_4, window_bounds = array<i64: 1, 256, 1>}, {transform_indices = @transform_5, window_bounds = array<i64: 1, 1, 256>}, {transform_indices = @transform_6, window_bounds = array<i64: 128, 128>}]} {
    %c0 = arith.constant 0 : index
    %c0_0 = arith.constant 0 : index
    %0 = vector.load %arg1[%c0, %c0_0] : memref<8x64xf32, #tpu.memory_space<vmem>>, vector<1x64xf32>
    %c1 = arith.constant 1 : index
    %c0_1 = arith.constant 0 : index
    %1 = vector.load %arg1[%c1, %c0_1] : memref<8x64xf32, #tpu.memory_space<vmem>>, vector<1x64xf32>
    %c2 = arith.constant 2 : index
    %c0_2 = arith.constant 0 : index
    %2 = vector.load %arg1[%c2, %c0_2] : memref<8x64xf32, #tpu.memory_space<vmem>>, vector<1x64xf32>
    %c3 = arith.constant 3 : index
    %c0_3 = arith.constant 0 : index
    %3 = vector.load %arg1[%c3, %c0_3] : memref<8x64xf32, #tpu.memory_space<vmem>>, vector<1x16xf32>
    %c4 = arith.constant 4 : index
    %c0_4 = arith.constant 0 : index
    %4 = vector.load %arg1[%c4, %c0_4] : memref<8x64xf32, #tpu.memory_space<vmem>>, vector<1x8xf32>
    %c0_5 = arith.constant 0 : index
    %c0_6 = arith.constant 0 : index
    %5 = vector.load %arg2[%c0_5, %c0_6] : memref<112x64xbf16, #tpu.memory_space<vmem>>, vector<64x64xbf16>
    %c64 = arith.constant 64 : index
    %c0_7 = arith.constant 0 : index
    %6 = vector.load %arg2[%c64, %c0_7] : memref<112x64xbf16, #tpu.memory_space<vmem>>, vector<16x8xbf16>
    %c80 = arith.constant 80 : index
    %c0_8 = arith.constant 0 : index
    %7 = vector.load %arg2[%c80, %c0_8] : memref<112x64xbf16, #tpu.memory_space<vmem>>, vector<4x16xbf16>
    %c96 = arith.constant 96 : index
    %c0_9 = arith.constant 0 : index
    %8 = vector.load %arg2[%c96, %c0_9] : memref<112x64xbf16, #tpu.memory_space<vmem>>, vector<4x64xbf16>
    %c0_10 = arith.constant 0 : index
    %c0_11 = arith.constant 0 : index
    %c0_12 = arith.constant 0 : index
    %9 = vector.load %arg3[%c0_10, %c0_11, %c0_12] : memref<1x128x4xf32, #tpu.memory_space<vmem>>, vector<1x128x4xf32>
    %10 = vector.shape_cast %9 : vector<1x128x4xf32> to vector<128x4xf32>
    %c0_13 = arith.constant 0 : index
    %c0_14 = arith.constant 0 : index
    %c0_15 = arith.constant 0 : index
    %11 = vector.load %arg4[%c0_13, %c0_14, %c0_15] : memref<1x256x1xf32, #tpu.memory_space<vmem>>, vector<1x256x1xf32>
    %12 = vector.shape_cast %11 : vector<1x256x1xf32> to vector<256x1xf32>
    %c0_16 = arith.constant 0 : index
    %c0_17 = arith.constant 0 : index
    %c0_18 = arith.constant 0 : index
    %13 = vector.load %arg5[%c0_16, %c0_17, %c0_18] : memref<1x256x1xf32, #tpu.memory_space<vmem>>, vector<1x256x1xf32>
    %14 = vector.shape_cast %13 : vector<1x256x1xf32> to vector<256x1xf32>
    %c0_19 = arith.constant 0 : index
    %c0_20 = arith.constant 0 : index
    %c0_21 = arith.constant 0 : index
    %15 = vector.load %arg6[%c0_19, %c0_20, %c0_21] : memref<1x1x256xf32, #tpu.memory_space<vmem>>, vector<1x1x256xf32>
    %16 = vector.shape_cast %15 : vector<1x1x256xf32> to vector<1x256xf32>
    %17 = tpu.iota {dimensions = array<i32: 1>} : vector<256x128xi32>
    %18 = arith.sitofp %17 : vector<256x128xi32> to vector<256x128xf32>
    %19 = vector.broadcast %14 : vector<256x1xf32> to vector<256x128xf32>
    %20 = arith.cmpf oeq, %19, %18 : vector<256x128xf32>
    %cst = arith.constant 1.000000e+00 : f32
    %cst_22 = arith.constant 0.000000e+00 : f32
    %21 = vector.broadcast %cst : f32 to vector<256x128xf32>
    %22 = vector.broadcast %cst_22 : f32 to vector<256x128xf32>
    %23 = arith.select %20, %21, %22 : vector<256x128xi1>, vector<256x128xf32>
    %24 = arith.truncf %23 : vector<256x128xf32> to vector<256x128xbf16>
    %25 = tpu.iota {dimensions = array<i32: 0>} : vector<128x256xi32>
    %26 = arith.sitofp %25 : vector<128x256xi32> to vector<128x256xf32>
    %27 = vector.broadcast %16 : vector<1x256xf32> to vector<128x256xf32>
    %28 = arith.cmpf oeq, %27, %26 : vector<128x256xf32>
    %cst_23 = arith.constant 1.000000e+00 : f32
    %cst_24 = arith.constant 0.000000e+00 : f32
    %29 = vector.broadcast %cst_23 : f32 to vector<128x256xf32>
    %30 = vector.broadcast %cst_24 : f32 to vector<128x256xf32>
    %31 = arith.select %28, %29, %30 : vector<128x256xi1>, vector<128x256xf32>
    %cst_25 = arith.constant dense<0.000000e+00> : vector<128xf32>
    %32 = vector.multi_reduction <add>, %31, %cst_25 [1] : vector<128x256xf32> to vector<128xf32>
    %33 = vector.shape_cast %32 : vector<128xf32> to vector<128x1xf32>
    %cst_26 = arith.constant 1.000000e+00 : f32
    %34 = vector.broadcast %cst_26 : f32 to vector<128x1xf32>
    %35 = arith.maximumf %33, %34 : vector<128x1xf32>
    %cst_27 = arith.constant 1.000000e+00 : f32
    %36 = vector.broadcast %cst_27 : f32 to vector<128x1xf32>
    %37 = arith.divf %36, %35 : vector<128x1xf32>
    %38 = vector.broadcast %37 : vector<128x1xf32> to vector<128x256xf32>
    %39 = arith.mulf %31, %38 : vector<128x256xf32>
    %40 = arith.truncf %39 : vector<128x256xf32> to vector<128x256xbf16>
    %41 = vector.broadcast %12 : vector<256x1xf32> to vector<256x64xf32>
    %42 = vector.broadcast %0 : vector<1x64xf32> to vector<256x64xf32>
    %43 = arith.mulf %41, %42 : vector<256x64xf32>
    %44 = vector.broadcast %1 : vector<1x64xf32> to vector<256x64xf32>
    %45 = arith.addf %43, %44 : vector<256x64xf32>
    %cst_28 = arith.constant 0.000000e+00 : f32
    %46 = vector.broadcast %cst_28 : f32 to vector<256x64xf32>
    %47 = arith.maximumf %45, %46 : vector<256x64xf32>
    %48 = arith.truncf %47 : vector<256x64xf32> to vector<256x64xbf16>
    %cst_29 = arith.constant dense<0.000000e+00> : vector<256x64xf32>
    %49 = tpu.matmul %48, %5, %cst_29 {dimension_numbers = #tpu.dot_dimension_numbers<[1], [0], [0], [1], [0, 0, 1, 1], [], []>} : vector<256x64xbf16>, vector<64x64xbf16>, vector<256x64xf32> -> vector<256x64xf32>
    %50 = vector.broadcast %2 : vector<1x64xf32> to vector<256x64xf32>
    %51 = arith.addf %49, %50 : vector<256x64xf32>
    %52 = arith.truncf %10 : vector<128x4xf32> to vector<128x4xbf16>
    %cst_30 = arith.constant dense<0.000000e+00> : vector<128x64xf32>
    %53 = tpu.matmul %52, %8, %cst_30 {dimension_numbers = #tpu.dot_dimension_numbers<[1], [0], [0], [1], [0, 0, 1, 1], [], []>} : vector<128x4xbf16>, vector<4x64xbf16>, vector<128x64xf32> -> vector<128x64xf32>
    %54 = arith.truncf %53 : vector<128x64xf32> to vector<128x64xbf16>
    %cst_31 = arith.constant dense<0.000000e+00> : vector<256x64xf32>
    %55 = tpu.matmul %24, %54, %cst_31 {dimension_numbers = #tpu.dot_dimension_numbers<[1], [0], [0], [1], [0, 0, 1, 1], [], []>} : vector<256x128xbf16>, vector<128x64xbf16>, vector<256x64xf32> -> vector<256x64xf32>
    %56 = arith.mulf %55, %51 : vector<256x64xf32>
    %57 = arith.truncf %56 : vector<256x64xf32> to vector<256x64xbf16>
    %cst_32 = arith.constant dense<0.000000e+00> : vector<128x64xf32>
    %58 = tpu.matmul %40, %57, %cst_32 {dimension_numbers = #tpu.dot_dimension_numbers<[1], [0], [0], [1], [0, 0, 1, 1], [], []>} : vector<128x256xbf16>, vector<256x64xbf16>, vector<128x64xf32> -> vector<128x64xf32>
    %59 = vector.extract_strided_slice %58 {offsets = [0, 0], sizes = [128, 16], strides = [1, 1]} : vector<128x64xf32> to vector<128x16xf32>
    %60 = vector.extract_strided_slice %58 {offsets = [0, 16], sizes = [128, 16], strides = [1, 1]} : vector<128x64xf32> to vector<128x16xf32>
    %61 = arith.addf %59, %60 : vector<128x16xf32>
    %62 = vector.extract_strided_slice %58 {offsets = [0, 32], sizes = [128, 16], strides = [1, 1]} : vector<128x64xf32> to vector<128x16xf32>
    %63 = arith.addf %61, %62 : vector<128x16xf32>
    %64 = vector.extract_strided_slice %58 {offsets = [0, 48], sizes = [128, 16], strides = [1, 1]} : vector<128x64xf32> to vector<128x16xf32>
    %65 = arith.addf %63, %64 : vector<128x16xf32>
    %66 = arith.truncf %10 : vector<128x4xf32> to vector<128x4xbf16>
    %cst_33 = arith.constant dense<0.000000e+00> : vector<128x16xf32>
    %67 = tpu.matmul %66, %7, %cst_33 {dimension_numbers = #tpu.dot_dimension_numbers<[1], [0], [0], [1], [0, 0, 1, 1], [], []>} : vector<128x4xbf16>, vector<4x16xbf16>, vector<128x16xf32> -> vector<128x16xf32>
    %68 = arith.addf %65, %67 : vector<128x16xf32>
    %69 = vector.broadcast %3 : vector<1x16xf32> to vector<128x16xf32>
    %70 = arith.addf %68, %69 : vector<128x16xf32>
    %cst_34 = arith.constant 0.000000e+00 : f32
    %71 = vector.broadcast %cst_34 : f32 to vector<128x16xf32>
    %72 = arith.maximumf %70, %71 : vector<128x16xf32>
    %73 = arith.truncf %31 : vector<128x256xf32> to vector<128x256xbf16>
    %cst_35 = arith.constant dense<0.000000e+00> : vector<128x128xf32>
    %74 = tpu.matmul %73, %24, %cst_35 {dimension_numbers = #tpu.dot_dimension_numbers<[1], [0], [0], [1], [0, 0, 1, 1], [], []>} : vector<128x256xbf16>, vector<256x128xbf16>, vector<128x128xf32> -> vector<128x128xf32>
    %75 = tpu.iota {dimensions = array<i32: 0>} : vector<128x128xi32>
    %76 = tpu.iota {dimensions = array<i32: 1>} : vector<128x128xi32>
    %77 = arith.cmpi eq, %75, %76 : vector<128x128xi32>
    %cst_36 = arith.constant 1.000000e+00 : f32
    %cst_37 = arith.constant 0.000000e+00 : f32
    %78 = vector.broadcast %cst_36 : f32 to vector<128x128xf32>
    %79 = vector.broadcast %cst_37 : f32 to vector<128x128xf32>
    %80 = arith.select %77, %78, %79 : vector<128x128xi1>, vector<128x128xf32>
    %81 = arith.addf %74, %80 : vector<128x128xf32>
    %cst_38 = arith.constant dense<0.000000e+00> : vector<128xf32>
    %82 = vector.multi_reduction <add>, %81, %cst_38 [1] : vector<128x128xf32> to vector<128xf32>
    %83 = vector.shape_cast %82 : vector<128xf32> to vector<128x1xf32>
    %84 = math.rsqrt %83 : vector<128x1xf32>
    %85 = arith.truncf %72 : vector<128x16xf32> to vector<128x16xbf16>
    %cst_39 = arith.constant dense<0.000000e+00> : vector<128x8xf32>
    %86 = tpu.matmul %85, %6, %cst_39 {dimension_numbers = #tpu.dot_dimension_numbers<[1], [0], [0], [1], [0, 0, 1, 1], [], []>} : vector<128x16xbf16>, vector<16x8xbf16>, vector<128x8xf32> -> vector<128x8xf32>
    %87 = arith.truncf %81 : vector<128x128xf32> to vector<128x128xbf16>
    %88 = vector.broadcast %84 : vector<128x1xf32> to vector<128x8xf32>
    %89 = arith.mulf %88, %86 : vector<128x8xf32>
    %90 = arith.truncf %89 : vector<128x8xf32> to vector<128x8xbf16>
    %cst_40 = arith.constant dense<0.000000e+00> : vector<128x8xf32>
    %91 = tpu.matmul %87, %90, %cst_40 {dimension_numbers = #tpu.dot_dimension_numbers<[1], [0], [0], [1], [0, 0, 1, 1], [], []>} : vector<128x128xbf16>, vector<128x8xbf16>, vector<128x8xf32> -> vector<128x8xf32>
    %92 = vector.broadcast %84 : vector<128x1xf32> to vector<128x8xf32>
    %93 = arith.mulf %92, %91 : vector<128x8xf32>
    %94 = vector.broadcast %4 : vector<1x8xf32> to vector<128x8xf32>
    %95 = arith.addf %93, %94 : vector<128x8xf32>
    %cst_41 = arith.constant dense<0xFF800000> : vector<128xf32>
    %96 = vector.multi_reduction <maximumf>, %95, %cst_41 [1] : vector<128x8xf32> to vector<128xf32>
    %97 = vector.shape_cast %96 : vector<128xf32> to vector<128x1xf32>
    %98 = vector.broadcast %97 : vector<128x1xf32> to vector<128x8xf32>
    %99 = arith.subf %95, %98 : vector<128x8xf32>
    %100 = math.exp %99 : vector<128x8xf32>
    %cst_42 = arith.constant dense<0.000000e+00> : vector<128xf32>
    %101 = vector.multi_reduction <add>, %100, %cst_42 [1] : vector<128x8xf32> to vector<128xf32>
    %102 = vector.shape_cast %101 : vector<128xf32> to vector<128x1xf32>
    %103 = math.log %102 : vector<128x1xf32>
    %104 = arith.addf %97, %103 : vector<128x1xf32>
    %105 = vector.broadcast %104 : vector<128x1xf32> to vector<128x8xf32>
    %106 = arith.subf %95, %105 : vector<128x8xf32>
    %cst_43 = arith.constant 0.000000e+00 : f32
    %107 = vector.broadcast %cst_43 : f32 to vector<128x120xf32>
    %108 = tpu.concatenate %106, %107 in 1 : vector<128x8xf32>, vector<128x120xf32> -> vector<128x128xf32>
    %c0_44 = arith.constant 0 : index
    %c0_45 = arith.constant 0 : index
    %109 = vector.load %arg7[%c0_44, %c0_45] : memref<128x128xf32, #tpu.memory_space<vmem>>, vector<128x128xf32>
    tpu.vector_store %arg7[%c0_44, %c0_45], %108 {strides = array<i32>} : memref<128x128xf32, #tpu.memory_space<vmem>>, vector<128x128xf32>,
    return
  }
  func.func @transform_0(%arg0: i32) -> (i32, i32) {
    %c0_i32 = arith.constant 0 : i32
    %c0_i32_0 = arith.constant 0 : i32
    %c0_i32_1 = arith.constant 0 : i32
    return %c0_i32, %c0_i32_0 : i32, i32
  }
  func.func @transform_1(%arg0: i32) -> (i32, i32) {
    %c0_i32 = arith.constant 0 : i32
    %c0_i32_0 = arith.constant 0 : i32
    %c0_i32_1 = arith.constant 0 : i32
    return %c0_i32, %c0_i32_0 : i32, i32
  }
  func.func @transform_2(%arg0: i32) -> (i32, i32, i32) {
    %c0_i32 = arith.constant 0 : i32
    %c0_i32_0 = arith.constant 0 : i32
    %c0_i32_1 = arith.constant 0 : i32
    return %arg0, %c0_i32, %c0_i32_0 : i32, i32, i32
  }
  func.func @transform_3(%arg0: i32) -> (i32, i32, i32) {
    %c0_i32 = arith.constant 0 : i32
    %c0_i32_0 = arith.constant 0 : i32
    %c0_i32_1 = arith.constant 0 : i32
    return %arg0, %c0_i32, %c0_i32_0 : i32, i32, i32
  }
  func.func @transform_4(%arg0: i32) -> (i32, i32, i32) {
    %c0_i32 = arith.constant 0 : i32
    %c0_i32_0 = arith.constant 0 : i32
    %c0_i32_1 = arith.constant 0 : i32
    return %arg0, %c0_i32, %c0_i32_0 : i32, i32, i32
  }
  func.func @transform_5(%arg0: i32) -> (i32, i32, i32) {
    %c0_i32 = arith.constant 0 : i32
    %c0_i32_0 = arith.constant 0 : i32
    %c0_i32_1 = arith.constant 0 : i32
    return %arg0, %c0_i32, %c0_i32_0 : i32, i32, i32
  }
  func.func @transform_6(%arg0: i32) -> (i32, i32) {
    %c0_i32 = arith.constant 0 : i32
    %c0_i32_0 = arith.constant 0 : i32
    return %arg0, %c0_i32 : i32, i32
  }
}

</mosaic_0001>

<bundles_post_ra>
// kernel: gcn_edge_forward.1
= control target key start
LH: loop header
LB: loop body
LE: loop exit
PB: predicated region body
PF: predicated region fallthrough
CT: control target
= control target key end

     0   :  { %s3811_s21 = smov 0   ;;  %s5774_s0 = inlined_call_operand.vmem [shape: f32[8,64], index: 0, kind: input, shape index: {}]   ;;  %s5775_s1 = inlined_call_operand.vmem [shape: bf16[112,64], index: 1, kind: input, shape index: {}]   ;;  %s5776_s2 = inlined_call_operand.vmem [shape: f32[2,128,4], index: 2, kind: input, shape index: {}]   ;;  %s5777_s3 = inlined_call_operand.vmem [shape: f32[2,256,1], index: 3, kind: input, shape index: {}]   ;;  %s5778_s4 = inlined_call_operand.vmem [shape: f32[2,256,1], index: 4, kind: input, shape index: {}]   ;;  %s5779_s5 = inlined_call_operand.vmem [shape: f32[2,1,256], index: 5, kind: input, shape index: {}]   ;;  %s5780_s6 = inlined_call_operand.vmem [shape: f32[256,128], index: 6, kind: output, shape index: {}]  }
   0x1 LB: > { %s3817_s22 = sadd.s32 4294967295, %s3768_s21   ;;  %p3061_p0 = scmp.ge.s32.totalorder %s3768_s21, 1  ;;  %s3768_s21 = sphi %s3811_s21, %s16_s21  }
   0x2   : > { %p241_p1 = scmp.lt.s32.totalorder %s3768_s21, 3 }
   0x4   : > { %p242_p2 = pnand %p3061_p0, %p241_p1 }
   0x6   : > { %245 = sbr.rel (%p242_p2) target bundleno = 1787 (0x6fb), region = 44 }
   0xd   : > { %v327_v0 = vld [vmem:[%s5775_s1 + $0x30] sm:$0x3]  ;;  %vm5814_vm0 = vcmask 1041408   ;;  %p285_p3 = scmp.lt.s32.totalorder %s3817_s22, 1  ;;  %v3770_v1 = vmov 0   ;;  %vm5813_vm1 = vcmask 31744  }
   0xe   : > { %3628 = vset.pattern.permute.xlu1 %v3770_v1  ;;  %3627 = vset.pattern.permute.xlu0 %v3770_v1  ;;  %v1457_v2 = vsel %vm5814_vm0, %v327_v0, 0  ;;  %v3629_v42 = vld [vmem:[%s5775_s1] sm:$0xff]   ;;  %v3630_v44 = vld [vmem:[%s5775_s1 + $0x8] sm:$0xff]   ;;  %v3631_v47 = vld [vmem:[%s5775_s1 + $0x10] sm:$0xff]   ;;  %vm5815_vm5 = vcmask 523264   ;;  %s3773_s11 = smov 96  }
   0xf   : > { %3611 = vmatprep.subr.msk.bf16.mxu1 %vm5814_vm0, %v327_v0  ;;  %s3828_s25 = scalar_select %p285_p3, %s3817_s22, 1  ;;  %3437 = vmatprep.subr.bf16.mxu0 %v3629_v42  ;;  %v3632_v50 = vld [vmem:[%s5775_s1 + $0x18] sm:$0xff]  }
  0x10   : > { %3478 = vmatpush3.bf16.msra.mxu1 %v1457_v2  ;;  %3438 = vmatpush3.bf16.msra.mxu0 %v3629_v42  ;;  %s3775_s13 = smov 80   ;;  %s3069_s20 = sshll.u32 %s3817_s22, 4 }
  0x11   : > { %s3220_s26 = sshll.u32 %s3828_s25, 8  ;;  %s3219_s27 = sshll.u32 %s3828_s25, 7  ;;  %3439 = vmatprep.subr.bf16.mxu0 %v3630_v44 }
  0x12   : > { %s3835_s30 = scalar_lea.vmem %s5777_s3, %s3220_s26  ;;  %s3840_s9 = scalar_lea.vmem %s5776_s2, %s3219_s27 }
  0x13   : > { %v346_v3 = vld [vmem:[%s3835_s30 + $0x10] sm:$0xff]  ;;  %v344_v4 = vld [vmem:[%s3835_s30] sm:$0xff]  ;;  %v329_v6 = vld [vmem:[%s3840_s9 + $0x8] sm:$0xff]  ;;  %s3857_s12 = scalar_lea.vmem %s5778_s4, %s3220_s26  ;;  %s3068_s28 = sshll.u32 %s3828_s25, 1 }
  0x14   : > { %v328_v5 = vld [vmem:[%s3840_s9] sm:$0xff]  ;;  %916 = vperm.xlu1 %3628, %v346_v3   ;;  %906 = vperm.xlu0 %3627, %v344_v4   ;;  %v330_v7 = vld [vmem:[%s3840_s9 + $0x10] sm:$0xff]  ;;  %v331_v8 = vld [vmem:[%s3840_s9 + $0x18] sm:$0xff]  ;;  %s303_s7 = scalar_lea.vmem %s5779_s5, %s3068_s28  ;;  %p305_p4 = scmp.lt.s32.totalorder %s3069_s20, 31 }
  0x15   : > { %v3848_v9 = vpack.c.bf16 %v329_v6, %v328_v5  ;;  %v3850_v10 = vpack.c.bf16 %v331_v8, %v330_v7  ;;  %v347_v11 = vld [vmem:[%s3835_s30 + $0x18] sm:$0xff]  ;;  %v345_v12 = vld [vmem:[%s3835_s30 + $0x8] sm:$0xff]  ;;  %v332_v13 = vld [vmem:[%s3840_s9 + $0x20] sm:$0xff]  ;;  %3440 = vmatpush3.bf16.msra.mxu0 %v3630_v44 }
  0x16   : > { %v333_v14 = vld [vmem:[%s3840_s9 + $0x28] sm:$0xff]  ;;  %v334_v17 = vld [vmem:[%s3840_s9 + $0x30] sm:$0xff]  ;;  %v335_v18 = vld [vmem:[%s3840_s9 + $0x38] sm:$0xff]  ;;  %3441 = vmatprep.subr.bf16.mxu0 %v3631_v47  ;;  %s6167_s20 = smov (!%p305_p4, %s3069_s20), 31 }
  0x17   : > { %3479 = vmatprep.mubr.msk.bf16.mxu1 %vm5813_vm1, %v3848_v9  ;;  %v3863_v15 = vpack.c.bf16 %v333_v14, %v332_v13  ;;  %v377_v16 = vld [vmem:[%s3857_s12 + $0x8] sm:$0xff]  ;;  %v376_v19 = vld [vmem:[%s3857_s12] sm:$0xff]  ;;  %v3875_v22 = vpack.c.bf16 %v335_v18, %v334_v17  ;;  %v379_v26 = vld [vmem:[%s3857_s12 + $0x18] sm:$0xff]  ;;  %s3070_s23 = sshll.u32 %s6167_s20, 3 }
  0x18   : > { %3480 = vmatmul.mubr.msk.bf16.vlgmr.msra.gmra.mrb[0].mxu1 %vm5813_vm1, %v3850_v10  ;;  %921 = vperm.xlu1 %3628, %v347_v11   ;;  %v336_v20 = vld [vmem:[%s3840_s9 + $0x40] sm:$0xff]  ;;  %v337_v21 = vld [vmem:[%s3840_s9 + $0x48] sm:$0xff]  ;;  %v338_v27 = vld [vmem:[%s3840_s9 + $0x50] sm:$0xff]  ;;  %s5706_s26 = scalar_lea.vmem %s5780_s6, %s3070_s23 }
  0x19   : > { %911 = vperm.xlu0 %3627, %v345_v12   ;;  %3483 = vmatprep.mubr.msk.bf16.mxu1 %vm5813_vm1, %v3863_v15  ;;  %v349_v23 = vld [vmem:[%s3835_s30 + $0x28] sm:$0xff]  ;;  %v3878_v24 = vpack.c.bf16 %v337_v21, %v336_v20  ;;  %v348_v25 = vld [vmem:[%s3835_s30 + $0x20] sm:$0xff]  ;;  %v339_v28 = vld [vmem:[%s3840_s9 + $0x58] sm:$0xff] }
  0x1a   : > { %v378_v29 = vld [vmem:[%s3857_s12 + $0x10] sm:$0xff]  ;;  %v340_v30 = vld [vmem:[%s3840_s9 + $0x60] sm:$0xff]  ;;  %v341_v31 = vld [vmem:[%s3840_s9 + $0x68] sm:$0xff]  ;;  %v3891_v32 = vpack.c.bf16 %v339_v28, %v338_v27  ;;  %3442 = vmatpush3.bf16.msra.mxu0 %v3631_v47 }
  0x1b   : > { %v351_v33 = vld [vmem:[%s3835_s30 + $0x38] sm:$0xff]  ;;  %v3894_v34 = vpack.c.bf16 %v341_v31, %v340_v30  ;;  %v350_v35 = vld [vmem:[%s3835_s30 + $0x30] sm:$0xff]  ;;  %v381_v36 = vld [vmem:[%s3857_s12 + $0x28] sm:$0xff]  ;;  %3443 = vmatprep.subr.bf16.mxu0 %v3632_v50 }
  0x1c   : > { %419 = vperm.xlu1 %3628, %v377_v16   ;;  %v342_v37 = vld [vmem:[%s3840_s9 + $0x70] sm:$0xff]  ;;  %v343_v38 = vld [vmem:[%s3840_s9 + $0x78] sm:$0xff]  ;;  %v380_v39 = vld [vmem:[%s3857_s12 + $0x20] sm:$0xff] }
  0x1d   : > { %414 = vperm.xlu0 %3627, %v376_v19   ;;  %v3905_v40 = vpack.c.bf16 %v343_v38, %v342_v37  ;;  %v353_v41 = vld [vmem:[%s3835_s30 + $0x48] sm:$0xff]  ;;  %v352_v43 = vld [vmem:[%s3835_s30 + $0x40] sm:$0xff]  ;;  %v383_v45 = vld [vmem:[%s3857_s12 + $0x38] sm:$0xff]  ;;  %v409_v38 = vlaneseq }
  0x1e   : > { %v382_v46 = vld [vmem:[%s3857_s12 + $0x30] sm:$0xff]  ;;  %v355_v48 = vld [vmem:[%s3835_s30 + $0x58] sm:$0xff]  ;;  %v385_v51 = vld [vmem:[%s3857_s12 + $0x48] sm:$0xff]  ;;  %3444 = vmatpush3.bf16.msra.mxu0 %v3632_v50 }
  0x1f   : > { %v354_v49 = vld [vmem:[%s3835_s30 + $0x50] sm:$0xff]  ;;  %v384_v52 = vld [vmem:[%s3857_s12 + $0x40] sm:$0xff]  ;;  %v357_v53 = vld [vmem:[%s3835_s30 + $0x68] sm:$0xff] }
  0x20   : > { %3484 = vmatmul.mubr.msk.bf16.gmra.mrb[4].mxu1 %vm5813_vm1, %v3875_v22  ;;  %931 = vperm.xlu1 %3628, %v349_v23   ;;  %v356_v54 = vld [vmem:[%s3835_s30 + $0x60] sm:$0xff]  ;;  %v387_v55 = vld [vmem:[%s3857_s12 + $0x58] sm:$0xff]  ;;  %v386_v56 = vld [vmem:[%s3857_s12 + $0x50] sm:$0xff] }
  0x21   : > { %926 = vperm.xlu0 %3627, %v348_v25   ;;  %3487 = vmatprep.mubr.msk.bf16.mxu1 %vm5813_vm1, %v3878_v24  ;;  %v359_v57 = vld [vmem:[%s3835_s30 + $0x78] sm:$0xff]  ;;  %v358_v58 = vld [vmem:[%s3835_s30 + $0x70] sm:$0xff]  ;;  %v389_v59 = vld [vmem:[%s3857_s12 + $0x68] sm:$0xff] }
  0x22   : > { %v388_v60 = vld [vmem:[%s3857_s12 + $0x60] sm:$0xff]  ;;  %v361_v61 = vld [vmem:[%s3835_s30 + $0x88] sm:$0xff]  ;;  %v391_v63 = vld [vmem:[%s3857_s12 + $0x78] sm:$0xff] }
  0x23   : > { %v360_v62 = vld [vmem:[%s3835_s30 + $0x80] sm:$0xff]  ;;  %v390_v0 = vld [vmem:[%s3857_s12 + $0x70] sm:$0xff]  ;;  %v363_v1 = vld [vmem:[%s3835_s30 + $0x98] sm:$0xff] }
  0x24   : > { %429 = vperm.xlu1 %3628, %v379_v26   ;;  %v362_v2 = vld [vmem:[%s3835_s30 + $0x90] sm:$0xff]  ;;  %v393_v3 = vld [vmem:[%s3857_s12 + $0x88] sm:$0xff]  ;;  %v392_v4 = vld [vmem:[%s3857_s12 + $0x80] sm:$0xff] }
  0x25   : > { %424 = vperm.xlu0 %3627, %v378_v29   ;;  %v365_v5 = vld [vmem:[%s3835_s30 + $0xa8] sm:$0xff]  ;;  %v364_v6 = vld [vmem:[%s3835_s30 + $0xa0] sm:$0xff]  ;;  %v395_v7 = vld [vmem:[%s3857_s12 + $0x98] sm:$0xff] }
  0x26   : > { %v394_v8 = vld [vmem:[%s3857_s12 + $0x90] sm:$0xff]  ;;  %v367_v11 = vld [vmem:[%s3835_s30 + $0xb8] sm:$0xff]  ;;  %v397_v13 = vld [vmem:[%s3857_s12 + $0xa8] sm:$0xff] }
  0x27   : > { %v366_v12 = vld [vmem:[%s3835_s30 + $0xb0] sm:$0xff]  ;;  %v396_v14 = vld [vmem:[%s3857_s12 + $0xa0] sm:$0xff]  ;;  %v369_v16 = vld [vmem:[%s3835_s30 + $0xc8] sm:$0xff] }
  0x28   : > { %3488 = vmatmul.mubr.msk.bf16.gmra.mrb[8].mxu1 %vm5813_vm1, %v3891_v32  ;;  %941 = vperm.xlu1 %3628, %v351_v33   ;;  %v368_v17 = vld [vmem:[%s3835_s30 + $0xc0] sm:$0xff]  ;;  %v399_v18 = vld [vmem:[%s3857_s12 + $0xb8] sm:$0xff]  ;;  %v398_v19 = vld [vmem:[%s3857_s12 + $0xb0] sm:$0xff] }
  0x29   : > { %936 = vperm.xlu0 %3627, %v350_v35   ;;  %3491 = vmatprep.mubr.msk.bf16.mxu1 %vm5813_vm1, %v3894_v34  ;;  %v371_v20 = vld [vmem:[%s3835_s30 + $0xd8] sm:$0xff]  ;;  %v370_v21 = vld [vmem:[%s3835_s30 + $0xd0] sm:$0xff]  ;;  %v401_v23 = vld [vmem:[%s3857_s12 + $0xc8] sm:$0xff] }
  0x2a   : > { %v400_v25 = vld [vmem:[%s3857_s12 + $0xc0] sm:$0xff]  ;;  %v373_v26 = vld [vmem:[%s3835_s30 + $0xe8] sm:$0xff]  ;;  %v403_v28 = vld [vmem:[%s3857_s12 + $0xd8] sm:$0xff] }
  0x2b   : > { %v372_v27 = vld [vmem:[%s3835_s30 + $0xe0] sm:$0xff]  ;;  %v402_v29 = vld [vmem:[%s3857_s12 + $0xd0] sm:$0xff]  ;;  %v375_v30 = vld [vmem:[%s3835_s30 + $0xf8] sm:$0xff] }
  0x2c   : > { %439 = vperm.xlu1 %3628, %v381_v36   ;;  %v374_v31 = vld [vmem:[%s3835_s30 + $0xf0] sm:$0xff]  ;;  %v405_v33 = vld [vmem:[%s3857_s12 + $0xe8] sm:$0xff]  ;;  %v404_v35 = vld [vmem:[%s3857_s12 + $0xe0] sm:$0xff] }
  0x2d   : > { %434 = vperm.xlu0 %3627, %v380_v39   ;;  %v407_v36 = vld [vmem:[%s3857_s12 + $0xf8] sm:$0xff]  ;;  %v406_v37 = vld [vmem:[%s3857_s12 + $0xf0] sm:$0xff]  ;;  %v3974_v39 = vld [vmem:[%s5774_s0] ss:$0 sm:$0xff]  ;;  %s3774_s12 = smov 112  }
  0x30   : > { %3492 = vmatmul.mubr.msk.bf16.gmra.mrb[12].mxu1 %vm5813_vm1, %v3905_v40  ;;  %951 = vperm.xlu1 %3628, %v353_v41   ;;  %v3979_v41 = vld [vmem:[%s5774_s0 + $0x1] ss:$0 sm:$0xff] }
  0x31   : > { %946 = vperm.xlu0 %3627, %v352_v43  }
  0x34   : > { %449 = vperm.xlu1 %3628, %v383_v45  }
  0x35   : > { %444 = vperm.xlu0 %3627, %v382_v46   ;;  %v3984_v46 = vand.u32 127, %v409_v38 }
  0x37   : > { %5884 = vst [vmem:[#allocation2_spill] sm:$0xff] %v3984_v46 }
  0x38   : > { %961 = vperm.xlu1 %3628, %v355_v48  }
  0x39   : > { %956 = vperm.xlu0 %3627, %v354_v49  }
  0x3c   : > { %459 = vperm.xlu1 %3628, %v385_v51  }
  0x3d   : > { %454 = vperm.xlu0 %3627, %v384_v52   ;;  %v3990_v52 = vcvt.s32.f32 %v3984_v46 }
  0x40   : > { %971 = vperm.xlu1 %3628, %v357_v53  }
  0x41   : > { %966 = vperm.xlu0 %3627, %v356_v54  }
  0x44   : > { %469 = vperm.xlu1 %3628, %v387_v55  }
  0x45   : > { %464 = vperm.xlu0 %3627, %v386_v56  }
  0x48   : > { %981 = vperm.xlu1 %3628, %v359_v57  }
  0x49   : > { %976 = vperm.xlu0 %3627, %v358_v58  }
  0x4c   : > { %479 = vperm.xlu1 %3628, %v389_v59  }
  0x4d   : > { %474 = vperm.xlu0 %3627, %v388_v60  }
  0x50   : > { %991 = vperm.xlu1 %3628, %v361_v61  }
  0x51   : > { %986 = vperm.xlu0 %3627, %v360_v62  }
  0x54   : > { %489 = vperm.xlu1 %3628, %v391_v63   ;;  %v6039_v63 = vmov 0 }
  0x55   : > { %484 = vperm.xlu0 %3627, %v390_v0  }
  0x58   : > { %1001 = vperm.xlu1 %3628, %v363_v1  }
  0x59   : > { %996 = vperm.xlu0 %3627, %v362_v2   ;;  %v5781_v2 = vmov 1.0|1.0  }
  0x5c   : > { %499 = vperm.xlu1 %3628, %v393_v3  }
  0x5d   : > { %494 = vperm.xlu0 %3627, %v392_v4  }
  0x60   : > { %1011 = vperm.xlu1 %3628, %v365_v5  }
  0x61   : > { %1006 = vperm.xlu0 %3627, %v364_v6  }
  0x64   : > { %509 = vperm.xlu1 %3628, %v395_v7  }
  0x65   : > { %504 = vperm.xlu0 %3627, %v394_v8  }
  0x68   : > { %1021 = vperm.xlu1 %3628, %v367_v11  }
  0x69   : > { %1016 = vperm.xlu0 %3627, %v366_v12  }
  0x6c   : > { %519 = vperm.xlu1 %3628, %v397_v13  }
  0x6d   : > { %514 = vperm.xlu0 %3627, %v396_v14  }
  0x70   : > { %1031 = vperm.xlu1 %3628, %v369_v16  }
  0x71   : > { %1026 = vperm.xlu0 %3627, %v368_v17  }
  0x74   : > { %529 = vperm.xlu1 %3628, %v399_v18  }
  0x75   : > { %524 = vperm.xlu0 %3627, %v398_v19  }
  0x78   : > { %1041 = vperm.xlu1 %3628, %v371_v20  }
  0x79   : > { %1036 = vperm.xlu0 %3627, %v370_v21  }
  0x7c   : > { %539 = vperm.xlu1 %3628, %v401_v23  }
  0x7d   : > { %534 = vperm.xlu0 %3627, %v400_v25  }
  0x80   : > { %1051 = vperm.xlu1 %3628, %v373_v26  }
  0x81   : > { %1046 = vperm.xlu0 %3627, %v372_v27  }
  0x84   : > { %549 = vperm.xlu1 %3628, %v403_v28  }
  0x85   : > { %544 = vperm.xlu0 %3627, %v402_v29  }
  0x88   : > { %1061 = vperm.xlu1 %3628, %v375_v30  }
  0x89   : > { %1056 = vperm.xlu0 %3627, %v374_v31  }
  0x8c   : > { %559 = vperm.xlu1 %3628, %v405_v33  }
  0x8d   : > { %554 = vperm.xlu0 %3627, %v404_v35  }
  0x90   : > { %569 = vperm.xlu1 %3628, %v407_v36  }
  0x91   : > { %564 = vperm.xlu0 %3627, %v406_v37  }
  0x93   : > { %v917_v42 = vpop.permute.xlu1 %916  ;;  %v907_v43 = vpop.permute.xlu0 %906 }
  0x94   : > { %v1070_v44 = vmul.f32 %v3974_v39, %v917_v42  ;;  %v1068_v45 = vmul.f32 %v3974_v39, %v907_v43 }
  0x96   : > { %v1106_v47 = vadd.f32 %v3979_v41, %v1070_v44  ;;  %v1104_v48 = vadd.f32 %v3979_v41, %v1068_v45 }
  0x97   : > { %v922_v49 = vpop.permute.xlu1 %921 }
  0x98   : > { %v1071_v50 = vmul.f32 %v3974_v39, %v922_v49  ;;  %v912_v51 = vpop.permute.xlu0 %911  ;;  %v1138_v54 = vmax.f32 %v1106_v47, 0.0  ;;  %v1136_v58 = vmax.f32 %v1104_v48, 0.0 }
  0x99   : > { %v1069_v53 = vmul.f32 %v3974_v39, %v912_v51 }
  0x9a   : > { %v1107_v55 = vadd.f32 %v3979_v41, %v1071_v50 }
  0x9b   : > { %v1105_v56 = vadd.f32 %v3979_v41, %v1069_v53  ;;  %v420_v57 = vpop.permute.xlu1 %419 }
  0x9c   : > { %v1139_v59 = vmax.f32 %v1107_v55, 0.0  ;;  %vm573_vm2 = vcmp.eq.f32.partialorder %v420_v57, %v3990_v52  ;;  %v415_v60 = vpop.permute.xlu0 %414 }
  0x9d   : > { %vm572_vm3 = vcmp.eq.f32.partialorder %v415_v60, %v3990_v52  ;;  %v1137_v61 = vmax.f32 %v1105_v56, 0.0 }
  0x9e   : > { %v1169_v62 = vpack.c.bf16 %v1139_v59, %v1138_v54  ;;  %vm3997_vm4 = vmpackc.low %vm573_vm2, %vm572_vm3 }
  0x9f   : > { %v932_v0 = vpop.permute.xlu1 %931  ;;  %v1168_v1 = vpack.c.bf16 %v1137_v61, %v1136_v58  ;;  %3511 = vmatprep.mubr.msk.bf16.mxu1 %vm3997_vm4, %v5781_v2 }
  0xa0   : > { %v1073_v3 = vmul.f32 %v3974_v39, %v932_v0  ;;  %v927_v4 = vpop.permute.xlu0 %926 }
  0xa1   : > { %v1072_v5 = vmul.f32 %v3974_v39, %v927_v4  ;;  %3445 = vmatprep.mubr.msk.bf16.mxu0 %vm5815_vm5, %v1168_v1 }
  0xa2   : > { %v1109_v6 = vadd.f32 %v3979_v41, %v1073_v3  ;;  %3446 = vmatmul.mubr.msk.bf16.vlgmr.msra.gmra.mrb[0].mxu0 %vm5815_vm5, %v1169_v62 }
  0xa3   : > { %v1108_v7 = vadd.f32 %v3979_v41, %v1072_v5  ;;  %v4010_v8 = vpop.permute.xlu1 %429 }
  0xa4   : > { %v1141_v11 = vmax.f32 %v1109_v6, 0.0  ;;  %v4012_v12 = vpop.permute.xlu0 %424 }
  0xa5   : > { %v1140_v13 = vmax.f32 %v1108_v7, 0.0 }
  0xa7   : > { %v1170_v14 = vpack.c.bf16 %v1141_v11, %v1140_v13  ;;  %v942_v16 = vpop.permute.xlu1 %941 }
  0xa8   : > { %v1075_v17 = vmul.f32 %v3974_v39, %v942_v16  ;;  %v937_v18 = vpop.permute.xlu0 %936 }
  0xa9   : > { %v1074_v19 = vmul.f32 %v3974_v39, %v937_v18  ;;  %3449 = vmatprep.mubr.msk.bf16.mxu0 %vm5815_vm5, %v1170_v14 }
  0xaa   : > { %v1111_v20 = vadd.f32 %v3979_v41, %v1075_v17 }
  0xab   : > { %v1110_v21 = vadd.f32 %v3979_v41, %v1074_v19  ;;  %v4019_v23 = vpop.permute.xlu1 %439 }
  0xac   : > { %v1143_v25 = vmax.f32 %v1111_v20, 0.0  ;;  %v4021_v26 = vpop.permute.xlu0 %434 }
  0xad   : > { %v1142_v27 = vmax.f32 %v1110_v21, 0.0 }
  0xaf   : > { %v1171_v28 = vpack.c.bf16 %v1143_v25, %v1142_v27  ;;  %v952_v29 = vpop.permute.xlu1 %951 }
  0xb0   : > { %v1077_v30 = vmul.f32 %v3974_v39, %v952_v29  ;;  %v947_v31 = vpop.permute.xlu0 %946 }
  0xb1   : > { %v1076_v33 = vmul.f32 %v3974_v39, %v947_v31  ;;  %3450 = vmatmul.mubr.msk.bf16.gmra.mrb[4].mxu0 %vm5815_vm5, %v1171_v28 }
  0xb2   : > { %v1113_v35 = vadd.f32 %v3979_v41, %v1077_v30 }
  0xb3   : > { %v1112_v36 = vadd.f32 %v3979_v41, %v1076_v33  ;;  %v4028_v37 = vpop.permute.xlu1 %449 }
  0xb4   : > { %v1145_v42 = vmax.f32 %v1113_v35, 0.0  ;;  %v4030_v43 = vpop.permute.xlu0 %444 }
  0xb5   : > { %v1144_v44 = vmax.f32 %v1112_v36, 0.0 }
  0xb7   : > { %v1172_v45 = vpack.c.bf16 %v1145_v42, %v1144_v44  ;;  %v962_v47 = vpop.permute.xlu1 %961 }
  0xb8   : > { %v1079_v48 = vmul.f32 %v3974_v39, %v962_v47  ;;  %v957_v49 = vpop.permute.xlu0 %956 }
  0xb9   : > { %v1078_v50 = vmul.f32 %v3974_v39, %v957_v49  ;;  %3453 = vmatprep.mubr.msk.bf16.mxu0 %vm5815_vm5, %v1172_v45 }
  0xba   : > { %v1115_v51 = vadd.f32 %v3979_v41, %v1079_v48 }
  0xbb   : > { %v1114_v53 = vadd.f32 %v3979_v41, %v1078_v50  ;;  %v4037_v54 = vpop.permute.xlu1 %459 }
  0xbc   : > { %v1147_v55 = vmax.f32 %v1115_v51, 0.0  ;;  %v4039_v56 = vpop.permute.xlu0 %454 }
  0xbd   : > { %v1146_v57 = vmax.f32 %v1114_v53, 0.0 }
  0xbf   : > { %v1173_v58 = vpack.c.bf16 %v1147_v55, %v1146_v57  ;;  %v972_v59 = vpop.permute.xlu1 %971 }
  0xc0   : > { %v1081_v60 = vmul.f32 %v3974_v39, %v972_v59  ;;  %v967_v61 = vpop.permute.xlu0 %966 }
  0xc1   : > { %v1080_v62 = vmul.f32 %v3974_v39, %v967_v61  ;;  %3454 = vmatmul.mubr.msk.bf16.gmra.mrb[8].mxu0 %vm5815_vm5, %v1173_v58 }
  0xc2   : > { %v1117_v0 = vadd.f32 %v3979_v41, %v1081_v60 }
  0xc3   : > { %v1116_v1 = vadd.f32 %v3979_v41, %v1080_v62  ;;  %v4046_v3 = vpop.permute.xlu1 %469 }
  0xc4   : > { %v1149_v4 = vmax.f32 %v1117_v0, 0.0  ;;  %v4048_v5 = vpop.permute.xlu0 %464 }
  0xc5   : > { %v1148_v6 = vmax.f32 %v1116_v1, 0.0 }
  0xc7   : > { %v1174_v7 = vpack.c.bf16 %v1149_v4, %v1148_v6  ;;  %v982_v11 = vpop.permute.xlu1 %981 }
  0xc8   : > { %v1083_v13 = vmul.f32 %v3974_v39, %v982_v11  ;;  %v977_v14 = vpop.permute.xlu0 %976 }
  0xc9   : > { %v1082_v16 = vmul.f32 %v3974_v39, %v977_v14  ;;  %3457 = vmatprep.mubr.msk.bf16.mxu0 %vm5815_vm5, %v1174_v7 }
  0xca   : > { %v1119_v17 = vadd.f32 %v3979_v41, %v1083_v13 }
  0xcb   : > { %v1118_v18 = vadd.f32 %v3979_v41, %v1082_v16  ;;  %v4055_v19 = vpop.permute.xlu1 %479 }
  0xcc   : > { %v1151_v20 = vmax.f32 %v1119_v17, 0.0  ;;  %v4057_v21 = vpop.permute.xlu0 %474 }
  0xcd   : > { %v1150_v25 = vmax.f32 %v1118_v18, 0.0 }
  0xcf   : > { %v1175_v27 = vpack.c.bf16 %v1151_v20, %v1150_v25  ;;  %v992_v28 = vpop.permute.xlu1 %991 }
  0xd0   : > { %v1085_v29 = vmul.f32 %v3974_v39, %v992_v28  ;;  %v987_v30 = vpop.permute.xlu0 %986 }
  0xd1   : > { %v1084_v31 = vmul.f32 %v3974_v39, %v987_v30  ;;  %3458 = vmatmul.mubr.msk.bf16.gmra.mrb[12].mxu0 %vm5815_vm5, %v1175_v27 }
  0xd2   : > { %v1121_v33 = vadd.f32 %v3979_v41, %v1085_v29 }
  0xd3   : > { %v1120_v35 = vadd.f32 %v3979_v41, %v1084_v31  ;;  %v4064_v36 = vpop.permute.xlu1 %489 }
  0xd4   : > { %v1153_v42 = vmax.f32 %v1121_v33, 0.0  ;;  %v4066_v44 = vpop.permute.xlu0 %484 }
  0xd5   : > { %v1152_v45 = vmax.f32 %v1120_v35, 0.0 }
  0xd7   : > { %v1176_v47 = vpack.c.bf16 %v1153_v42, %v1152_v45  ;;  %v1002_v48 = vpop.permute.xlu1 %1001 }
  0xd8   : > { %v1087_v49 = vmul.f32 %v3974_v39, %v1002_v48  ;;  %v997_v50 = vpop.permute.xlu0 %996 }
  0xd9   : > { %v1086_v51 = vmul.f32 %v3974_v39, %v997_v50  ;;  %3461 = vmatprep.mubr.msk.bf16.mxu0 %vm5815_vm5, %v1176_v47  ;;  %v4097_v50 = vshrl.u32 %v409_v38, 7 }
  0xda   : > { %v1123_v53 = vadd.f32 %v3979_v41, %v1087_v49 }
  0xdb   : > { %v1122_v55 = vadd.f32 %v3979_v41, %v1086_v51  ;;  %v4073_v57 = vpop.permute.xlu1 %499  ;;  %5887 = vst [vmem:[#allocation3_spill] sm:$0xff] %v4097_v50 }
  0xdc   : > { %v1155_v58 = vmax.f32 %v1123_v53, 0.0  ;;  %v4075_v59 = vpop.permute.xlu0 %494 }
  0xdd   : > { %v1154_v60 = vmax.f32 %v1122_v55, 0.0 }
  0xdf   : > { %v1177_v61 = vpack.c.bf16 %v1155_v58, %v1154_v60  ;;  %v1012_v62 = vpop.permute.xlu1 %1011 }
  0xe0   : > { %v1089_v0 = vmul.f32 %v3974_v39, %v1012_v62  ;;  %v1007_v1 = vpop.permute.xlu0 %1006  ;;  %v4104_v62 = vadd.s32 8, %v4097_v50 }
  0xe1   : > { %v1088_v4 = vmul.f32 %v3974_v39, %v1007_v1  ;;  %3462 = vmatmul.mubr.msk.bf16.gmra.mrb[16].mxu0 %vm5815_vm5, %v1177_v61  ;;  %v408_v61 = vld [vmem:[%s303_s7] sm:$0x3]  ;;  %v692_v1 = vsub.s32 1, %v4097_v50 }
  0xe2   : > { %v1125_v6 = vadd.f32 %v3979_v41, %v1089_v0  ;;  %5888 = vst [vmem:[#allocation4_spill] sm:$0xff] %v4104_v62  ;;  %v688_v0 = vsub.s32 0, %v4097_v50 }
  0xe3   : > { %v1124_v7 = vadd.f32 %v3979_v41, %v1088_v4  ;;  %v4082_v11 = vpop.permute.xlu1 %509  ;;  %v669_v4 = vcvt.s32.f32 %v4097_v50 }
  0xe4   : > { %v1157_v13 = vmax.f32 %v1125_v6, 0.0  ;;  %v4084_v14 = vpop.permute.xlu0 %504  ;;  %v4112_v6 = vadd.s32 16, %v4097_v50 }
  0xe5   : > { %v1156_v16 = vmax.f32 %v1124_v7, 0.0  ;;  %v4115_v7 = vadd.s32 24, %v4097_v50 }
  0xe6   : > { %5889 = vst [vmem:[#allocation5_spill] sm:$0xff] %v4112_v6 }
  0xe7   : > { %v1178_v17 = vpack.c.bf16 %v1157_v13, %v1156_v16  ;;  %v1022_v18 = vpop.permute.xlu1 %1021  ;;  %5890 = vst [vmem:[#allocation6_spill] sm:$0xff] %v4115_v7  ;;  %v670_v16 = vcvt.s32.f32 %v4104_v62  ;;  %v5916_v62 = vmov 0 }
  0xe8   : > { %v1091_v20 = vmul.f32 %v3974_v39, %v1022_v18  ;;  %v1017_v25 = vpop.permute.xlu0 %1016  ;;  %v4121_v18 = vrot.slane %v408_v61, %v692_v1 }
  0xe9   : > { %v1090_v27 = vmul.f32 %v3974_v39, %v1017_v25  ;;  %3465 = vmatprep.mubr.msk.bf16.mxu0 %vm5815_vm5, %v1178_v17  ;;  %v4119_v17 = vrot.slane %v408_v61, %v688_v0 }
  0xea   : > { %v1127_v28 = vadd.f32 %v3979_v41, %v1091_v20  ;;  %vm4135_vm7 = vcmp.eq.f32.partialorder %v4121_v18, %v670_v16  ;;  %vm4161_vm9 = vcmp.eq.f32.partialorder %v4121_v18, %v669_v4 }
  0xeb   : > { %v1126_v29 = vadd.f32 %v3979_v41, %v1090_v27  ;;  %v3481_v30 = vpop.f32.mrb[0].mxu1  ;;  %v4091_v31 = vpop.permute.xlu1 %519  ;;  %vm4130_vm6 = vcmp.eq.f32.partialorder %v4119_v17, %v670_v16  ;;  %vm4156_vm8 = vcmp.eq.f32.partialorder %v4119_v17, %v669_v4 }
  0xec   : > { %v1159_v33 = vmax.f32 %v1127_v28, 0.0  ;;  %v4093_v35 = vpop.permute.xlu0 %514  ;;  %v1493_v42 = vpop.f32.mrb[1].mxu1  ;;  %v671_v28 = vcvt.s32.f32 %v4112_v6 }
  0xed   : > { %v1158_v45 = vmax.f32 %v1126_v29, 0.0  ;;  %v3482_v47 = vpop.f32.mrb[2].mxu1 }
  0xee   : > { %v1557_v48 = vpack.c.bf16 %v3482_v47, %v3481_v30  ;;  %v1496_v49 = vpop.f32.mrb[3].mxu1  ;;  %v672_v47 = vcvt.s32.f32 %v4115_v7  ;;  %vm4183_vm11 = vcmp.eq.f32.partialorder %v4119_v17, %v671_v28  ;;  %vm4188_vm12 = vcmp.eq.f32.partialorder %v4121_v18, %v671_v28 }
  0xef   : > { %v1179_v51 = vpack.c.bf16 %v1159_v33, %v1158_v45  ;;  %v1556_v53 = vpack.c.bf16 %v1496_v49, %v1493_v42  ;;  %v1032_v55 = vpop.permute.xlu1 %1031  ;;  %v5891_v42 = vmov 0  ;;  %v5894_v45 = vmov 0 }
  0xf0   : > { %v1093_v58 = vmul.f32 %v3974_v39, %v1032_v55  ;;  %v1027_v60 = vpop.permute.xlu0 %1026  ;;  %v5892_v42 = vsel %vm4130_vm6, 4294967295, %v5891_v42  ;;  %v5895_v45 = vsel %vm4135_vm7, 4294967295, %v5894_v45  ;;  %vm4205_vm13 = vcmp.eq.f32.partialorder %v4119_v17, %v672_v47 }
  0xf1   : > { %v1092_v38 = vmul.f32 %v3974_v39, %v1027_v60  ;;  %3466 = vmatmul.mubr.msk.bf16.gmra.mrb[20].mxu0 %vm5815_vm5, %v1179_v51  ;;  %3495 = vmatprep.subr.bf16.mxu1 %v1556_v53  ;;  %5893 = vst [vmem:[#allocation7_spill] sm:$0xff] %v5892_v42  ;;  %5896 = vst [vmem:[#allocation8_spill] sm:$0xff] %v5895_v45  ;;  %v4151_v60 = vadd.s32 32, %v4097_v50  ;;  %v5913_v28 = vmov 0  ;;  %vm4213_vm14 = vcmp.eq.f32.partialorder %v4121_v18, %v672_v47 }
  0xf2   : > { %v1129_v13 = vadd.f32 %v3979_v41, %v1093_v58  ;;  %3496 = vmatpush3.bf16.msra.mxu1 %v1556_v53  ;;  %v5794_v53 = vmov 0.0   ;;  %v5914_v28 = vsel %vm4205_vm13, 4294967295, %v5913_v28  ;;  %v5917_v62 = vsel %vm4213_vm14, 4294967295, %v5916_v62 }
  0xf3   : > { %v1128_v20 = vadd.f32 %v3979_v41, %v1092_v38  ;;  %v3485_v25 = vpop.f32.mrb[4].mxu1  ;;  %3497 = vmatprep.subr.bf16.mxu1 %v1557_v48  ;;  %v4124_v27 = vpop.permute.xlu1 %529  ;;  %v4143_v55 = vsel %vm4130_vm6, 1.0, %v5794_v53  ;;  %v4148_v58 = vsel %vm4135_vm7, 1.0, %v5794_v53  ;;  %5897 = vst [vmem:[#allocation9_spill] sm:$0xff] %v4151_v60  ;;  %v5898_v38 = vmov 0  ;;  %5915 = vst [vmem:[#allocation17_spill] sm:$0xff] %v5914_v28 }
  0xf4   : > { %v1161_v29 = vmax.f32 %v1129_v13, 0.0  ;;  %v4127_v30 = vpop.permute.xlu0 %524  ;;  %v1509_v33 = vpop.f32.mrb[5].mxu1  ;;  %v763_v1 = vadd.f32 %v4148_v58, %v4143_v55  ;;  %v5899_v38 = vsel %vm4156_vm8, 4294967295, %v5898_v38  ;;  %v5901_v13 = vmov 0  ;;  %5918 = vst [vmem:[#allocation18_spill] sm:$0xff] %v5917_v62 }
  0xf5   : > { %v1160_v49 = vmax.f32 %v1128_v20, 0.0  ;;  %v3486_v51 = vpop.f32.mrb[6].mxu1  ;;  %5900 = vst [vmem:[#allocation10_spill] sm:$0xff] %v5899_v38  ;;  %v5902_v13 = vsel %vm4161_vm9, 4294967295, %v5901_v13  ;;  %v4220_v7 = vsel %vm4205_vm13, 1.0, %v5794_v53  ;;  %v673_v47 = vcvt.s32.f32 %v4151_v60 }
  0xf6   : > { %v1559_v61 = vpack.c.bf16 %v3486_v51, %v3485_v25  ;;  %v1512_v0 = vpop.f32.mrb[7].mxu1  ;;  %3498 = vmatpush3.bf16.msra.mxu1 %v1557_v48  ;;  %5903 = vst [vmem:[#allocation11_spill] sm:$0xff] %v5902_v13  ;;  %v4168_v48 = vsel %vm4156_vm8, 1.0, %v5794_v53  ;;  %v4173_v25 = vsel %vm4161_vm9, 1.0, %v5794_v53  ;;  %764 = vadd.xlane.f32.xlu1 %v763_v1  ;;  %v5908_v51 = vmov 0  ;;  %5919 = vst [vmem:[#allocation19_spill] sm:$0xff] %v4220_v7 }
  0xf7   : > { %v1180_v16 = vpack.c.bf16 %v1161_v29, %v1160_v49  ;;  %v1558_v20 = vpack.c.bf16 %v1512_v0, %v1509_v33  ;;  %v1042_v2 = vpop.permute.xlu1 %1041  ;;  %5904 = vst [vmem:[#allocation12_spill] sm:$0xff] %v4173_v25  ;;  %v760_v33 = vadd.f32 %v4173_v25, %v4168_v48  ;;  %v5905_v49 = vmov 0 }
  0xf8   : > { %v1095_v4 = vmul.f32 %v3974_v39, %v1042_v2  ;;  %v1037_v29 = vpop.permute.xlu0 %1036  ;;  %v5906_v49 = vsel %vm4183_vm11, 4294967295, %v5905_v49  ;;  %v5909_v51 = vsel %vm4188_vm12, 4294967295, %v5908_v51  ;;  %v4197_v2 = vsel %vm4183_vm11, 1.0, %v5794_v53 }
  0xf9   : > { %5907 = vst [vmem:[#allocation13_spill] sm:$0xff] %v5906_v49  ;;  %5910 = vst [vmem:[#allocation14_spill] sm:$0xff] %v5909_v51  ;;  %v1094_v0 = vmul.f32 %v3974_v39, %v1037_v29  ;;  %3469 = vmatprep.mubr.msk.bf16.mxu0 %vm5815_vm5, %v1180_v16  ;;  %3499 = vmatprep.subr.bf16.mxu1 %v1558_v20  ;;  %v4202_v1 = vsel %vm4188_vm12, 1.0, %v5794_v53  ;;  %vm4239_vm15 = vcmp.eq.f32.partialorder %v4119_v17, %v673_v47  ;;  %v5922_v42 = vmov 0 }
  0xfa   : > { %5911 = vst [vmem:[#allocation15_spill] sm:$0xff] %v4197_v2  ;;  %5912 = vst [vmem:[#allocation16_spill] sm:$0xff] %v4202_v1  ;;  %v1131_v29 = vadd.f32 %v3979_v41, %v1095_v4  ;;  %3500 = vmatpush3.bf16.msra.mxu1 %v1558_v20  ;;  %761 = vadd.xlane.f32.xlu0 %v760_v33  ;;  %v766_v16 = vadd.f32 %v4202_v1, %v4197_v2  ;;  %v4228_v20 = vsel %vm4213_vm14, 1.0, %v5794_v53  ;;  %v5925_v53 = vmov 0 }
  0xfb   : > { %v1130_v6 = vadd.f32 %v3979_v41, %v1094_v0  ;;  %v3489_v46 = vpop.f32.mrb[8].mxu1  ;;  %3501 = vmatprep.subr.bf16.mxu1 %v1559_v61  ;;  %v4223_v4 = vpop.permute.xlu1 %539  ;;  %5920 = vst [vmem:[#allocation20_spill] sm:$0xff] %v4228_v20  ;;  %v4232_v33 = vadd.s32 40, %v4097_v50  ;;  %v769_v38 = vadd.f32 %v4228_v20, %v4220_v7  ;;  %v5923_v42 = vsel %vm4239_vm15, 4294967295, %v5922_v42 }
  0xfc   : > { %v1163_v2 = vmax.f32 %v1131_v29, 0.0  ;;  %v4234_v1 = vpop.permute.xlu0 %534  ;;  %v1525_v28 = vpop.f32.mrb[9].mxu1  ;;  %5924 = vst [vmem:[#allocation22_spill] sm:$0xff] %v5923_v42  ;;  %vm4244_vm2 = vcmp.eq.f32.partialorder %v4121_v18, %v673_v47  ;;  %v5928_v62 = vmov 0.0   ;;  %v5934_v42 = vmov 0 }
  0xfd   : > { %5921 = vst [vmem:[#allocation21_spill] sm:$0xff] %v4232_v33  ;;  %v1162_v49 = vmax.f32 %v1130_v6, 0.0  ;;  %v3490_v0 = vpop.f32.mrb[10].mxu1  ;;  %v5926_v53 = vsel %vm4244_vm2, 4294967295, %v5925_v53  ;;  %v4251_v6 = vsel %vm4239_vm15, 1.0, %v5928_v62  ;;  %v4256_v7 = vsel %vm4244_vm2, 1.0, %v5928_v62 }
  0xfe   : > { %5927 = vst [vmem:[#allocation23_spill] sm:$0xff] %v5926_v53  ;;  %v1561_v60 = vpack.c.bf16 %v3490_v0, %v3489_v46  ;;  %v1528_v29 = vpop.f32.mrb[11].mxu1  ;;  %3502 = vmatpush3.bf16.msra.mxu1 %v1559_v61  ;;  %767 = vadd.xlane.f32.xlu0 %v766_v16  ;;  %5929 = vst [vmem:[#allocation24_spill] sm:$0xff] %v4251_v6  ;;  %v674_v20 = vcvt.s32.f32 %v4232_v33  ;;  %v772_v46 = vadd.f32 %v4256_v7, %v4251_v6  ;;  %v5931_v0 = vmov 0 }
  0xff   : > { %5930 = vst [vmem:[#allocation25_spill] sm:$0xff] %v4256_v7  ;;  %v1181_v47 = vpack.c.bf16 %v1163_v2, %v1162_v49  ;;  %v1560_v51 = vpack.c.bf16 %v1528_v29, %v1525_v28  ;;  %v1052_v45 = vpop.permute.xlu1 %1051  ;;  %vm576_vm15 = vcmp.eq.f32.partialorder %v4021_v26, %v3990_v52  ;;  %vm5953_vm2 = vcmask 1041408  }
 0x100   : > { %v1097_v61 = vmul.f32 %v3974_v39, %v1052_v45  ;;  %v1047_v16 = vpop.permute.xlu0 %1046  ;;  %vm4263_vm3 = vcmp.eq.f32.partialorder %v4119_v17, %v674_v20  ;;  %vm4268_vm10 = vcmp.eq.f32.partialorder %v4121_v18, %v674_v20  ;;  %773 = vadd.xlane.f32.xlu1 %v772_v46  ;;  %vm5954_vm13 = vmmov %vm5953_vm2  ;;  %vm5959_vm6 = vcmask 523264  }
 0x101   : > { %v5932_v0 = vsel %vm4263_vm3, 4294967295, %v5931_v0  ;;  %v5935_v42 = vsel %vm4268_vm10, 4294967295, %v5934_v42  ;;  %v1096_v49 = vmul.f32 %v3974_v39, %v1047_v16  ;;  %3470 = vmatmul.mubr.msk.bf16.gmra.mrb[24].mxu0 %vm5815_vm5, %v1181_v47  ;;  %3503 = vmatprep.subr.bf16.mxu1 %v1560_v51  ;;  %v4277_v45 = vsel %vm4263_vm3, 1.0, %v5928_v62 }
 0x102   : > { %5933 = vst [vmem:[#allocation26_spill] sm:$0xff] %v5932_v0  ;;  %5936 = vst [vmem:[#allocation27_spill] sm:$0xff] %v5935_v42  ;;  %v4282_v2 = vsel %vm4268_vm10, 1.0, %v5928_v62  ;;  %v1133_v28 = vadd.f32 %v3979_v41, %v1097_v61  ;;  %3504 = vmatpush3.bf16.msra.mxu1 %v1560_v51  ;;  %770 = vadd.xlane.f32.xlu0 %v769_v38  ;;  %v4293_v61 = vadd.s32 48, %v4097_v50  ;;  %v4296_v38 = vadd.s32 56, %v4097_v50 }
 0x103   : > { %5937 = vst [vmem:[#allocation28_spill] sm:$0xff] %v4277_v45  ;;  %5938 = vst [vmem:[#allocation29_spill] sm:$0xff] %v4282_v2  ;;  %v775_v20 = vadd.f32 %v4282_v2, %v4277_v45  ;;  %v1132_v29 = vadd.f32 %v3979_v41, %v1096_v49  ;;  %v3493_v47 = vpop.f32.mrb[12].mxu1  ;;  %3505 = vmatprep.subr.bf16.mxu1 %v1561_v60  ;;  %v4288_v16 = vpop.permute.xlu1 %549  ;;  %vm588_vm10 = vcmp.eq.f32.partialorder %v4075_v59, %v3990_v52  ;;  %v5960_v26 = vmov 1.0|1.0  }
 0x104   : > { %v1165_v33 = vmax.f32 %v1133_v28, 0.0  ;;  %v4290_v0 = vpop.permute.xlu0 %544  ;;  %v1541_v42 = vpop.f32.mrb[13].mxu1  ;;  %5939 = vst [vmem:[#allocation30_spill] sm:$0xff] %v4293_v61  ;;  %5940 = vst [vmem:[#allocation31_spill] sm:$0xff] %v4296_v38  ;;  %v675_v46 = vcvt.s32.f32 %v4293_v61  ;;  %v676_v28 = vcvt.s32.f32 %v4296_v38 }
 0x105   : > { %v1164_v53 = vmax.f32 %v1132_v29, 0.0  ;;  %v3494_v6 = vpop.f32.mrb[14].mxu1 }
 0x106   : > { %v1563_v51 = vpack.c.bf16 %v3494_v6, %v3493_v47  ;;  %v1544_v45 = vpop.f32.mrb[15].mxu1  ;;  %3506 = vmatpush3.bf16.msra.mxu1 %v1561_v60  ;;  %776 = vadd.xlane.f32.xlu0 %v775_v20  ;;  %vm4304_vm1 = vcmp.eq.f32.partialorder %v4119_v17, %v675_v46  ;;  %v5941_v6 = vmov 0  ;;  %vm4309_vm0 = vcmp.eq.f32.partialorder %v4121_v18, %v675_v46  ;;  %v326_v47 = vld [vmem:[%s5775_s1 + $0x28] sm:$0x3] }
 0x107   : > { %v1182_v49 = vpack.c.bf16 %v1165_v33, %v1164_v53  ;;  %v1562_v2 = vpack.c.bf16 %v1544_v45, %v1541_v42  ;;  %v1062_v7 = vpop.permute.xlu1 %1061  ;;  %v5942_v6 = vsel %vm4304_vm1, 4294967295, %v5941_v6  ;;  %v5944_v42 = vmov 0 }
 0x108   : > { %v1099_v29 = vmul.f32 %v3974_v39, %v1062_v7  ;;  %v1057_v13 = vpop.permute.xlu0 %1056  ;;  %5943 = vst [vmem:[#allocation32_spill] sm:$0xff] %v5942_v6  ;;  %v5945_v42 = vsel %vm4309_vm0, 4294967295, %v5944_v42  ;;  %v4322_v7 = vsel %vm4309_vm0, 1.0, %v5928_v62  ;;  %v5947_v60 = vmov 0 }
 0x109   : > { %v1098_v25 = vmul.f32 %v3974_v39, %v1057_v13  ;;  %3473 = vmatprep.mubr.msk.bf16.mxu0 %vm5815_vm5, %v1182_v49  ;;  %3507 = vmatprep.subr.bf16.mxu1 %v1562_v2  ;;  %5946 = vst [vmem:[#allocation33_spill] sm:$0xff] %v5945_v42  ;;  %v4317_v39 = vsel %vm4304_vm1, 1.0, %v5928_v62  ;;  %vm4325_vm5 = vcmp.eq.f32.partialorder %v4119_v17, %v676_v28  ;;  %v5950_v45 = vmov 0 }
 0x10a   : > { %v1135_v53 = vadd.f32 %v3979_v41, %v1099_v29  ;;  %3508 = vmatpush3.bf16.msra.mxu1 %v1562_v2  ;;  %v5948_v60 = vsel %vm4325_vm5, 4294967295, %v5947_v60  ;;  %v778_v33 = vadd.f32 %v4322_v7, %v4317_v39  ;;  %vm4333_vm3 = vcmp.eq.f32.partialorder %v4121_v18, %v676_v28 }
 0x10b   : > { %5949 = vst [vmem:[#allocation34_spill] sm:$0xff] %v5948_v60  ;;  %v1134_v13 = vadd.f32 %v3979_v41, %v1098_v25  ;;  %3509 = vmatprep.subr.bf16.mxu1 %v1563_v51  ;;  %v5951_v45 = vsel %vm4333_vm3, 4294967295, %v5950_v45  ;;  %v4340_v2 = vsel %vm4325_vm5, 1.0, %v5928_v62  ;;  %v4348_v41 = vsel %vm4333_vm3, 1.0, %v5928_v62 }
 0x10c   : > { %5952 = vst [vmem:[#allocation35_spill] sm:$0xff] %v5951_v45  ;;  %v1167_v20 = vmax.f32 %v1135_v53, 0.0  ;;  %vm575_vm1 = vcmp.eq.f32.partialorder %v4010_v8, %v3990_v52  ;;  %vm574_vm0 = vcmp.eq.f32.partialorder %v4012_v12, %v3990_v52  ;;  %779 = vadd.xlane.f32.xlu1 %v778_v33  ;;  %v781_v49 = vadd.f32 %v4348_v41, %v4340_v2 }
 0x10d   : > { %v1166_v25 = vmax.f32 %v1134_v13, 0.0  ;;  %vm577_vm5 = vcmp.eq.f32.partialorder %v4019_v23, %v3990_v52  ;;  %vm589_vm3 = vcmp.eq.f32.partialorder %v4073_v57, %v3990_v52  ;;  %v2079_v12 = vsel %vm5954_vm13, %v326_v47, 0  ;;  %vm4366_vm11 = vmpackc.low %vm575_vm1, %vm574_vm0 }
 0x10e   : > { %3510 = vmatpush3.bf16.msra.mxu1 %v1563_v51  ;;  %782 = vadd.xlane.f32.xlu0 %v781_v49  ;;  %vm4370_vm8 = vmpackc.low %vm577_vm5, %vm576_vm15  ;;  %vm579_vm0 = vcmp.eq.f32.partialorder %v4028_v37, %v3990_v52  ;;  %vm578_vm1 = vcmp.eq.f32.partialorder %v4030_v43, %v3990_v52  ;;  %vm581_vm5 = vcmp.eq.f32.partialorder %v4037_v54, %v3990_v52  ;;  %v5967_v37 = vmov 0  ;;  %v555_v49 = vpop.permute.xlu0 %554 }
 0x10f   : > { %v1183_v8 = vpack.c.bf16 %v1167_v20, %v1166_v25  ;;  %3612 = vmatprep.subr.msk.bf16.mxu1 %vm5953_vm2, %v326_v47  ;;  %vm4378_vm14 = vmpackc.low %vm589_vm3, %vm588_vm10  ;;  %vm583_vm15 = vcmp.eq.f32.partialorder %v4046_v3, %v3990_v52  ;;  %vm582_vm2 = vcmp.eq.f32.partialorder %v4048_v5, %v3990_v52  ;;  %vm585_vm3 = vcmp.eq.f32.partialorder %v4055_v19, %v3990_v52 }
 0x110   : > { %vm4396_vm10 = vmpackc.low %vm579_vm0, %vm578_vm1  ;;  %vm584_vm0 = vcmp.eq.f32.partialorder %v4057_v21, %v3990_v52  ;;  %v5969_v43 = vmov 0  ;;  %v5971_v54 = vmov 0  ;;  %v4466_v5 = vadd.s32 64, %v4097_v50 }
 0x111   : > { %3474 = vmatmul.mubr.msk.bf16.gmra.mrb[28].mxu0 %vm5959_vm6, %v1183_v8  ;;  %3512 = vmatmul.mubr.msk.bf16.vlgmr.msra.gmra.mrb[16].mxu1 %vm4366_vm11, %v5960_v26  ;;  %vm580_vm6 = vcmp.eq.f32.partialorder %v4039_v56, %v3990_v52  ;;  %vm4418_vm1 = vmpackc.low %vm583_vm15, %vm582_vm2  ;;  %vm586_vm15 = vcmp.eq.f32.partialorder %v4066_v44, %v3990_v52  ;;  %v4469_v19 = vadd.s32 72, %v4097_v50  ;;  %v5979_v44 = vmov 0 }
 0x112   : > { %3515 = vmatprep.mubr.msk.bf16.mxu1 %vm4370_vm8, %v5960_v26  ;;  %3544 = vmatpush3.bf16.msra.mxu1 %v2079_v12  ;;  %vm4400_vm13 = vmpackc.low %vm581_vm5, %vm580_vm6  ;;  %v5968_v37 = vsel %vm4418_vm1, 4294967295, %v5967_v37  ;;  %vm587_vm6 = vcmp.eq.f32.partialorder %v4064_v36, %v3990_v52  ;;  %5977 = vst [vmem:[#allocation36_spill] sm:$0xff] %v4466_v5  ;;  %v677_v21 = vcvt.s32.f32 %v4466_v5  ;;  %v4533_v13 = vadd.s32 80, %v4097_v50 }
 0x113   : > { %3348 = vmatprep.subr.msk.bf16.mxu1 %vm4378_vm14, %v5960_v26  ;;  %vm4422_vm5 = vmpackc.low %vm585_vm3, %vm584_vm0  ;;  %vm591_vm3 = vcmp.eq.f32.partialorder %v4082_v11, %v3990_v52  ;;  %vm590_vm0 = vcmp.eq.f32.partialorder %v4084_v14, %v3990_v52  ;;  %5978 = vst [vmem:[#allocation37_spill] sm:$0xff] %v4469_v19  ;;  %v678_v36 = vcvt.s32.f32 %v4469_v19  ;;  %v5982_v11 = vmov 0  ;;  %v565_v19 = vpop.permute.xlu0 %564 }
 0x114   : > { %v5970_v43 = vsel %vm4422_vm5, 4294967295, %v5969_v43  ;;  %vm4436_vm2 = vmpackc.low %vm587_vm6, %vm586_vm15  ;;  %vm593_vm6 = vcmp.eq.f32.partialorder %v4091_v31, %v3990_v52  ;;  %vm592_vm15 = vcmp.eq.f32.partialorder %v4093_v35, %v3990_v52  ;;  %vm4490_vm9 = vcmp.eq.f32.partialorder %v4121_v18, %v677_v21  ;;  %5993 = vst [vmem:[#allocation42_spill] sm:$0xff] %v4533_v13 }
 0x115   : > { %v5972_v54 = vsel %vm4436_vm2, 4294967295, %v5971_v54  ;;  %vm4454_vm12 = vmpackc.low %vm591_vm3, %vm590_vm0  ;;  %vm594_vm3 = vcmp.eq.f32.partialorder %v4127_v30, %v3990_v52  ;;  %v5983_v11 = vsel %vm4490_vm9, 4294967295, %v5982_v11  ;;  %v5985_v14 = vmov 0 }
 0x116   : > { %vm4458_vm7 = vmpackc.low %vm593_vm6, %vm592_vm15  ;;  %vm596_vm6 = vcmp.eq.f32.partialorder %v4234_v1, %v3990_v52  ;;  %vm4485_vm15 = vcmp.eq.f32.partialorder %v4119_v17, %v677_v21  ;;  %5984 = vst [vmem:[#allocation39_spill] sm:$0xff] %v5983_v11  ;;  %vm4500_vm0 = vcmp.eq.f32.partialorder %v4121_v18, %v678_v36  ;;  %v5988_v31 = vmov 0 }
 0x117   : > { %v5980_v44 = vsel %vm4485_vm15, 4294967295, %v5979_v44  ;;  %v5989_v31 = vsel %vm4500_vm0, 4294967295, %v5988_v31  ;;  %v4507_v35 = vsel %vm4485_vm15, 1.0, %v5928_v62  ;;  %v4522_v1 = vsel %vm4500_vm0, 1.0, %v5928_v62 }
 0x118   : > { %5981 = vst [vmem:[#allocation38_spill] sm:$0xff] %v5980_v44  ;;  %5990 = vst [vmem:[#allocation41_spill] sm:$0xff] %v5989_v31  ;;  %v4536_v33 = vadd.s32 88, %v4097_v50  ;;  %v679_v47 = vcvt.s32.f32 %v4533_v13  ;;  %v5998_v8 = vmov 0  ;;  %v6001_v12 = vmov 0  ;;  %v6065_v44 = vld [vmem:[#allocation8_spill] sm:$0xff] }
 0x119   : > { %3516 = vmatmul.mubr.msk.bf16.gmra.mrb[20].mxu1 %vm4396_vm10, %v5960_v26  ;;  %v6004_v57 = vmov 0  ;;  %v6007_v21 = vmov 0  ;;  %v6027_v5 = vmov 0  ;;  %v6045_v46 = vmov 0 }
 0x11a   : > { %3519 = vmatprep.mubr.msk.bf16.mxu1 %vm4400_vm13, %v5960_v26  ;;  %5994 = vst [vmem:[#allocation43_spill] sm:$0xff] %v4536_v33  ;;  %v680_v25 = vcvt.s32.f32 %v4536_v33  ;;  %v6048_v56 = vmov 0 }
 0x121   : > { %3520 = vmatmul.mubr.msk.bf16.gmra.mrb[24].mxu1 %vm4418_vm1, %v5960_v26 }
 0x122   : > { %3523 = vmatprep.mubr.msk.bf16.mxu1 %vm4422_vm5, %v5960_v26 }
 0x129   : > { %3524 = vmatmul.mubr.msk.bf16.gmra.mrb[28].mxu1 %vm4436_vm2, %v5960_v26  ;;  %vm4495_vm2 = vcmp.eq.f32.partialorder %v4119_v17, %v678_v36 }
 0x12a   : > { %3527 = vmatprep.mubr.msk.bf16.mxu1 %vm4378_vm14, %v5960_v26  ;;  %vm595_vm14 = vcmp.eq.f32.partialorder %v4124_v27, %v3990_v52  ;;  %v5986_v14 = vsel %vm4495_vm2, 4294967295, %v5985_v14  ;;  %v4512_v27 = vsel %vm4490_vm9, 1.0, %v5928_v62  ;;  %v4517_v30 = vsel %vm4495_vm2, 1.0, %v5928_v62 }
 0x12b   : > { %5987 = vst [vmem:[#allocation40_spill] sm:$0xff] %v5986_v14  ;;  %v784_v28 = vadd.f32 %v4512_v27, %v4507_v35  ;;  %v787_v29 = vadd.f32 %v4522_v1, %v4517_v30  ;;  %vm4528_vm15 = vmpackc.low %vm595_vm14, %vm594_vm3  ;;  %vm5995_vm2 = vcmp.eq.f32.partialorder %v4223_v4, %v3990_v52  ;;  %v560_v4 = vpop.permute.xlu1 %559  ;;  %vm4558_vm3 = vcmp.eq.f32.partialorder %v4119_v17, %v679_v47  ;;  %v6063_v14 = vld [vmem:[#allocation11_spill] sm:$0xff] }
 0x12c   : > { %vm4541_vm0 = vmpackc.low %vm5995_vm2, %vm596_vm6  ;;  %v5999_v8 = vsel %vm4558_vm3, 4294967295, %v5998_v8  ;;  %vm4563_vm6 = vcmp.eq.f32.partialorder %v4121_v18, %v679_v47  ;;  %vm4568_vm9 = vcmp.eq.f32.partialorder %v4119_v17, %v680_v25  ;;  %vm4573_vm2 = vcmp.eq.f32.partialorder %v4121_v18, %v680_v25 }
 0x12d   : > { %785 = vadd.xlane.f32.xlu1 %v784_v28  ;;  %788 = vadd.xlane.f32.xlu0 %v787_v29  ;;  %6000 = vst [vmem:[#allocation44_spill] sm:$0xff] %v5999_v8  ;;  %v6002_v12 = vsel %vm4563_vm6, 4294967295, %v6001_v12  ;;  %v6005_v57 = vsel %vm4568_vm9, 4294967295, %v6004_v57  ;;  %v6008_v21 = vsel %vm4573_vm2, 4294967295, %v6007_v21  ;;  %v4580_v36 = vsel %vm4558_vm3, 1.0, %v5928_v62 }
 0x12e   : > { %6003 = vst [vmem:[#allocation45_spill] sm:$0xff] %v6002_v12  ;;  %6006 = vst [vmem:[#allocation46_spill] sm:$0xff] %v6005_v57  ;;  %v4585_v28 = vsel %vm4563_vm6, 1.0, %v5928_v62  ;;  %v4590_v29 = vsel %vm4568_vm9, 1.0, %v5928_v62  ;;  %v4595_v47 = vsel %vm4573_vm2, 1.0, %v5928_v62  ;;  %vm601_vm14 = vcmp.eq.f32.partialorder %v560_v4, %v3990_v52 }
 0x12f   : > { %6009 = vst [vmem:[#allocation47_spill] sm:$0xff] %v6008_v21  ;;  %vm600_vm3 = vcmp.eq.f32.partialorder %v555_v49, %v3990_v52  ;;  %v790_v25 = vadd.f32 %v4585_v28, %v4580_v36  ;;  %v793_v33 = vadd.f32 %v4595_v47, %v4590_v29  ;;  %vm6010_vm6 = vcmp.eq.f32.partialorder %v4290_v0, %v3990_v52  ;;  %v570_v49 = vpop.permute.xlu1 %569 }
 0x130   : > { %vm6011_vm9 = vcmp.eq.f32.partialorder %v4288_v16, %v3990_v52  ;;  %vm4613_vm2 = vmpackc.low %vm601_vm14, %vm600_vm3  ;;  %v4630_v16 = vadd.s32 96, %v4097_v50  ;;  %vm6020_vm14 = vcmask 31744  }
 0x131   : > { %3528 = vmatmul.mubr.msk.bf16.gmra.mrb[32].mxu1 %vm4454_vm12, %v5960_v26  ;;  %vm4609_vm5 = vmpackc.low %vm6011_vm9, %vm6010_vm6  ;;  %791 = vadd.xlane.f32.xlu1 %v790_v25  ;;  %vm603_vm9 = vcmp.eq.f32.partialorder %v570_v49, %v3990_v52  ;;  %vm602_vm6 = vcmp.eq.f32.partialorder %v565_v19, %v3990_v52  ;;  %v6021_v19 = vmov 0  ;;  %v6024_v49 = vmov 0 }
 0x132   : > { %3531 = vmatprep.mubr.msk.bf16.mxu1 %vm4458_vm7, %v5960_v26  ;;  %794 = vadd.xlane.f32.xlu0 %v793_v33  ;;  %vm4625_vm1 = vmpackc.low %vm603_vm9, %vm602_vm6  ;;  %6018 = vst [vmem:[#allocation48_spill] sm:$0xff] %v4630_v16  ;;  %v4633_v33 = vadd.s32 104, %v4097_v50  ;;  %v681_v25 = vcvt.s32.f32 %v4630_v16 }
 0x134   : > { %6019 = vst [vmem:[#allocation49_spill] sm:$0xff] %v4633_v33  ;;  %v682_v52 = vcvt.s32.f32 %v4633_v33  ;;  %vm4643_vm3 = vcmp.eq.f32.partialorder %v4119_v17, %v681_v25  ;;  %vm4648_vm9 = vcmp.eq.f32.partialorder %v4121_v18, %v681_v25 }
 0x135   : > { %v6022_v19 = vsel %vm4643_vm3, 4294967295, %v6021_v19  ;;  %v6025_v49 = vsel %vm4648_vm9, 4294967295, %v6024_v49  ;;  %v4665_v16 = vsel %vm4643_vm3, 1.0, %v5928_v62  ;;  %v4670_v25 = vsel %vm4648_vm9, 1.0, %v5928_v62 }
 0x136   : > { %6023 = vst [vmem:[#allocation50_spill] sm:$0xff] %v6022_v19  ;;  %6026 = vst [vmem:[#allocation51_spill] sm:$0xff] %v6025_v49  ;;  %vm4653_vm6 = vcmp.eq.f32.partialorder %v4119_v17, %v682_v52  ;;  %v796_v38 = vadd.f32 %v4670_v25, %v4665_v16  ;;  %vm6035_vm3 = vcmask 31744  }
 0x137   : > { %v6028_v5 = vsel %vm4653_vm6, 4294967295, %v6027_v5  ;;  %6033 = vst [vmem:[#allocation54_spill] sm:$0xff] %v4665_v16  ;;  %v4675_v33 = vsel %vm4653_vm6, 1.0, %v5928_v62  ;;  %vm6036_vm6 = vmmov %vm6035_vm3 }
 0x138   : > { %6029 = vst [vmem:[#allocation52_spill] sm:$0xff] %v6028_v5  ;;  %6034 = vst [vmem:[#allocation55_spill] sm:$0xff] %v4675_v33  ;;  %797 = vadd.xlane.f32.xlu1 %v796_v38  ;;  %v4697_v5 = vadd.s32 112, %v4097_v50  ;;  %v4700_v38 = vadd.s32 120, %v4097_v50 }
 0x139   : > { %3532 = vmatmul.mubr.msk.bf16.gmra.mrb[36].mxu1 %vm4528_vm15, %v5960_v26 }
 0x13a   : > { %3535 = vmatprep.mubr.msk.bf16.mxu1 %vm4541_vm0, %v5960_v26  ;;  %6037 = vst [vmem:[#allocation56_spill] sm:$0xff] %v4697_v5  ;;  %6038 = vst [vmem:[#allocation57_spill] sm:$0xff] %v4700_v38 }
 0x141   : > { %3536 = vmatmul.mubr.msk.bf16.gmra.mrb[40].mxu1 %vm4609_vm5, %v5960_v26 }
 0x142   : > { %3539 = vmatprep.mubr.msk.bf16.mxu1 %vm4613_vm2, %v5960_v26 }
 0x149   : > { %3540 = vmatmul.mubr.msk.bf16.gmra.mrb[44].mxu1 %vm4625_vm1, %v5960_v26 }
 0x14a   : > { %3545 = vmatprep.mubr.msk.bf16.mxu1 %vm6020_vm14, %v3848_v9  ;;  %vm4658_vm14 = vcmp.eq.f32.partialorder %v4121_v18, %v682_v52  ;;  %v6030_v9 = vmov 0 }
 0x14b   : > { %v6031_v9 = vsel %vm4658_vm14, 4294967295, %v6030_v9  ;;  %v4680_v52 = vsel %vm4658_vm14, 1.0, %v5928_v62 }
 0x14c   : > { %6032 = vst [vmem:[#allocation53_spill] sm:$0xff] %v6031_v9  ;;  %v799_v61 = vadd.f32 %v4680_v52, %v4675_v33 }
 0x14e   : > { %800 = vadd.xlane.f32.xlu0 %v799_v61  ;;  %v6042_v61 = vmov 0 }
 0x151   : > { %3546 = vmatmul.mubr.msk.bf16.vlgmr.msra.gmra.mrb[48].mxu1 %vm6035_vm3, %v3850_v10  ;;  %v683_v10 = vcvt.s32.f32 %v4697_v5 }
 0x152   : > { %3349 = vmatpush3.bf16.msk.msra.mxu1 %vm3997_vm4, %v5960_v26  ;;  %3549 = vmatprep.mubr.msk.bf16.mxu1 %vm6036_vm6, %v3863_v15  ;;  %v684_v15 = vcvt.s32.f32 %v4700_v38  ;;  %vm6056_vm6 = vmmov %vm6035_vm3 }
 0x153   : > { %3350 = vmatprep.subr.msk.bf16.mxu1 %vm4454_vm12, %v5960_v26  ;;  %vm4711_vm4 = vcmp.eq.f32.partialorder %v4119_v17, %v683_v10  ;;  %vm4716_vm12 = vcmp.eq.f32.partialorder %v4121_v18, %v683_v10 }
 0x154   : > { %v6040_v63 = vsel %vm4711_vm4, 4294967295, %v6039_v63  ;;  %v6043_v61 = vsel %vm4716_vm12, 4294967295, %v6042_v61  ;;  %v4738_v3 = vsel %vm4711_vm4, 1.0, %v5928_v62 }
 0x155   : > { %6041 = vst [vmem:[#allocation58_spill] sm:$0xff] %v6040_v63  ;;  %6044 = vst [vmem:[#allocation59_spill] sm:$0xff] %v6043_v61 }
 0x156   : > { %3351 = vmatpush3.bf16.msk.msra.mxu1 %vm4366_vm11, %v5960_v26  ;;  %vm4721_vm11 = vcmp.eq.f32.partialorder %v4119_v17, %v684_v15  ;;  %6051 = vst [vmem:[#allocation62_spill] sm:$0xff] %v4738_v3  ;;  %v4743_v17 = vsel %vm4716_vm12, 1.0, %v5928_v62 }
 0x157   : > { %3352 = vmatprep.subr.msk.bf16.mxu1 %vm4458_vm7, %v5960_v26  ;;  %v6046_v46 = vsel %vm4721_vm11, 4294967295, %v6045_v46  ;;  %vm4726_vm7 = vcmp.eq.f32.partialorder %v4121_v18, %v684_v15  ;;  %6052 = vst [vmem:[#allocation63_spill] sm:$0xff] %v4743_v17  ;;  %v4748_v18 = vsel %vm4721_vm11, 1.0, %v5928_v62  ;;  %v802_v23 = vadd.f32 %v4743_v17, %v4738_v3 }
 0x158   : > { %6047 = vst [vmem:[#allocation60_spill] sm:$0xff] %v6046_v46  ;;  %v6049_v56 = vsel %vm4726_vm7, 4294967295, %v6048_v56  ;;  %6053 = vst [vmem:[#allocation64_spill] sm:$0xff] %v4748_v18 }
 0x159   : > { %6050 = vst [vmem:[#allocation61_spill] sm:$0xff] %v6049_v56  ;;  %3550 = vmatmul.mubr.msk.bf16.gmra.mrb[52].mxu1 %vm6035_vm3, %v3875_v22  ;;  %v4753_v22 = vsel %vm4726_vm7, 1.0, %v5928_v62  ;;  %803 = vadd.xlane.f32.xlu1 %v802_v23 }
 0x15a   : > { %3353 = vmatpush3.bf16.msk.msra.mxu1 %vm4370_vm8, %v5960_v26  ;;  %6054 = vst [vmem:[#allocation65_spill] sm:$0xff] %v4753_v22  ;;  %vm6055_vm8 = vmmov %vm6035_vm3  ;;  %v805_v10 = vadd.f32 %v4753_v22, %v4748_v18 }
 0x15b   : > { %3553 = vmatprep.mubr.msk.bf16.mxu1 %vm6055_vm8, %v3878_v24  ;;  %3354 = vmatprep.subr.msk.bf16.mxu1 %vm4528_vm15, %v5960_v26  ;;  %vm6057_vm15 = vmmov %vm6035_vm3 }
 0x15c   : > { %806 = vadd.xlane.f32.xlu0 %v805_v10 }
 0x15e   : > { %3355 = vmatpush3.bf16.msk.msra.mxu1 %vm4396_vm10, %v5960_v26  ;;  %vm6058_vm10 = vnez %v5968_v37 }
 0x15f   : > { %3356 = vmatprep.subr.msk.bf16.mxu1 %vm4541_vm0, %v5960_v26  ;;  %vm6059_vm0 = vmmov %vm6035_vm3 }
 0x161   : > { %3554 = vmatmul.mubr.msk.bf16.gmra.mrb[56].mxu1 %vm6056_vm6, %v3891_v32 }
 0x162   : > { %3357 = vmatpush3.bf16.msk.msra.mxu1 %vm4400_vm13, %v5960_v26  ;;  %3557 = vmatprep.mubr.msk.bf16.mxu1 %vm6057_vm15, %v3894_v34  ;;  %vm6060_vm13 = vnez %v5970_v43 }
 0x163   : > { %3358 = vmatprep.subr.msk.bf16.mxu1 %vm4609_vm5, %v5960_v26  ;;  %vm6061_vm5 = vnez %v5972_v54 }
 0x166   : > { %3359 = vmatpush3.bf16.msk.msra.mxu1 %vm6058_vm10, %v5960_v26 }
 0x167   : > { %3360 = vmatprep.subr.msk.bf16.mxu1 %vm4613_vm2, %v5960_v26  ;;  %vm6066_vm2 = vnez %v6065_v44 }
 0x169   : > { %3558 = vmatmul.mubr.msk.bf16.gmra.mrb[60].mxu1 %vm6059_vm0, %v3905_v40 }
 0x16a   : > { %3361 = vmatpush3.bf16.msk.msra.mxu1 %vm6060_vm13, %v5960_v26 }
 0x16b   : > { %3362 = vmatprep.subr.msk.bf16.mxu1 %vm4625_vm1, %v5960_v26  ;;  %vm6064_vm1 = vnez %v6063_v14 }
 0x16c   : > { %vm3175_vm3 = vmpackc.low %vm6066_vm2, %vm6064_vm1 }
 0x16d   : > { %3176 = vmatprep.mubr.msk.bf16.mxu1 %vm3175_vm3, %v5960_v26 }
 0x16e   : > { %3363 = vmatpush3.bf16.msk.msra.mxu1 %vm6061_vm5, %v5960_v26 }
 0x175   : > { %v3447_v24 = vpop.f32.mrb[0].mxu0 }
 0x176   : > { %v1295_v32 = vpop.f32.mrb[1].mxu0 }
 0x177   : > { %v3448_v34 = vpop.f32.mrb[2].mxu0 }
 0x178   : > { %v1298_v59 = vpop.f32.mrb[3].mxu0 }
 0x183   : > { %v765_v4 = vpop.xlane.xlu1 %764 }
 0x184   : > { %v4797_v51 = vpop.f32.mrb[4].mxu0  ;;  %v809_v15 = vmax.f32 %v765_v4, 1.0 }
 0x185   : > { %v4799_v37 = vpop.f32.mrb[5].mxu0 }
 0x186   : > { %v4801_v40 = vpop.f32.mrb[6].mxu0  ;;  %3634 = vrcp.f32 %v809_v15 }
 0x187   : > { %v4803_v43 = vpop.f32.mrb[7].mxu0  ;;  %v762_v0 = vpop.xlane.xlu0 %761 }
 0x188   : > { %v808_v23 = vmax.f32 %v762_v0, 1.0  ;;  %v6062_v0 = vld [vmem:[#allocation12_spill] sm:$0xff] }
 0x18a   : > { %3636 = vrcp.f32 %v808_v23 }
 0x190   : > { %v3635_v50 = vpop.eup %3634 }
 0x191   : > { %v4822_v63 = vmul.f32 %v3635_v50, %v4143_v55  ;;  %v859_v56 = vmul.f32 %v3635_v50, %v4148_v58 }
 0x194   : > { %v4805_v53 = vpop.f32.mrb[8].mxu0  ;;  %v3637_v46 = vpop.eup %3636 }
 0x195   : > { %v4807_v13 = vpop.f32.mrb[9].mxu0  ;;  %v4826_v4 = vmul.f32 %v3637_v46, %v4168_v48  ;;  %v857_v15 = vmul.f32 %v3637_v46, %v6062_v0 }
 0x196   : > { %v4809_v20 = vpop.f32.mrb[10].mxu0 }
 0x197   : > { %v4811_v54 = vpop.f32.mrb[11].mxu0  ;;  %v889_v23 = vpack.c.bf16 %v859_v56, %v857_v15 }
 0x199   : > { %1805 = vmatprep.mubr.bf16.mxu0 %v889_v23  ;;  %v4858_v23 = vld [vmem:[%s5774_s0 + $0x2] ss:$0 sm:$0xff] }
 0x19a   : > { %v1304_v61 = vadd.f32 %v3447_v24, %v4858_v23  ;;  %v1296_v8 = vadd.f32 %v4858_v23, %v1295_v32  ;;  %v1307_v31 = vadd.f32 %v3448_v34, %v4858_v23  ;;  %v6067_v24 = vld [vmem:[#allocation14_spill] sm:$0xff]  ;;  %v1299_v45 = vadd.f32 %v4858_v23, %v1298_v59 }
 0x19b   : > { %vm6068_vm8 = vnez %v6067_v24  ;;  %v6069_v32 = vld [vmem:[#allocation18_spill] sm:$0xff] }
 0x19c   : > { %vm6070_vm6 = vnez %v6069_v32 }
 0x19d   : > { %vm3179_vm15 = vmpackc.low %vm6070_vm6, %vm6068_vm8 }
 0x1a4   : > { %v4813_v10 = vpop.f32.mrb[12].mxu0 }
 0x1a5   : > { %v4815_v38 = vpop.f32.mrb[13].mxu0 }
 0x1a6   : > { %v4817_v5 = vpop.f32.mrb[14].mxu0 }
 0x1a7   : > { %v4819_v62 = vpop.f32.mrb[15].mxu0 }
 0x1b4   : > { %v4831_v19 = vpop.f32.mrb[16].mxu0 }
 0x1b5   : > { %v4833_v9 = vpop.f32.mrb[17].mxu0 }
 0x1b6   : > { %v4835_v49 = vpop.f32.mrb[18].mxu0 }
 0x1b7   : > { %v4837_v55 = vpop.f32.mrb[19].mxu0 }
 0x1c4   : > { %v4839_v57 = vpop.f32.mrb[20].mxu0 }
 0x1c5   : > { %v4841_v50 = vpop.f32.mrb[21].mxu0 }
 0x1c6   : > { %v4843_v58 = vpop.f32.mrb[22].mxu0  ;;  %v1376_v16 = vadd.f32 %v4858_v23, %v4841_v50 }
 0x1c7   : > { %v4845_v48 = vpop.f32.mrb[23].mxu0 }
 0x1d4   : > { %v4847_v46 = vpop.f32.mrb[24].mxu0 }
 0x1d5   : > { %v4849_v56 = vpop.f32.mrb[25].mxu0 }
 0x1d6   : > { %v4851_v0 = vpop.f32.mrb[26].mxu0 }
 0x1d7   : > { %v4853_v15 = vpop.f32.mrb[27].mxu0 }
 0x1e4   : > { %v4862_v21 = vpop.f32.mrb[28].mxu0  ;;  %v3513_v12 = vpop.f32.mrb[16].mxu1 }
 0x1e5   : > { %v4869_v11 = vmul.f32 %v3513_v12, %v1304_v61  ;;  %v4871_v60 = vpop.f32.mrb[29].mxu0  ;;  %v1598_v6 = vpop.f32.mrb[17].mxu1  ;;  %v6071_v12 = vld [vmem:[#allocation7_spill] sm:$0xff]  ;;  %v6073_v61 = vld [vmem:[#allocation10_spill] sm:$0xff] }
 0x1e6   : > { %v4879_v14 = vmul.f32 %v1598_v6, %v1296_v8  ;;  %v4881_v44 = vpop.f32.mrb[30].mxu0  ;;  %v3514_v42 = vpop.f32.mrb[18].mxu1  ;;  %vm6072_vm10 = vnez %v6071_v12  ;;  %vm6074_vm0 = vnez %v6073_v61  ;;  %v1320_v12 = vadd.f32 %v4797_v51, %v4858_v23  ;;  %v6076_v61 = vld [vmem:[#allocation13_spill] sm:$0xff] }
 0x1e7   : > { %vm6075_vm13 = vmpackc.low %vm6072_vm10, %vm6074_vm0  ;;  %v4889_v34 = vmul.f32 %v3514_v42, %v1307_v31  ;;  %v4891_v24 = vpop.f32.mrb[31].mxu0  ;;  %v1601_v32 = vpop.f32.mrb[19].mxu1  ;;  %vm6077_vm5 = vnez %v6076_v61  ;;  %v6078_v42 = vld [vmem:[#allocation17_spill] sm:$0xff]  ;;  %v1312_v31 = vadd.f32 %v4858_v23, %v4799_v37  ;;  %v1315_v8 = vadd.f32 %v4858_v23, %v4803_v43 }
 0x1e8   : > { %3178 = vmatmul.mubr.msk.bf16.vlgmr.msra.gmra.mrb[64].mxu1 %vm6075_vm13, %v5960_v26  ;;  %v4894_v59 = vmul.f32 %v1601_v32, %v1299_v45  ;;  %vm6079_vm1 = vnez %v6078_v42  ;;  %v1323_v45 = vadd.f32 %v4801_v40, %v4858_v23  ;;  %v1336_v40 = vadd.f32 %v4805_v53, %v4858_v23 }
 0x1e9   : > { %3180 = vmatprep.mubr.msk.bf16.mxu1 %vm3179_vm15, %v5960_v26  ;;  %vm3181_vm2 = vmpackc.low %vm6079_vm1, %vm6077_vm5  ;;  %v1328_v43 = vadd.f32 %v4858_v23, %v4807_v13 }
 0x1ec   : > { %v3517_v18 = vpop.f32.mrb[20].mxu1 }
 0x1ed   : > { %v4910_v32 = vmul.f32 %v3517_v18, %v1320_v12  ;;  %v1614_v6 = vpop.f32.mrb[21].mxu1  ;;  %v1339_v12 = vadd.f32 %v4809_v20, %v4858_v23 }
 0x1ee   : > { %v4914_v3 = vmul.f32 %v1614_v6, %v1312_v31  ;;  %v3518_v51 = vpop.f32.mrb[22].mxu1 }
 0x1ef   : > { %v4917_v61 = vmul.f32 %v3518_v51, %v1323_v45  ;;  %v1617_v42 = vpop.f32.mrb[23].mxu1  ;;  %v1331_v45 = vadd.f32 %v4858_v23, %v4811_v54  ;;  %v1344_v54 = vadd.f32 %v4858_v23, %v4815_v38 }
 0x1f0   : > { %3182 = vmatmul.mubr.msk.bf16.gmra.mrb[68].mxu1 %vm3181_vm2, %v5960_v26  ;;  %v4919_v22 = vmul.f32 %v1617_v42, %v1315_v8 }
 0x1f4   : > { %v3521_v6 = vpop.f32.mrb[24].mxu1 }
 0x1f5   : > { %v4931_v31 = vmul.f32 %v3521_v6, %v1336_v40  ;;  %v1630_v8 = vpop.f32.mrb[25].mxu1  ;;  %v1352_v40 = vadd.f32 %v4813_v10, %v4858_v23  ;;  %v1355_v6 = vadd.f32 %v4817_v5, %v4858_v23 }
 0x1f6   : > { %v4935_v51 = vmul.f32 %v1630_v8, %v1328_v43  ;;  %v3522_v42 = vpop.f32.mrb[26].mxu1  ;;  %v1347_v8 = vadd.f32 %v4858_v23, %v4819_v62  ;;  %v1360_v62 = vadd.f32 %v4858_v23, %v4833_v9  ;;  %v768_v9 = vpop.xlane.xlu0 %767 }
 0x1f7   : > { %v4937_v37 = vmul.f32 %v3522_v42, %v1339_v12  ;;  %v1633_v18 = vpop.f32.mrb[27].mxu1 }
 0x1f8   : > { %v4939_v53 = vmul.f32 %v1633_v18, %v1331_v45 }
 0x1fc   : > { %v3525_v43 = vpop.f32.mrb[28].mxu1 }
 0x1fd   : > { %v4951_v12 = vmul.f32 %v3525_v43, %v1352_v40  ;;  %v1646_v18 = vpop.f32.mrb[29].mxu1  ;;  %v1368_v40 = vadd.f32 %v4831_v19, %v4858_v23  ;;  %v1371_v43 = vadd.f32 %v4835_v49, %v4858_v23  ;;  %v1384_v19 = vadd.f32 %v4839_v57, %v4858_v23 }
 0x1fe   : > { %v4955_v45 = vmul.f32 %v1646_v18, %v1344_v54  ;;  %v3526_v42 = vpop.f32.mrb[30].mxu1 }
 0x1ff   : > { %v4957_v13 = vmul.f32 %v3526_v42, %v1355_v6  ;;  %v1649_v20 = vpop.f32.mrb[31].mxu1 }
 0x200   : > { %v4959_v10 = vmul.f32 %v1649_v20, %v1347_v8  ;;  %v1363_v20 = vadd.f32 %v4858_v23, %v4837_v55 }
 0x204   : > { %v3529_v54 = vpop.f32.mrb[32].mxu1 }
 0x205   : > { %v1743_v6 = vmul.f32 %v3529_v54, %v1368_v40  ;;  %v1662_v18 = vpop.f32.mrb[33].mxu1  ;;  %v1387_v40 = vadd.f32 %v4843_v58, %v4858_v23  ;;  %v6080_v54 = vpack.c.bf16 %v4894_v59, %v4879_v14  ;;  %v771_v58 = vpop.xlane.xlu0 %770  ;;  %v1400_v14 = vadd.f32 %v4847_v46, %v4858_v23 }
 0x206   : > { %v1741_v8 = vmul.f32 %v1662_v18, %v1360_v62  ;;  %v3530_v42 = vpop.f32.mrb[34].mxu1  ;;  %v810_v59 = vmax.f32 %v768_v9, 1.0 }
 0x207   : > { %v1744_v38 = vmul.f32 %v3530_v42, %v1371_v43  ;;  %v1665_v26 = vpop.f32.mrb[35].mxu1 }
 0x208   : > { %v1742_v5 = vmul.f32 %v1665_v26, %v1363_v20  ;;  %v1379_v26 = vadd.f32 %v4858_v23, %v4845_v48  ;;  %v1392_v48 = vadd.f32 %v4858_v23, %v4849_v56  ;;  %v1403_v20 = vadd.f32 %v4851_v0, %v4858_v23 }
 0x209   : > { %v1766_v17 = vpack.c.bf16 %v1744_v38, %v1743_v6  ;;  %3638 = vrcp.f32 %v810_v59  ;;  %v6083_v0 = vpack.c.bf16 %v4917_v61, %v4910_v32  ;;  %v6084_v32 = vpack.c.bf16 %v4939_v53, %v4935_v51 }
 0x20a   : > { %v1765_v33 = vpack.c.bf16 %v1742_v5, %v1741_v8  ;;  %v1411_v61 = vadd.f32 %v4858_v23, %v4891_v24  ;;  %v6086_v24 = vpack.c.bf16 %v4959_v10, %v4955_v45  ;;  %v6090_v45 = vpack.c.bf16 %v4822_v63, %v4826_v4  ;;  %v6091_v10 = vld [vmem:[#allocation15_spill] sm:$0xff]  ;;  %v6095_v4 = vld [vmem:[#allocation24_spill] sm:$0xff] }
 0x20c   : > { %v3533_v49 = vpop.f32.mrb[36].mxu1  ;;  %3275 = vmatprep.subr.bf16.mxu0 %v1765_v33  ;;  %v6081_v33 = vpack.c.bf16 %v4889_v34, %v4869_v11  ;;  %v6082_v11 = vpack.c.bf16 %v4919_v22, %v4914_v3  ;;  %v1395_v34 = vadd.f32 %v4858_v23, %v4853_v15  ;;  %v1416_v22 = vadd.f32 %v4862_v21, %v4858_v23 }
 0x20d   : > { %v1747_v55 = vmul.f32 %v3533_v49, %v1384_v19  ;;  %v1678_v62 = vpop.f32.mrb[37].mxu1  ;;  %3276 = vmatpush3.bf16.msra.mxu0 %v6080_v54  ;;  %v1408_v54 = vadd.f32 %v4858_v23, %v4871_v60 }
 0x20e   : > { %v1745_v38 = vmul.f32 %v1678_v62, %v1376_v16  ;;  %v3534_v57 = vpop.f32.mrb[38].mxu1  ;;  %3277 = vmatprep.subr.bf16.mxu0 %v1766_v17  ;;  %v811_v17 = vmax.f32 %v771_v58, 1.0  ;;  %v777_v62 = vpop.xlane.xlu0 %776 }
 0x20f   : > { %v1748_v5 = vmul.f32 %v3534_v57, %v1387_v40  ;;  %v1681_v43 = vpop.f32.mrb[39].mxu1  ;;  %v774_v40 = vpop.xlane.xlu1 %773  ;;  %v1419_v57 = vadd.f32 %v4881_v44, %v4858_v23 }
 0x210   : > { %v1746_v50 = vmul.f32 %v1681_v43, %v1379_v26  ;;  %3640 = vrcp.f32 %v811_v17  ;;  %v812_v15 = vmax.f32 %v774_v40, 1.0 }
 0x211   : > { %v1768_v6 = vpack.c.bf16 %v1748_v5, %v1747_v55  ;;  %3278 = vmatpush3.bf16.msra.mxu0 %v6081_v33 }
 0x212   : > { %v1767_v18 = vpack.c.bf16 %v1746_v50, %v1745_v38  ;;  %v813_v38 = vmax.f32 %v777_v62, 1.0  ;;  %3642 = vrcp.f32 %v812_v15  ;;  %v783_v51 = vpop.xlane.xlu0 %782  ;;  %v6094_v62 = vld [vmem:[#allocation29_spill] sm:$0xff] }
 0x213   : > { %v780_v58 = vpop.xlane.xlu1 %779  ;;  %v815_v23 = vmax.f32 %v783_v51, 1.0 }
 0x214   : > { %v3537_v16 = vpop.f32.mrb[40].mxu1  ;;  %3279 = vmatprep.subr.bf16.mxu0 %v1767_v18  ;;  %3644 = vrcp.f32 %v813_v38  ;;  %v3639_v18 = vpop.eup %3638 }
 0x215   : > { %v1751_v8 = vmul.f32 %v3537_v16, %v1400_v14  ;;  %v1694_v42 = vpop.f32.mrb[41].mxu1  ;;  %3280 = vmatpush3.bf16.msra.mxu0 %v6082_v11  ;;  %v6085_v14 = vpack.c.bf16 %v4937_v37, %v4931_v31  ;;  %v6087_v16 = vld [vmem:[#allocation16_spill] sm:$0xff]  ;;  %v6089_v31 = vpack.c.bf16 %v4957_v13, %v4951_v12 }
 0x216   : > { %v1749_v46 = vmul.f32 %v1694_v42, %v1392_v48  ;;  %v3538_v19 = vpop.f32.mrb[42].mxu1  ;;  %3281 = vmatprep.subr.bf16.mxu0 %v1768_v6  ;;  %v814_v48 = vmax.f32 %v780_v58, 1.0  ;;  %v861_v17 = vmul.f32 %v3639_v18, %v6087_v16 }
 0x217   : > { %v1752_v9 = vmul.f32 %v3538_v19, %v1403_v20  ;;  %v1697_v56 = vpop.f32.mrb[43].mxu1  ;;  %v6088_v20 = vld [vmem:[#allocation20_spill] sm:$0xff]  ;;  %v786_v42 = vpop.xlane.xlu1 %785 }
 0x218   : > { %v1750_v49 = vmul.f32 %v1697_v56, %v1395_v34  ;;  %3646 = vrcp.f32 %v814_v48  ;;  %v789_v34 = vpop.xlane.xlu0 %788  ;;  %v816_v19 = vmax.f32 %v786_v42, 1.0  ;;  %v6092_v56 = vld [vmem:[#allocation19_spill] sm:$0xff] }
 0x219   : > { %v1770_v55 = vpack.c.bf16 %v1752_v9, %v1751_v8  ;;  %3282 = vmatpush3.bf16.msra.mxu0 %v6083_v0  ;;  %3648 = vrcp.f32 %v815_v23  ;;  %v860_v9 = vmul.f32 %v3639_v18, %v6091_v10  ;;  %v817_v40 = vmax.f32 %v789_v34, 1.0 }
 0x21a   : > { %v1769_v3 = vpack.c.bf16 %v1750_v49, %v1749_v46  ;;  %v3641_v53 = vpop.eup %3640  ;;  %3650 = vrcp.f32 %v816_v19 }
 0x21b   : > { %v863_v8 = vmul.f32 %v3641_v53, %v6088_v20  ;;  %v862_v49 = vmul.f32 %v3641_v53, %v6092_v56  ;;  %3652 = vrcp.f32 %v817_v40  ;;  %v792_v12 = vpop.xlane.xlu1 %791 }
 0x21c   : > { %v3541_v26 = vpop.f32.mrb[44].mxu1  ;;  %3283 = vmatprep.subr.bf16.mxu0 %v1769_v3  ;;  %v3643_v37 = vpop.eup %3642  ;;  %v818_v63 = vmax.f32 %v792_v12, 1.0  ;;  %v6103_v12 = vld [vmem:[#allocation23_spill] sm:$0xff] }
 0x21d   : > { %v1755_v5 = vmul.f32 %v3541_v26, %v1416_v22  ;;  %v1710_v43 = vpop.f32.mrb[45].mxu1  ;;  %3284 = vmatpush3.bf16.msra.mxu0 %v6084_v32  ;;  %v891_v11 = vpack.c.bf16 %v863_v8, %v861_v17  ;;  %v890_v13 = vpack.c.bf16 %v862_v49, %v860_v9  ;;  %v864_v38 = vmul.f32 %v3643_v37, %v6095_v4  ;;  %v6098_v9 = vld [vmem:[#allocation55_spill] sm:$0xff] }
 0x21e   : > { %v1753_v21 = vmul.f32 %v1710_v43, %v1408_v54  ;;  %v3542_v50 = vpop.f32.mrb[46].mxu1  ;;  %3285 = vmatprep.subr.bf16.mxu0 %v1770_v55  ;;  %v3645_v46 = vpop.eup %3644  ;;  %v6093_v55 = vld [vmem:[#allocation25_spill] sm:$0xff]  ;;  %3654 = vrcp.f32 %v818_v63  ;;  %v6099_v49 = vld [vmem:[#allocation63_spill] sm:$0xff]  ;;  %vm6104_vm3 = vnez %v6103_v12 }
 0x21f   : > { %v1756_v6 = vmul.f32 %v3542_v50, %v1419_v57  ;;  %v1713_v60 = vpop.f32.mrb[47].mxu1  ;;  %v865_v0 = vmul.f32 %v3643_v37, %v6093_v55  ;;  %v867_v3 = vmul.f32 %v3645_v46, %v6094_v62  ;;  %v795_v54 = vpop.xlane.xlu0 %794  ;;  %v6096_v57 = vld [vmem:[#allocation28_spill] sm:$0xff]  ;;  %v6112_v63 = vld [vmem:[#allocation33_spill] sm:$0xff]  ;;  %v6114_v4 = vld [vmem:[#allocation35_spill] sm:$0xff] }
 0x220   : > { %v1754_v33 = vmul.f32 %v1713_v60, %v1411_v61  ;;  %v819_v43 = vmax.f32 %v795_v54, 1.0  ;;  %v798_v50 = vpop.xlane.xlu1 %797  ;;  %v6108_v54 = vld [vmem:[#allocation22_spill] sm:$0xff]  ;;  %vm6113_vm13 = vnez %v6112_v63  ;;  %vm6115_vm5 = vnez %v6114_v4 }
 0x221   : > { %v1772_v44 = vpack.c.bf16 %v1756_v6, %v1755_v5  ;;  %3286 = vmatpush3.bf16.msra.mxu0 %v6085_v14  ;;  %v893_v15 = vpack.c.bf16 %v867_v3, %v865_v0  ;;  %v866_v5 = vmul.f32 %v3645_v46, %v6096_v57  ;;  %v820_v18 = vmax.f32 %v798_v50, 1.0  ;;  %vm3187_vm1 = vmpackc.low %vm6115_vm5, %vm6113_vm13  ;;  %v6118_v57 = vld [vmem:[#allocation34_spill] sm:$0xff]  ;;  %v6130_v50 = vld [vmem:[#allocation47_spill] sm:$0xff] }
 0x222   : > { %v1771_v59 = vpack.c.bf16 %v1754_v33, %v1753_v21  ;;  %v3647_v22 = vpop.eup %3646  ;;  %3656 = vrcp.f32 %v819_v43  ;;  %vm6109_vm15 = vnez %v6108_v54  ;;  %v6122_v43 = vld [vmem:[#allocation41_spill] sm:$0xff] }
 0x223   : > { %v3649_v26 = vpop.eup %3648  ;;  %v869_v32 = vmul.f32 %v3647_v22, %v4322_v7  ;;  %v892_v21 = vpack.c.bf16 %v866_v5, %v864_v38  ;;  %v801_v33 = vpop.xlane.xlu0 %800  ;;  %3658 = vrcp.f32 %v820_v18  ;;  %v6116_v38 = vld [vmem:[#allocation32_spill] sm:$0xff]  ;;  %v6120_v5 = vld [vmem:[#allocation39_spill] sm:$0xff]  ;;  %v6138_v18 = vld [vmem:[#allocation50_spill] sm:$0xff] }
 0x224   : > { %3287 = vmatprep.subr.bf16.mxu0 %v1771_v59  ;;  %v871_v61 = vmul.f32 %v3649_v26, %v4348_v41  ;;  %v3651_v6 = vpop.eup %3650  ;;  %v870_v14 = vmul.f32 %v3649_v26, %v4340_v2  ;;  %v821_v51 = vmax.f32 %v801_v33, 1.0  ;;  %v804_v59 = vpop.xlane.xlu1 %803  ;;  %v6110_v26 = vld [vmem:[#allocation26_spill] sm:$0xff]  ;;  %vm6117_vm2 = vnez %v6116_v38 }
 0x225   : > { %3288 = vmatpush3.bf16.msra.mxu0 %v6086_v24  ;;  %v3653_v58 = vpop.eup %3652  ;;  %v873_v7 = vmul.f32 %v3651_v6, %v4512_v27  ;;  %v822_v17 = vmax.f32 %v804_v59, 1.0  ;;  %vm6111_vm10 = vnez %v6110_v26 }
 0x226   : > { %3289 = vmatprep.subr.bf16.mxu0 %v1772_v44  ;;  %v895_v60 = vpack.c.bf16 %v871_v61, %v869_v32  ;;  %v868_v44 = vmul.f32 %v3647_v22, %v4317_v39  ;;  %v875_v41 = vmul.f32 %v3653_v58, %v4522_v1  ;;  %3660 = vrcp.f32 %v821_v51  ;;  %v6105_v22 = vld [vmem:[#allocation27_spill] sm:$0xff]  ;;  %vm3185_vm0 = vmpackc.low %vm6111_vm10, %vm6109_vm15  ;;  %v6124_v32 = vld [vmem:[#allocation38_spill] sm:$0xff] }
 0x227   : > { %v807_v24 = vpop.xlane.xlu0 %806  ;;  %v872_v39 = vmul.f32 %v3651_v6, %v4507_v35  ;;  %v874_v2 = vmul.f32 %v3653_v58, %v4517_v30  ;;  %3662 = vrcp.f32 %v822_v17  ;;  %vm6106_vm8 = vnez %v6105_v22  ;;  %v6126_v61 = vld [vmem:[#allocation40_spill] sm:$0xff] }
 0x228   : > { %v894_v53 = vpack.c.bf16 %v870_v14, %v868_v44  ;;  %v3655_v48 = vpop.eup %3654  ;;  %v897_v23 = vpack.c.bf16 %v875_v41, %v873_v7  ;;  %v823_v20 = vmax.f32 %v807_v24, 1.0  ;;  %vm3183_vm6 = vmpackc.low %vm6106_vm8, %vm6104_vm3  ;;  %vm6119_vm3 = vnez %v6118_v57  ;;  %v6132_v6 = vld [vmem:[#allocation44_spill] sm:$0xff] }
 0x229   : > { %3290 = vmatpush3.bf16.msra.mxu0 %v6089_v31  ;;  %v877_v27 = vmul.f32 %v3655_v48, %v4585_v28  ;;  %v896_v8 = vpack.c.bf16 %v874_v2, %v872_v39  ;;  %vm3189_vm8 = vmpackc.low %vm6119_vm3, %vm6117_vm2  ;;  %vm6123_vm15 = vnez %v6122_v43  ;;  %vm6127_vm13 = vnez %v6126_v61  ;;  %v6140_v44 = vld [vmem:[#allocation52_spill] sm:$0xff] }
 0x22a   : > { %3664 = vrcp.f32 %v823_v20  ;;  %vm6131_vm2 = vnez %v6130_v50 }
 0x22c   : > { %1806 = vmatmul.mubr.bf16.vlgmr.msra.gmra.mrb[32].mxu0 %v6090_v45  ;;  %v3657_v16 = vpop.eup %3656  ;;  %v6097_v45 = vld [vmem:[#allocation54_spill] sm:$0xff] }
 0x22d   : > { %1813 = vmatprep.mubr.bf16.mxu0 %v891_v11  ;;  %v879_v1 = vmul.f32 %v3657_v16, %v4595_v47  ;;  %v3659_v42 = vpop.eup %3658  ;;  %v876_v11 = vmul.f32 %v3655_v48, %v4580_v36  ;;  %v878_v34 = vmul.f32 %v3657_v16, %v4590_v29  ;;  %v6100_v36 = vld [vmem:[#allocation65_spill] sm:$0xff] }
 0x22e   : > { %v881_v35 = vmul.f32 %v3659_v42, %v4670_v25  ;;  %v880_v10 = vmul.f32 %v3659_v42, %v6097_v45  ;;  %v6101_v25 = vld [vmem:[#allocation62_spill] sm:$0xff] }
 0x22f   : > { %v899_v37 = vpack.c.bf16 %v879_v1, %v877_v27  ;;  %v898_v46 = vpack.c.bf16 %v878_v34, %v876_v11 }
 0x230   : > { %v3661_v31 = vpop.eup %3660 }
 0x231   : > { %v883_v30 = vmul.f32 %v3661_v31, %v4680_v52  ;;  %v3663_v28 = vpop.eup %3662  ;;  %v882_v56 = vmul.f32 %v3661_v31, %v6098_v9  ;;  %v6102_v52 = vld [vmem:[#allocation64_spill] sm:$0xff] }
 0x232   : > { %v885_v40 = vmul.f32 %v3663_v28, %v6099_v49  ;;  %v884_v62 = vmul.f32 %v3663_v28, %v6101_v25 }
 0x233   : > { %v901_v19 = vpack.c.bf16 %v883_v30, %v881_v35  ;;  %v900_v29 = vpack.c.bf16 %v882_v56, %v880_v10 }
 0x234   : > { %1814 = vmatmul.mubr.bf16.gmra.mrb[36].mxu0 %v890_v13  ;;  %v3665_v47 = vpop.eup %3664 }
 0x235   : > { %1821 = vmatprep.mubr.bf16.mxu0 %v893_v15  ;;  %v887_v55 = vmul.f32 %v3665_v47, %v6100_v36  ;;  %v886_v3 = vmul.f32 %v3665_v47, %v6102_v52  ;;  %v6107_v15 = vmov 1.0|1.0   ;;  %v3633_v47 = vld [vmem:[%s5775_s1 + $0x20] sm:$0xff]  }
 0x236   : > { %3184 = vmatprep.mubr.msk.bf16.mxu1 %vm3183_vm6, %v6107_v15  ;;  %vm6121_vm6 = vnez %v6120_v5  ;;  %3561 = vmatprep.subr.bf16.mxu0 %v3633_v47 }
 0x237   : > { %v903_v0 = vpack.c.bf16 %v887_v55, %v885_v40  ;;  %v902_v13 = vpack.c.bf16 %v886_v3, %v884_v62  ;;  %3186 = vmatmul.mubr.msk.bf16.gmra.mrb[72].mxu1 %vm3185_vm0, %v6107_v15  ;;  %vm3191_vm10 = vmpackc.low %vm6123_vm15, %vm6121_vm6  ;;  %vm6125_vm0 = vnez %v6124_v32  ;;  %3562 = vmatpush3.bf16.msra.mxu0 %v3633_v47  ;;  %v6148_v47 = vmov 0.0  }
 0x238   : > { %3188 = vmatprep.mubr.msk.bf16.mxu1 %vm3187_vm1, %v6107_v15  ;;  %vm3193_vm5 = vmpackc.low %vm6127_vm13, %vm6125_vm0  ;;  %vm6139_vm0 = vnez %v6138_v18  ;;  %vm6141_vm13 = vnez %v6140_v44 }
 0x23c   : > { %1822 = vmatmul.mubr.bf16.gmra.mrb[40].mxu0 %v892_v21  ;;  %v6128_v21 = vld [vmem:[#allocation45_spill] sm:$0xff] }
 0x23d   : > { %1829 = vmatprep.mubr.bf16.mxu0 %v895_v60  ;;  %vm6129_vm1 = vnez %v6128_v21  ;;  %v6134_v60 = vld [vmem:[#allocation46_spill] sm:$0xff] }
 0x23e   : > { %vm3195_vm3 = vmpackc.low %vm6131_vm2, %vm6129_vm1  ;;  %vm6135_vm6 = vnez %v6134_v60 }
 0x23f   : > { %3190 = vmatmul.mubr.msk.bf16.gmra.mrb[76].mxu1 %vm3189_vm8, %v6107_v15  ;;  %vm6133_vm8 = vnez %v6132_v6  ;;  %vm3203_vm1 = vmpackc.low %vm4726_vm7, %vm4716_vm12 }
 0x240   : > { %3192 = vmatprep.mubr.msk.bf16.mxu1 %vm3191_vm10, %v6107_v15  ;;  %vm3197_vm15 = vmpackc.low %vm6135_vm6, %vm6133_vm8 }
 0x241   : > { %vm3199_vm10 = vmpackc.low %vm4658_vm14, %vm4648_vm9 }
 0x242   : > { %vm3205_vm9 = vmpackc.low %vm4721_vm11, %vm4711_vm4 }
 0x244   : > { %1830 = vmatmul.mubr.bf16.gmra.mrb[44].mxu0 %v894_v53  ;;  %v5112_v53 = vpop.f32.mrb[48].mxu1 }
 0x245   : > { %1837 = vmatprep.mubr.bf16.mxu0 %v897_v23  ;;  %v5114_v59 = vpop.f32.mrb[49].mxu1 }
 0x246   : > { %v5118_v39 = vpop.f32.mrb[50].mxu1 }
 0x247   : > { %3194 = vmatmul.mubr.msk.bf16.gmra.mrb[80].mxu1 %vm3193_vm5, %v6107_v15  ;;  %vm3201_vm5 = vmpackc.low %vm6141_vm13, %vm6139_vm0  ;;  %v5126_v20 = vpop.f32.mrb[51].mxu1  ;;  %vm2437_vm13 = vcmask 130048  }
 0x248   : > { %3196 = vmatprep.mubr.msk.bf16.mxu1 %vm3195_vm3, %v6107_v15 }
 0x24c   : > { %1838 = vmatmul.mubr.bf16.gmra.mrb[48].mxu0 %v896_v8 }
 0x24d   : > { %1845 = vmatprep.mubr.bf16.mxu0 %v899_v37 }
 0x24f   : > { %3198 = vmatmul.mubr.msk.bf16.gmra.mrb[84].mxu1 %vm3197_vm15, %v6107_v15 }
 0x250   : > { %3200 = vmatprep.mubr.msk.bf16.mxu1 %vm3199_vm10, %v6107_v15 }
 0x254   : > { %1846 = vmatmul.mubr.bf16.gmra.mrb[52].mxu0 %v898_v46 }
 0x255   : > { %1853 = vmatprep.mubr.bf16.mxu0 %v901_v19  ;;  %v5152_v19 = vpop.f32.mrb[52].mxu1 }
 0x256   : > { %v5157_v45 = vpop.f32.mrb[53].mxu1 }
 0x257   : > { %3202 = vmatmul.mubr.msk.bf16.gmra.mrb[88].mxu1 %vm3201_vm5, %v6107_v15  ;;  %v5165_v36 = vpop.f32.mrb[54].mxu1 }
 0x258   : > { %3204 = vmatprep.mubr.msk.bf16.mxu1 %vm3203_vm1, %v6107_v15 }
 0x25c   : > { %1854 = vmatmul.mubr.bf16.gmra.mrb[56].mxu0 %v900_v29  ;;  %v5173_v29 = vpop.f32.mrb[55].mxu1 }
 0x25d   : > { %1861 = vmatprep.mubr.bf16.mxu0 %v903_v0  ;;  %v5199_v4 = vpop.f32.mrb[56].mxu1 }
 0x25e   : > { %v5201_v38 = vpop.f32.mrb[57].mxu1 }
 0x25f   : > { %3206 = vmatmul.mubr.msk.bf16.gmra.mrb[92].mxu1 %vm3205_vm9, %v6107_v15  ;;  %v5209_v21 = vpop.f32.mrb[58].mxu1 }
 0x260   : > { %v5217_v6 = vpop.f32.mrb[59].mxu1 }
 0x261   : > { %v5239_v51 = vpop.f32.mrb[60].mxu1 }
 0x262   : > { %v5241_v7 = vpop.f32.mrb[61].mxu1 }
 0x263   : > { %v5243_v41 = vpop.f32.mrb[62].mxu1 }
 0x264   : > { %1862 = vmatmul.mubr.bf16.gmra.mrb[60].mxu0 %v902_v13 }
 0x2ff   : > { %v3291_v48 = vpop.f32.mrb[32].mxu0 }
 0x300   : > { %v3292_v23 = vpop.f32.mrb[33].mxu0 }
 0x301   : > { %v5116_v24 = vadd.f32 %v3292_v23, %v3291_v48  ;;  %v3294_v16 = vpop.f32.mrb[34].mxu0  ;;  %v5249_v48 = vpop.f32.mrb[63].mxu1 }
 0x302   : > { %v3295_v17 = vpop.f32.mrb[35].mxu0  ;;  %v3364_v23 = vpop.f32.mrb[64].mxu1 }
 0x303   : > { %1950 = vrot.lane.b32.xlu0 %v5116_v24, %s3773_s11  ;;  %1886 = vrot.lane.b32.xlu1 %v5116_v24, %s3774_s12  ;;  %v5124_v2 = vadd.f32 %v3295_v17, %v3294_v16  ;;  %v3365_v16 = vpop.f32.mrb[65].mxu1 }
 0x304   : > { %v3366_v17 = vadd.f32 %v3365_v16, %v3364_v23 }
 0x307   : > { %2014 = vrot.lane.b32.xlu0 %v5116_v24, %s3775_s13  ;;  %1952 = vrot.lane.b32.xlu1 %v5124_v2, %s3773_s11  ;;  %v3297_v27 = vpop.f32.mrb[36].mxu0 }
 0x308   : > { %v3298_v1 = vpop.f32.mrb[37].mxu0 }
 0x309   : > { %v5132_v8 = vadd.f32 %v3298_v1, %v3297_v27  ;;  %v3300_v42 = vpop.f32.mrb[38].mxu0  ;;  %v3367_v27 = vpop.f32.mrb[66].mxu1 }
 0x30a   : > { %v3301_v37 = vpop.f32.mrb[39].mxu0  ;;  %v3368_v1 = vpop.f32.mrb[67].mxu1 }
 0x30b   : > { %1888 = vrot.lane.b32.xlu0 %v5124_v2, %s3774_s12  ;;  %2016 = vrot.lane.b32.xlu1 %v5124_v2, %s3775_s13  ;;  %v5138_v31 = vadd.f32 %v3301_v37, %v3300_v42  ;;  %v3370_v42 = vpop.f32.mrb[68].mxu1 }
 0x30c   : > { %v3371_v37 = vpop.f32.mrb[69].mxu1 }
 0x30f   : > { %1954 = vrot.lane.b32.xlu0 %v5132_v8, %s3773_s11  ;;  %1890 = vrot.lane.b32.xlu1 %v5132_v8, %s3774_s12  ;;  %v3303_v11 = vpop.f32.mrb[40].mxu0 }
 0x310   : > { %v3304_v34 = vpop.f32.mrb[41].mxu0 }
 0x311   : > { %v5144_v35 = vadd.f32 %v3304_v34, %v3303_v11  ;;  %v3306_v30 = vpop.f32.mrb[42].mxu0  ;;  %v6146_v11 = vld [vmem:[#allocation2_spill] sm:$0xff]  ;;  %v6147_v34 = vld [vmem:[#allocation5_spill] sm:$0xff] }
 0x312   : > { %v3307_v46 = vpop.f32.mrb[43].mxu0  ;;  %vm2248_vm14 = vcmp.eq.s32.totalorder %v6147_v34, %v6146_v11 }
 0x313   : > { %2018 = vrot.lane.b32.xlu0 %v5132_v8, %s3775_s13  ;;  %1892 = vrot.lane.b32.xlu1 %v5138_v31, %s3774_s12  ;;  %v5150_v28 = vadd.f32 %v3307_v46, %v3306_v30  ;;  %v3372_v30 = vadd.f32 %v3371_v37, %v3370_v42  ;;  %v3373_v46 = vpop.f32.mrb[70].mxu1 }
 0x317   : > { %1894 = vrot.lane.b32.xlu0 %v5144_v35, %s3774_s12  ;;  %1956 = vrot.lane.b32.xlu1 %v5138_v31, %s3773_s11  ;;  %v3309_v10 = vpop.f32.mrb[44].mxu0 }
 0x318   : > { %v3310_v9 = vpop.f32.mrb[45].mxu0 }
 0x319   : > { %v5163_v56 = vadd.f32 %v3310_v9, %v3309_v10  ;;  %v3312_v49 = vpop.f32.mrb[46].mxu0  ;;  %v2264_v10 = vsel %vm2248_vm14, 1.0, %v6148_v47  ;;  %v3374_v9 = vpop.f32.mrb[71].mxu1 }
 0x31a   : > { %v3313_v40 = vpop.f32.mrb[47].mxu0 }
 0x31b   : > { %1958 = vrot.lane.b32.xlu0 %v5144_v35, %s3773_s11  ;;  %2020 = vrot.lane.b32.xlu1 %v5138_v31, %s3775_s13  ;;  %v5171_v55 = vadd.f32 %v3313_v40, %v3312_v49  ;;  %v3369_v49 = vadd.f32 %v3368_v1, %v3367_v27  ;;  %v6149_v40 = vld [vmem:[#allocation6_spill] sm:$0xff] }
 0x31c   : > { %vm2249_vm4 = vcmp.eq.s32.totalorder %v6149_v40, %v6146_v11 }
 0x31f   : > { %2022 = vrot.lane.b32.xlu0 %v5144_v35, %s3775_s13  ;;  %1896 = vrot.lane.b32.xlu1 %v5150_v28, %s3774_s12  ;;  %v3315_v0 = vpop.f32.mrb[48].mxu0 }
 0x320   : > { %v3316_v25 = vpop.f32.mrb[49].mxu0 }
 0x321   : > { %v5179_v62 = vadd.f32 %v3316_v25, %v3315_v0  ;;  %v3318_v52 = vpop.f32.mrb[50].mxu0  ;;  %v3375_v0 = vadd.f32 %v3374_v9, %v3373_v46  ;;  %v2265_v25 = vsel %vm2249_vm4, 1.0, %v6148_v47  ;;  %v6153_v46 = vld [vmem:[#allocation21_spill] sm:$0xff]  ;;  %vm2724_vm4 = vcmask 64512  }
 0x322   : > { %v3319_v3 = vpop.f32.mrb[51].mxu0  ;;  %vm2251_vm2 = vcmp.eq.s32.totalorder %v6153_v46, %v6146_v11 }
 0x323   : > { %1898 = vrot.lane.b32.xlu0 %v5163_v56, %s3774_s12  ;;  %1960 = vrot.lane.b32.xlu1 %v5150_v28, %s3773_s11  ;;  %v5185_v13 = vadd.f32 %v3319_v3, %v3318_v52  ;;  %v5269_v52 = vadd.f32 %v3372_v30, %v2264_v10  ;;  %v5271_v3 = vadd.f32 %v3375_v0, %v2265_v25  ;;  %v2267_v9 = vsel %vm2251_vm2, 1.0, %v6148_v47 }
 0x327   : > { %1962 = vrot.lane.b32.xlu0 %v5163_v56, %s3773_s11  ;;  %2024 = vrot.lane.b32.xlu1 %v5150_v28, %s3775_s13  ;;  %v3321_v12 = vpop.f32.mrb[52].mxu0 }
 0x328   : > { %v3322_v22 = vpop.f32.mrb[53].mxu0 }
 0x329   : > { %v5191_v15 = vadd.f32 %v3322_v22, %v3321_v12  ;;  %v3324_v54 = vpop.f32.mrb[54].mxu0  ;;  %v2560_v12 = vpack.c.bf16 %v5271_v3, %v5269_v52  ;;  %v6150_v22 = vld [vmem:[#allocation3_spill] sm:$0xff] }
 0x32a   : > { %v3325_v26 = vpop.f32.mrb[55].mxu0  ;;  %vm2246_vm12 = vcmp.eq.s32.totalorder %v6150_v22, %v6146_v11 }
 0x32b   : > { %2026 = vrot.lane.b32.xlu0 %v5163_v56, %s3775_s13  ;;  %1900 = vrot.lane.b32.xlu1 %v5171_v55, %s3774_s12  ;;  %v5197_v63 = vadd.f32 %v3325_v26, %v3324_v54  ;;  %v6151_v54 = vld [vmem:[#allocation4_spill] sm:$0xff]  ;;  %v2262_v26 = vsel %vm2246_vm12, 1.0, %v6148_v47 }
 0x32c   : > { %vm2247_vm11 = vcmp.eq.s32.totalorder %v6151_v54, %v6146_v11 }
 0x32f   : > { %1902 = vrot.lane.b32.xlu0 %v5179_v62, %s3774_s12  ;;  %1964 = vrot.lane.b32.xlu1 %v5171_v55, %s3773_s11  ;;  %v3327_v57 = vpop.f32.mrb[56].mxu0 }
 0x330   : > { %v3328_v5 = vpop.f32.mrb[57].mxu0 }
 0x331   : > { %v5207_v43 = vadd.f32 %v3328_v5, %v3327_v57  ;;  %v3330_v32 = vpop.f32.mrb[58].mxu0  ;;  %v2263_v57 = vsel %vm2247_vm11, 1.0, %v6148_v47  ;;  %v3376_v5 = vpop.f32.mrb[72].mxu1 }
 0x332   : > { %v3331_v61 = vpop.f32.mrb[59].mxu0 }
 0x333   : > { %1966 = vrot.lane.b32.xlu0 %v5179_v62, %s3773_s11  ;;  %2028 = vrot.lane.b32.xlu1 %v5171_v55, %s3775_s13  ;;  %v5215_v50 = vadd.f32 %v3331_v61, %v3330_v32  ;;  %v3377_v32 = vpop.f32.mrb[73].mxu1  ;;  %v5291_v61 = vadd.f32 %v3366_v17, %v2262_v26  ;;  %v6152_v17 = vld [vmem:[#allocation9_spill] sm:$0xff] }
 0x334   : > { %vm2250_vm7 = vcmp.eq.s32.totalorder %v6152_v17, %v6146_v11 }
 0x335   : > { %v2266_v10 = vsel %vm2250_vm7, 1.0, %v6148_v47 }
 0x337   : > { %2030 = vrot.lane.b32.xlu0 %v5179_v62, %s3775_s13  ;;  %1904 = vrot.lane.b32.xlu1 %v5185_v13, %s3774_s12  ;;  %v3333_v60 = vpop.f32.mrb[60].mxu0 }
 0x338   : > { %v3334_v33 = vpop.f32.mrb[61].mxu0 }
 0x339   : > { %v5223_v58 = vadd.f32 %v3334_v33, %v3333_v60  ;;  %v3336_v18 = vpop.f32.mrb[62].mxu0  ;;  %v5293_v60 = vadd.f32 %v3369_v49, %v2263_v57  ;;  %v3378_v33 = vadd.f32 %v3377_v32, %v3376_v5 }
 0x33a   : > { %v3337_v44 = vpop.f32.mrb[63].mxu0 }
 0x33b   : > { %1906 = vrot.lane.b32.xlu0 %v5191_v15, %s3774_s12  ;;  %1968 = vrot.lane.b32.xlu1 %v5185_v13, %s3773_s11  ;;  %v5229_v14 = vadd.f32 %v3337_v44, %v3336_v18  ;;  %v3379_v18 = vpop.f32.mrb[74].mxu1  ;;  %v2559_v27 = vpack.c.bf16 %v5293_v60, %v5291_v61  ;;  %v5306_v22 = vadd.f32 %v3378_v33, %v2266_v10 }
 0x33c   : > { %v3380_v44 = vpop.f32.mrb[75].mxu1 }
 0x33d   : > { %v3381_v23 = vadd.f32 %v3380_v44, %v3379_v18  ;;  %v3382_v16 = vpop.f32.mrb[76].mxu1  ;;  %v6154_v18 = vld [vmem:[#allocation30_spill] sm:$0xff]  ;;  %v6155_v44 = vld [vmem:[#allocation31_spill] sm:$0xff] }
 0x33e   : > { %v3383_v1 = vpop.f32.mrb[77].mxu1  ;;  %vm2252_vm3 = vcmp.eq.s32.totalorder %v6154_v18, %v6146_v11  ;;  %vm2253_vm8 = vcmp.eq.s32.totalorder %v6155_v44, %v6146_v11 }
 0x33f   : > { %1970 = vrot.lane.b32.xlu0 %v5191_v15, %s3773_s11  ;;  %2032 = vrot.lane.b32.xlu1 %v5185_v13, %s3775_s13  ;;  %v3384_v42 = vadd.f32 %v3383_v1, %v3382_v16  ;;  %v3385_v37 = vpop.f32.mrb[78].mxu1  ;;  %v5308_v54 = vadd.f32 %v3381_v23, %v2267_v9  ;;  %v2268_v23 = vsel %vm2252_vm3, 1.0, %v6148_v47 }
 0x340   : > { %v3386_v34 = vpop.f32.mrb[79].mxu1 }
 0x341   : > { %v3387_v30 = vadd.f32 %v3386_v34, %v3385_v37  ;;  %v3388_v49 = vpop.f32.mrb[80].mxu1  ;;  %v2561_v1 = vpack.c.bf16 %v5308_v54, %v5306_v22  ;;  %v2269_v34 = vsel %vm2253_vm8, 1.0, %v6148_v47 }
 0x342   : > { %v3389_v26 = vpop.f32.mrb[81].mxu1 }
 0x343   : > { %2034 = vrot.lane.b32.xlu0 %v5191_v15, %s3775_s13  ;;  %1908 = vrot.lane.b32.xlu1 %v5197_v63, %s3774_s12  ;;  %v3390_v57 = vadd.f32 %v3389_v26, %v3388_v49  ;;  %v3391_v5 = vpop.f32.mrb[82].mxu1  ;;  %v6156_v26 = vld [vmem:[#allocation36_spill] sm:$0xff] }
 0x344   : > { %v3392_v16 = vpop.f32.mrb[83].mxu1  ;;  %vm2254_vm6 = vcmp.eq.s32.totalorder %v6156_v26, %v6146_v11 }
 0x345   : > { %v3393_v33 = vadd.f32 %v3392_v16, %v3391_v5  ;;  %v3394_v46 = vpop.f32.mrb[84].mxu1  ;;  %v6157_v16 = vld [vmem:[#allocation37_spill] sm:$0xff] }
 0x346   : > { %vm2255_vm15 = vcmp.eq.s32.totalorder %v6157_v16, %v6146_v11 }
 0x347   : > { %1910 = vrot.lane.b32.xlu0 %v5207_v43, %s3774_s12  ;;  %1972 = vrot.lane.b32.xlu1 %v5197_v63, %s3773_s11 }
 0x34b   : > { %1974 = vrot.lane.b32.xlu0 %v5207_v43, %s3773_s11  ;;  %2036 = vrot.lane.b32.xlu1 %v5197_v63, %s3775_s13 }
 0x34f   : > { %2038 = vrot.lane.b32.xlu0 %v5207_v43, %s3775_s13  ;;  %1912 = vrot.lane.b32.xlu1 %v5215_v50, %s3774_s12 }
 0x353   : > { %1914 = vrot.lane.b32.xlu0 %v5223_v58, %s3774_s12  ;;  %1976 = vrot.lane.b32.xlu1 %v5215_v50, %s3773_s11 }
 0x357   : > { %1978 = vrot.lane.b32.xlu0 %v5223_v58, %s3773_s11  ;;  %2040 = vrot.lane.b32.xlu1 %v5215_v50, %s3775_s13 }
 0x35b   : > { %2042 = vrot.lane.b32.xlu0 %v5223_v58, %s3775_s13  ;;  %1916 = vrot.lane.b32.xlu1 %v5229_v14, %s3774_s12 }
 0x35f   : > { %1980 = vrot.lane.b32.xlu1 %v5229_v14, %s3773_s11 }
 0x363   : > { %2044 = vrot.lane.b32.xlu1 %v5229_v14, %s3775_s13 }
 0x375   : > { %v1951_v40 = vpop.permute.xlu0 %1950  ;;  %v1887_v0 = vpop.permute.xlu1 %1886 }
 0x376   : > { %v1934_v25 = vadd.f32 %v5116_v24, %v1887_v0  ;;  %v5323_v0 = vadd.f32 %v3387_v30, %v2269_v34 }
 0x378   : > { %v1998_v32 = vadd.f32 %v1951_v40, %v1934_v25  ;;  %v5321_v40 = vadd.f32 %v3384_v42, %v2268_v23  ;;  %v3395_v25 = vpop.f32.mrb[85].mxu1  ;;  %v5335_v42 = vld [vmem:[%s5774_s0 + $0x3] ss:$0 sm:$0xff] }
 0x379   : > { %v2015_v37 = vpop.permute.xlu0 %2014  ;;  %v1953_v24 = vpop.permute.xlu1 %1952  ;;  %v3396_v5 = vadd.f32 %v3395_v25, %v3394_v46 }
 0x37a   : > { %2375 = vadd.xlane.f32.xlu0 %v5291_v61  ;;  %v2062_v17 = vadd.f32 %v2015_v37, %v1998_v32  ;;  %v3397_v18 = vpop.f32.mrb[86].mxu1 }
 0x37b   : > { %v3398_v37 = vpop.f32.mrb[87].mxu1 }
 0x37c   : > { %v2178_v44 = vadd.f32 %v5114_v59, %v2062_v17  ;;  %v3399_v34 = vadd.f32 %v3398_v37, %v3397_v18  ;;  %v2270_v59 = vsel %vm2254_vm6, 1.0, %v6148_v47  ;;  %v6158_v18 = vld [vmem:[#allocation42_spill] sm:$0xff] }
 0x37d   : > { %v1889_v10 = vpop.permute.xlu0 %1888  ;;  %v2017_v9 = vpop.permute.xlu1 %2016  ;;  %vm2256_vm10 = vcmp.eq.s32.totalorder %v6158_v18, %v6146_v11 }
 0x37e   : > { %v1935_v49 = vadd.f32 %v5124_v2, %v1889_v10  ;;  %2379 = vadd.xlane.f32.xlu0 %v5269_v52  ;;  %v2198_v17 = vadd.f32 %v5335_v42, %v2178_v44  ;;  %v6159_v44 = vld [vmem:[#allocation43_spill] sm:$0xff]  ;;  %v5523_v52 = vld [vmem:[%s5774_s0 + $0x4] ss:$0 sm:$0xff] }
 0x37f   : > { %vm2257_vm0 = vcmp.eq.s32.totalorder %v6159_v44, %v6146_v11  ;;  %v6161_v44 = vld [vmem:[#allocation48_spill] sm:$0xff] }
 0x380   : > { %v1999_v32 = vadd.f32 %v1953_v24, %v1935_v49  ;;  %v2271_v24 = vsel %vm2255_vm15, 1.0, %v6148_v47  ;;  %vm2258_vm1 = vcmp.eq.s32.totalorder %v6161_v44, %v6146_v11 }
 0x381   : > { %v1955_v30 = vpop.permute.xlu0 %1954  ;;  %v1891_v23 = vpop.permute.xlu1 %1890 }
 0x382   : > { %v2063_v46 = vadd.f32 %v2017_v9, %v1999_v32  ;;  %v1936_v10 = vadd.f32 %v5132_v8, %v1891_v23  ;;  %2381 = vadd.xlane.f32.xlu0 %v5271_v3  ;;  %v5345_v9 = vadd.f32 %v3390_v57, %v2270_v59  ;;  %v5347_v8 = vadd.f32 %v3393_v33, %v2271_v24 }
 0x383   : > { %v2273_v59 = vsel %vm2257_vm0, 1.0, %v6148_v47 }
 0x384   : > { %v2179_v49 = vadd.f32 %v5126_v20, %v2063_v46  ;;  %v2000_v25 = vadd.f32 %v1955_v30, %v1936_v10  ;;  %v2214_v20 = vmax.f32 %v2198_v17, 0.0  ;;  %v2563_v30 = vpack.c.bf16 %v5347_v8, %v5345_v9  ;;  %v3400_v17 = vpop.f32.mrb[88].mxu1 }
 0x385   : > { %v2019_v26 = vpop.permute.xlu0 %2018  ;;  %v1893_v16 = vpop.permute.xlu1 %1892  ;;  %v2272_v10 = vsel %vm2256_vm10, 1.0, %v6148_v47  ;;  %v5367_v18 = vadd.f32 %v3399_v34, %v2273_v59 }
 0x386   : > { %v2199_v2 = vadd.f32 %v5335_v42, %v2179_v49  ;;  %2385 = vadd.xlane.f32.xlu0 %v5308_v54  ;;  %v2064_v37 = vadd.f32 %v2019_v26, %v2000_v25  ;;  %v1937_v33 = vadd.f32 %v5138_v31, %v1893_v16  ;;  %v6160_v49 = vld [vmem:[#allocation49_spill] sm:$0xff]  ;;  %v5365_v16 = vadd.f32 %v3396_v5, %v2272_v10 }
 0x387   : > { %2377 = vadd.xlane.f32.xlu1 %v5293_v60  ;;  %vm2259_vm5 = vcmp.eq.s32.totalorder %v6160_v49, %v6146_v11 }
 0x388   : > { %v2215_v32 = vmax.f32 %v2199_v2, 0.0  ;;  %v2180_v2 = vadd.f32 %v5112_v53, %v2064_v37  ;;  %v3401_v53 = vpop.f32.mrb[89].mxu1  ;;  %v2275_v37 = vsel %vm2259_vm5, 1.0, %v6148_v47 }
 0x389   : > { %v1895_v23 = vpop.permute.xlu0 %1894  ;;  %v1957_v46 = vpop.permute.xlu1 %1956 }
 0x38a   : > { %v2423_v57 = vpack.c.bf16 %v2215_v32, %v2214_v20  ;;  %2389 = vadd.xlane.f32.xlu0 %v5323_v0  ;;  %v2001_v24 = vadd.f32 %v1957_v46, %v1937_v33  ;;  %v3402_v20 = vadd.f32 %v3401_v53, %v3400_v17  ;;  %v3403_v32 = vpop.f32.mrb[90].mxu1  ;;  %v2200_v46 = vadd.f32 %v5335_v42, %v2180_v2 }
 0x38b   : > { %2383 = vadd.xlane.f32.xlu1 %v5306_v22  ;;  %v3404_v34 = vpop.f32.mrb[91].mxu1 }
 0x38c   : > { %3563 = vmatprep.mubr.msk.bf16.mxu0 %vm2437_vm13, %v2423_v57  ;;  %v1938_v57 = vadd.f32 %v5144_v35, %v1895_v23  ;;  %v3405_v49 = vadd.f32 %v3404_v34, %v3403_v32  ;;  %v2216_v35 = vmax.f32 %v2200_v46, 0.0  ;;  %v3406_v53 = vpop.f32.mrb[92].mxu1 }
 0x38d   : > { %v1959_v25 = vpop.permute.xlu0 %1958  ;;  %v2021_v26 = vpop.permute.xlu1 %2020 }
 0x38e   : > { %v2065_v31 = vadd.f32 %v2021_v26, %v2001_v24  ;;  %2393 = vadd.xlane.f32.xlu0 %v5347_v8  ;;  %v2274_v24 = vsel %vm2258_vm1, 1.0, %v6148_v47  ;;  %v2002_v26 = vadd.f32 %v1959_v25, %v1938_v57  ;;  %v5383_v2 = vadd.f32 %v3405_v49, %v2275_v37  ;;  %v6163_v25 = vld [vmem:[#allocation57_spill] sm:$0xff]  ;;  %v3407_v34 = vpop.f32.mrb[93].mxu1 }
 0x38f   : > { %2387 = vadd.xlane.f32.xlu1 %v5321_v40  ;;  %v5387_v44 = vadd.f32 %v3402_v20, %v2274_v24  ;;  %vm2261_vm14 = vcmp.eq.s32.totalorder %v6163_v25, %v6146_v11  ;;  %v3408_v46 = vadd.f32 %v3407_v34, %v3406_v53 }
 0x390   : > { %v2181_v5 = vadd.f32 %v5118_v39, %v2065_v31  ;;  %v6162_v39 = vld [vmem:[#allocation56_spill] sm:$0xff]  ;;  %v2277_v49 = vsel %vm2261_vm14, 1.0, %v6148_v47 }
 0x391   : > { %v2023_v10 = vpop.permute.xlu0 %2022  ;;  %v1897_v59 = vpop.permute.xlu1 %1896  ;;  %vm2260_vm9 = vcmp.eq.s32.totalorder %v6162_v39, %v6146_v11 }
 0x392   : > { %v2201_v17 = vadd.f32 %v5335_v42, %v2181_v5  ;;  %2397 = vadd.xlane.f32.xlu0 %v5367_v18  ;;  %v2066_v31 = vadd.f32 %v2023_v10, %v2002_v26  ;;  %v1939_v5 = vadd.f32 %v5150_v28, %v1897_v59  ;;  %v2276_v37 = vsel %vm2260_vm9, 1.0, %v6148_v47  ;;  %v3409_v10 = vpop.f32.mrb[94].mxu1 }
 0x393   : > { %2391 = vadd.xlane.f32.xlu1 %v5345_v9  ;;  %v3410_v11 = vpop.f32.mrb[95].mxu1  ;;  %v2565_v28 = vpack.c.bf16 %v5383_v2, %v5387_v44 }
 0x394   : > { %v2217_v23 = vmax.f32 %v2201_v17, 0.0  ;;  %v2182_v20 = vadd.f32 %v5157_v45, %v2066_v31  ;;  %v3411_v17 = vadd.f32 %v3410_v11, %v3409_v10 }
 0x395   : > { %v1899_v33 = vpop.permute.xlu0 %1898  ;;  %v1961_v32 = vpop.permute.xlu1 %1960 }
 0x396   : > { %v2424_v57 = vpack.c.bf16 %v2217_v23, %v2216_v35  ;;  %2401 = vadd.xlane.f32.xlu0 %v5383_v2  ;;  %v2003_v24 = vadd.f32 %v1961_v32, %v1939_v5  ;;  %v5400_v35 = vadd.f32 %v3408_v46, %v2276_v37  ;;  %v5403_v23 = vadd.f32 %v3411_v17, %v2277_v49 }
 0x397   : > { %2395 = vadd.xlane.f32.xlu1 %v5365_v16  ;;  %v2202_v45 = vadd.f32 %v5335_v42, %v2182_v20  ;;  %v1940_v31 = vadd.f32 %v5163_v56, %v1899_v33 }
 0x398   : > { %3564 = vmatmul.mubr.msk.bf16.vlgmr.msra.gmra.mrb[64].mxu0 %vm2437_vm13, %v2424_v57  ;;  %v2566_v46 = vpack.c.bf16 %v5403_v23, %v5400_v35 }
 0x399   : > { %v1963_v59 = vpop.permute.xlu0 %1962  ;;  %v2025_v26 = vpop.permute.xlu1 %2024  ;;  %v2218_v5 = vmax.f32 %v2202_v45, 0.0 }
 0x39a   : > { %v2067_v39 = vadd.f32 %v2025_v26, %v2003_v24  ;;  %2405 = vadd.xlane.f32.xlu0 %v5403_v23  ;;  %v2004_v25 = vadd.f32 %v1963_v59, %v1940_v31 }
 0x39b   : > { %2399 = vadd.xlane.f32.xlu1 %v5387_v44 }
 0x39c   : > { %v2183_v47 = vadd.f32 %v5173_v29, %v2067_v39 }
 0x39d   : > { %v2027_v53 = vpop.permute.xlu0 %2026  ;;  %v1901_v32 = vpop.permute.xlu1 %1900 }
 0x39e   : > { %v2203_v57 = vadd.f32 %v5335_v42, %v2183_v47  ;;  %v2068_v37 = vadd.f32 %v2027_v53, %v2004_v25  ;;  %v1941_v29 = vadd.f32 %v5171_v55, %v1901_v32 }
 0x39f   : > { %2403 = vadd.xlane.f32.xlu1 %v5400_v35 }
 0x3a0   : > { %v2219_v34 = vmax.f32 %v2203_v57, 0.0  ;;  %v2184_v33 = vadd.f32 %v5152_v19, %v2068_v37 }
 0x3a1   : > { %v1903_v10 = vpop.permute.xlu0 %1902  ;;  %v1965_v20 = vpop.permute.xlu1 %1964 }
 0x3a2   : > { %v2425_v56 = vpack.c.bf16 %v2219_v34, %v2218_v5  ;;  %v2005_v24 = vadd.f32 %v1965_v20, %v1941_v29  ;;  %v2204_v26 = vadd.f32 %v5335_v42, %v2184_v33  ;;  %v1942_v17 = vadd.f32 %v5179_v62, %v1903_v10 }
 0x3a4   : > { %3567 = vmatprep.mubr.msk.bf16.mxu0 %vm2437_vm13, %v2425_v56  ;;  %v2220_v55 = vmax.f32 %v2204_v26, 0.0 }
 0x3a5   : > { %v1967_v49 = vpop.permute.xlu0 %1966  ;;  %v2029_v11 = vpop.permute.xlu1 %2028 }
 0x3a6   : > { %v2069_v59 = vadd.f32 %v2029_v11, %v2005_v24  ;;  %v2006_v47 = vadd.f32 %v1967_v49, %v1942_v17 }
 0x3a8   : > { %v2185_v39 = vadd.f32 %v5165_v36, %v2069_v59 }
 0x3a9   : > { %v2031_v45 = vpop.permute.xlu0 %2030  ;;  %v1905_v31 = vpop.permute.xlu1 %1904 }
 0x3aa   : > { %v2205_v53 = vadd.f32 %v5335_v42, %v2185_v39  ;;  %v2070_v19 = vadd.f32 %v2031_v45, %v2006_v47  ;;  %v1943_v34 = vadd.f32 %v5185_v13, %v1905_v31 }
 0x3ac   : > { %v2221_v32 = vmax.f32 %v2205_v53, 0.0  ;;  %v2186_v37 = vadd.f32 %v5201_v38, %v2070_v19 }
 0x3ad   : > { %v1907_v25 = vpop.permute.xlu0 %1906  ;;  %v1969_v57 = vpop.permute.xlu1 %1968 }
 0x3ae   : > { %v2426_v5 = vpack.c.bf16 %v2221_v32, %v2220_v55  ;;  %v2007_v20 = vadd.f32 %v1969_v57, %v1943_v34  ;;  %v2206_v56 = vadd.f32 %v5335_v42, %v2186_v37  ;;  %v1944_v29 = vadd.f32 %v5191_v15, %v1907_v25 }
 0x3b0   : > { %3568 = vmatmul.mubr.msk.bf16.gmra.mrb[68].mxu0 %vm2437_vm13, %v2426_v5  ;;  %v2222_v13 = vmax.f32 %v2206_v56, 0.0 }
 0x3b1   : > { %v1971_v62 = vpop.permute.xlu0 %1970  ;;  %v2033_v36 = vpop.permute.xlu1 %2032 }
 0x3b2   : > { %v2071_v10 = vadd.f32 %v2033_v36, %v2007_v20  ;;  %v2008_v11 = vadd.f32 %v1971_v62, %v1944_v29 }
 0x3b4   : > { %v2187_v33 = vadd.f32 %v5217_v6, %v2071_v10 }
 0x3b5   : > { %v2035_v24 = vpop.permute.xlu0 %2034  ;;  %v1909_v49 = vpop.permute.xlu1 %1908 }
 0x3b6   : > { %v2207_v59 = vadd.f32 %v5335_v42, %v2187_v33  ;;  %v2072_v38 = vadd.f32 %v2035_v24, %v2008_v11  ;;  %v1945_v31 = vadd.f32 %v5197_v63, %v1909_v49 }
 0x3b8   : > { %v2223_v26 = vmax.f32 %v2207_v59, 0.0  ;;  %v2188_v47 = vadd.f32 %v5199_v4, %v2072_v38 }
 0x3b9   : > { %v1911_v17 = vpop.permute.xlu0 %1910  ;;  %v1973_v39 = vpop.permute.xlu1 %1972 }
 0x3ba   : > { %v2427_v45 = vpack.c.bf16 %v2223_v26, %v2222_v13  ;;  %v2009_v53 = vadd.f32 %v1973_v39, %v1945_v31  ;;  %v2208_v32 = vadd.f32 %v5335_v42, %v2188_v47  ;;  %v1946_v19 = vadd.f32 %v5207_v43, %v1911_v17 }
 0x3bc   : > { %3571 = vmatprep.mubr.msk.bf16.mxu0 %vm2437_vm13, %v2427_v45  ;;  %v2224_v63 = vmax.f32 %v2208_v32, 0.0 }
 0x3bd   : > { %v1975_v15 = vpop.permute.xlu0 %1974  ;;  %v2037_v6 = vpop.permute.xlu1 %2036 }
 0x3be   : > { %v2073_v55 = vadd.f32 %v2037_v6, %v2009_v53  ;;  %v2010_v34 = vadd.f32 %v1975_v15, %v1946_v19 }
 0x3c0   : > { %v2189_v25 = vadd.f32 %v5209_v21, %v2073_v55 }
 0x3c1   : > { %v2039_v57 = vpop.permute.xlu0 %2038  ;;  %v1913_v5 = vpop.permute.xlu1 %1912 }
 0x3c2   : > { %v2209_v37 = vadd.f32 %v5335_v42, %v2189_v25  ;;  %v2074_v4 = vadd.f32 %v2039_v57, %v2010_v34  ;;  %v1947_v56 = vadd.f32 %v5215_v50, %v1913_v5 }
 0x3c4   : > { %v2225_v20 = vmax.f32 %v2209_v37, 0.0  ;;  %v2190_v29 = vadd.f32 %v5241_v7, %v2074_v4 }
 0x3c5   : > { %v1915_v62 = vpop.permute.xlu0 %1914  ;;  %v1977_v36 = vpop.permute.xlu1 %1976 }
 0x3c6   : > { %v2428_v10 = vpack.c.bf16 %v2225_v20, %v2224_v63  ;;  %v2011_v33 = vadd.f32 %v1977_v36, %v1947_v56  ;;  %v2210_v49 = vadd.f32 %v5335_v42, %v2190_v29  ;;  %v1948_v11 = vadd.f32 %v5223_v58, %v1915_v62 }
 0x3c8   : > { %3572 = vmatmul.mubr.msk.bf16.gmra.mrb[72].mxu0 %vm2437_vm13, %v2428_v10  ;;  %v2226_v50 = vmax.f32 %v2210_v49, 0.0 }
 0x3c9   : > { %v1979_v43 = vpop.permute.xlu0 %1978  ;;  %v2041_v21 = vpop.permute.xlu1 %2040 }
 0x3ca   : > { %v2075_v24 = vadd.f32 %v2041_v21, %v2011_v33  ;;  %v2012_v38 = vadd.f32 %v1979_v43, %v1948_v11 }
 0x3cc   : > { %v2191_v59 = vadd.f32 %v5249_v48, %v2075_v24 }
 0x3cd   : > { %v2043_v13 = vpop.permute.xlu0 %2042  ;;  %v1917_v26 = vpop.permute.xlu1 %1916 }
 0x3ce   : > { %v2211_v17 = vadd.f32 %v5335_v42, %v2191_v59  ;;  %v2076_v7 = vadd.f32 %v2043_v13, %v2012_v38  ;;  %v1949_v47 = vadd.f32 %v5229_v14, %v1917_v26 }
 0x3d0   : > { %v2227_v39 = vmax.f32 %v2211_v17, 0.0  ;;  %v2192_v53 = vadd.f32 %v5239_v51, %v2076_v7 }
 0x3d1   : > { %v1981_v45 = vpop.permute.xlu1 %1980 }
 0x3d2   : > { %v2429_v31 = vpack.c.bf16 %v2227_v39, %v2226_v50  ;;  %v2013_v15 = vadd.f32 %v1981_v45, %v1949_v47  ;;  %v2212_v48 = vadd.f32 %v5335_v42, %v2192_v53 }
 0x3d4   : > { %3575 = vmatprep.mubr.msk.bf16.mxu0 %vm2437_vm13, %v2429_v31  ;;  %v2228_v19 = vmax.f32 %v2212_v48, 0.0 }
 0x3d5   : > { %v2045_v58 = vpop.permute.xlu1 %2044 }
 0x3d6   : > { %v2077_v6 = vadd.f32 %v2045_v58, %v2013_v15 }
 0x3d8   : > { %v2193_v55 = vadd.f32 %v5243_v41, %v2077_v6 }
 0x3da   : > { %v2213_v32 = vadd.f32 %v5335_v42, %v2193_v55 }
 0x3dc   : > { %v2229_v25 = vmax.f32 %v2213_v32, 0.0 }
 0x3de   : > { %v2430_v57 = vpack.c.bf16 %v2229_v25, %v2228_v19 }
 0x3e0   : > { %3576 = vmatmul.mubr.msk.bf16.gmra.mrb[76].mxu0 %vm2437_vm13, %v2430_v57 }
 0x3e1   : > { %3595 = vmatprep.mubr.bf16.mxu0 %v2559_v27 }
 0x407   : > { %v2376_v14 = vpop.xlane.xlu0 %2375 }
 0x408   : > { %3666 = vrsqrt.f32 %v2376_v14 }
 0x40b   : > { %v2380_v51 = vpop.xlane.xlu0 %2379 }
 0x40c   : > { %3668 = vrsqrt.f32 %v2380_v51 }
 0x40f   : > { %v2382_v5 = vpop.xlane.xlu0 %2381 }
 0x410   : > { %3670 = vrsqrt.f32 %v2382_v5 }
 0x412   : > { %v5451_v41 = vpop.eup %3666 }
 0x413   : > { %v2386_v56 = vpop.xlane.xlu0 %2385 }
 0x414   : > { %v2378_v34 = vpop.xlane.xlu1 %2377 }
 0x415   : > { %3672 = vrsqrt.f32 %v2378_v34 }
 0x416   : > { %v5453_v42 = vpop.eup %3668  ;;  %3674 = vrsqrt.f32 %v2386_v56 }
 0x417   : > { %v2390_v21 = vpop.xlane.xlu0 %2389 }
 0x418   : > { %v2384_v33 = vpop.xlane.xlu1 %2383  ;;  %3676 = vrsqrt.f32 %v2390_v21 }
 0x41a   : > { %v5455_v37 = vpop.eup %3670 }
 0x41b   : > { %v2394_v47 = vpop.xlane.xlu0 %2393 }
 0x41c   : > { %v2388_v24 = vpop.xlane.xlu1 %2387 }
 0x41d   : > { %3678 = vrsqrt.f32 %v2388_v24 }
 0x41e   : > { %3680 = vrsqrt.f32 %v2384_v33 }
 0x41f   : > { %v5457_v20 = vpop.eup %3672  ;;  %v2398_v6 = vpop.xlane.xlu0 %2397  ;;  %3682 = vrsqrt.f32 %v2394_v47 }
 0x420   : > { %v5463_v49 = vpop.eup %3674  ;;  %v2392_v15 = vpop.xlane.xlu1 %2391  ;;  %3684 = vrsqrt.f32 %v2398_v6 }
 0x422   : > { %v5465_v11 = vpop.eup %3676 }
 0x424   : > { %v2396_v48 = vpop.xlane.xlu1 %2395 }
 0x425   : > { %3686 = vrsqrt.f32 %v2396_v48 }
 0x426   : > { %3688 = vrsqrt.f32 %v2392_v15  ;;  %v6165_v15 = vpack.c.bf16 %v5367_v18, %v5365_v16 }
 0x427   : > { %v5467_v59 = vpop.eup %3678 }
 0x428   : > { %v5469_v26 = vpop.eup %3680 }
 0x429   : > { %v5475_v55 = vpop.eup %3682 }
 0x42a   : > { %v5477_v32 = vpop.eup %3684 }
 0x42f   : > { %v5479_v19 = vpop.eup %3686 }
 0x430   : > { %v5481_v57 = vpop.eup %3688 }
 0x46b   : > { %v3565_v63 = vpop.f32.mrb[64].mxu0 }
 0x46c   : > { %v2496_v4 = vpop.f32.mrb[65].mxu0  ;;  %v2569_v60 = vmul.f32 %v5453_v42, %v3565_v63 }
 0x46d   : > { %v3566_v61 = vpop.f32.mrb[66].mxu0  ;;  %v2567_v36 = vmul.f32 %v5451_v41, %v2496_v4 }
 0x46e   : > { %v2570_v27 = vmul.f32 %v5455_v37, %v3566_v61  ;;  %v2499_v62 = vpop.f32.mrb[67].mxu0 }
 0x46f   : > { %v2568_v10 = vmul.f32 %v5457_v20, %v2499_v62 }
 0x470   : > { %v2584_v29 = vpack.c.bf16 %v2570_v27, %v2569_v60  ;;  %v2400_v27 = vpop.xlane.xlu1 %2399 }
 0x471   : > { %v2583_v43 = vpack.c.bf16 %v2568_v10, %v2567_v36  ;;  %v2402_v36 = vpop.xlane.xlu0 %2401 }
 0x473   : > { %3579 = vmatprep.subr.bf16.mxu0 %v2583_v43 }
 0x474   : > { %3580 = vmatpush3.bf16.msra.mxu0 %v2583_v43  ;;  %v2404_v56 = vpop.xlane.xlu1 %2403 }
 0x475   : > { %3581 = vmatprep.subr.bf16.mxu0 %v2584_v29  ;;  %v2406_v10 = vpop.xlane.xlu0 %2405 }
 0x476   : > { %3690 = vrsqrt.f32 %v2406_v10 }
 0x477   : > { %3692 = vrsqrt.f32 %v2404_v56 }
 0x478   : > { %3582 = vmatpush3.bf16.msra.mxu0 %v2584_v29  ;;  %3694 = vrsqrt.f32 %v2402_v36 }
 0x479   : > { %3696 = vrsqrt.f32 %v2400_v27 }
 0x480   : > { %v5487_v29 = vpop.eup %3690 }
 0x481   : > { %v5489_v33 = vpop.eup %3692 }
 0x482   : > { %v5491_v24 = vpop.eup %3694 }
 0x483   : > { %v3569_v13 = vpop.f32.mrb[68].mxu0 }
 0x484   : > { %v2512_v38 = vpop.f32.mrb[69].mxu0  ;;  %v2573_v50 = vmul.f32 %v5467_v59, %v3569_v13 }
 0x485   : > { %v3570_v17 = vpop.f32.mrb[70].mxu0  ;;  %v2571_v45 = vmul.f32 %v5469_v26, %v2512_v38  ;;  %v5493_v38 = vpop.eup %3696 }
 0x486   : > { %v2574_v39 = vmul.f32 %v5465_v11, %v3570_v17  ;;  %v2515_v7 = vpop.f32.mrb[71].mxu0 }
 0x487   : > { %v2572_v31 = vmul.f32 %v5463_v49, %v2515_v7 }
 0x488   : > { %v2586_v53 = vpack.c.bf16 %v2574_v39, %v2573_v50 }
 0x489   : > { %v2585_v58 = vpack.c.bf16 %v2572_v31, %v2571_v45 }
 0x48b   : > { %3583 = vmatprep.subr.bf16.mxu0 %v2585_v58 }
 0x48c   : > { %3584 = vmatpush3.bf16.msra.mxu0 %v2585_v58 }
 0x48d   : > { %3585 = vmatprep.subr.bf16.mxu0 %v2586_v53 }
 0x490   : > { %3586 = vmatpush3.bf16.msra.mxu0 %v2586_v53  ;;  %v6164_v53 = vpack.c.bf16 %v5323_v0, %v5321_v40 }
 0x49b   : > { %v3573_v25 = vpop.f32.mrb[72].mxu0 }
 0x49c   : > { %v2528_v14 = vpop.f32.mrb[73].mxu0  ;;  %v2577_v5 = vmul.f32 %v5479_v19, %v3573_v25 }
 0x49d   : > { %v3574_v51 = vpop.f32.mrb[74].mxu0  ;;  %v2575_v4 = vmul.f32 %v5481_v57, %v2528_v14 }
 0x49e   : > { %v2578_v34 = vmul.f32 %v5477_v32, %v3574_v51  ;;  %v2531_v63 = vpop.f32.mrb[75].mxu0 }
 0x49f   : > { %v2576_v61 = vmul.f32 %v5475_v55, %v2531_v63 }
 0x4a0   : > { %v2588_v60 = vpack.c.bf16 %v2578_v34, %v2577_v5 }
 0x4a1   : > { %v2587_v62 = vpack.c.bf16 %v2576_v61, %v2575_v4 }
 0x4a3   : > { %3587 = vmatprep.subr.bf16.mxu0 %v2587_v62 }
 0x4a4   : > { %3588 = vmatpush3.bf16.msra.mxu0 %v2587_v62 }
 0x4a5   : > { %3589 = vmatprep.subr.bf16.mxu0 %v2588_v60 }
 0x4a8   : > { %3590 = vmatpush3.bf16.msra.mxu0 %v2588_v60 }
 0x4b3   : > { %v3577_v43 = vpop.f32.mrb[76].mxu0 }
 0x4b4   : > { %v2544_v21 = vpop.f32.mrb[77].mxu0  ;;  %v2581_v17 = vmul.f32 %v5489_v33, %v3577_v43 }
 0x4b5   : > { %v3578_v13 = vpop.f32.mrb[78].mxu0  ;;  %v2579_v7 = vmul.f32 %v5493_v38, %v2544_v21 }
 0x4b6   : > { %v2582_v50 = vmul.f32 %v5487_v29, %v3578_v13  ;;  %v2547_v39 = vpop.f32.mrb[79].mxu0 }
 0x4b7   : > { %v2580_v45 = vmul.f32 %v5491_v24, %v2547_v39 }
 0x4b8   : > { %v2590_v31 = vpack.c.bf16 %v2582_v50, %v2581_v17 }
 0x4b9   : > { %v2589_v47 = vpack.c.bf16 %v2580_v45, %v2579_v7 }
 0x4bb   : > { %3591 = vmatprep.subr.bf16.mxu0 %v2589_v47 }
 0x4bc   : > { %3592 = vmatpush3.bf16.msra.mxu0 %v2589_v47 }
 0x4bd   : > { %3593 = vmatprep.subr.bf16.mxu0 %v2590_v31 }
 0x4c0   : > { %3594 = vmatpush3.bf16.msra.mxu0 %v2590_v31 }
 0x4c3   : > { %3596 = vmatmul.mubr.bf16.vlgmr.msra.gmra.mrb[80].mxu0 %v2560_v12 }
 0x4c4   : > { %3599 = vmatprep.mubr.bf16.mxu0 %v2561_v1 }
 0x4cb   : > { %3600 = vmatmul.mubr.bf16.gmra.mrb[84].mxu0 %v6164_v53 }
 0x4cc   : > { %3603 = vmatprep.mubr.bf16.mxu0 %v2563_v30 }
 0x4d3   : > { %3604 = vmatmul.mubr.bf16.gmra.mrb[88].mxu0 %v6165_v15 }
 0x4d4   : > { %3607 = vmatprep.mubr.bf16.mxu0 %v2565_v28 }
 0x4db   : > { %3608 = vmatmul.mubr.bf16.gmra.mrb[92].mxu0 %v2566_v46 }
 0x596   : > { %v3597_v3 = vpop.f32.mrb[80].mxu0 }
 0x597   : > { %v2690_v12 = vmul.f32 %v5453_v42, %v3597_v3  ;;  %v2625_v22 = vpop.f32.mrb[81].mxu0 }
 0x598   : > { %v2688_v54 = vmul.f32 %v5451_v41, %v2625_v22  ;;  %v3598_v1 = vpop.f32.mrb[82].mxu0 }
 0x599   : > { %v5528_v40 = vadd.f32 %v5523_v52, %v2690_v12  ;;  %v2691_v0 = vmul.f32 %v5455_v37, %v3598_v1  ;;  %v2628_v9 = vpop.f32.mrb[83].mxu0 }
 0x59a   : > { %v2689_v8 = vmul.f32 %v5457_v20, %v2628_v9  ;;  %v5533_v30 = vadd.f32 %v5523_v52, %v2688_v54 }
 0x59b   : > { %v5536_v16 = vadd.f32 %v5523_v52, %v2691_v0  ;;  %v2731_v18 = vsel %vm2724_vm4, %v5528_v40, -inf }
 0x59c   : > { %2732 = vmax.xlane.f32.xlu1 %v2731_v18  ;;  %v5541_v2 = vadd.f32 %v5523_v52, %v2689_v8  ;;  %v2725_v46 = vsel %vm2724_vm4, %v5533_v30, -inf }
 0x59d   : > { %v2734_v44 = vsel %vm2724_vm4, %v5536_v16, -inf }
 0x59e   : > { %2735 = vmax.xlane.f32.xlu0 %v2734_v44  ;;  %v3601_v28 = vpop.f32.mrb[84].mxu0  ;;  %v2728_v6 = vsel %vm2724_vm4, %v5541_v2, -inf }
 0x59f   : > { %v2694_v35 = vmul.f32 %v5467_v59, %v3601_v28  ;;  %v2641_v23 = vpop.f32.mrb[85].mxu0 }
 0x5a0   : > { %v2692_v41 = vmul.f32 %v5469_v26, %v2641_v23  ;;  %2726 = vmax.xlane.f32.xlu1 %v2725_v46  ;;  %v3602_v42 = vpop.f32.mrb[86].mxu0 }
 0x5a1   : > { %v5550_v37 = vadd.f32 %v5523_v52, %v2694_v35  ;;  %v2695_v20 = vmul.f32 %v5465_v11, %v3602_v42  ;;  %v2644_v58 = vpop.f32.mrb[87].mxu0 }
 0x5a2   : > { %v2693_v48 = vmul.f32 %v5463_v49, %v2644_v58  ;;  %2729 = vmax.xlane.f32.xlu0 %v2728_v6  ;;  %v5557_v59 = vadd.f32 %v5523_v52, %v2692_v41 }
 0x5a3   : > { %v5560_v25 = vadd.f32 %v5523_v52, %v2695_v20  ;;  %v2743_v26 = vsel %vm2724_vm4, %v5550_v37, -inf }
 0x5a4   : > { %2744 = vmax.xlane.f32.xlu1 %v2743_v26  ;;  %v5565_v14 = vadd.f32 %v5523_v52, %v2693_v48  ;;  %v2737_v34 = vsel %vm2724_vm4, %v5557_v59, -inf }
 0x5a5   : > { %v2746_v11 = vsel %vm2724_vm4, %v5560_v25, -inf }
 0x5a6   : > { %2747 = vmax.xlane.f32.xlu0 %v2746_v11  ;;  %v3605_v51 = vpop.f32.mrb[88].mxu0  ;;  %v2740_v62 = vsel %vm2724_vm4, %v5565_v14, -inf }
 0x5a7   : > { %v2698_v49 = vmul.f32 %v5479_v19, %v3605_v51  ;;  %v2657_v5 = vpop.f32.mrb[89].mxu0 }
 0x5a8   : > { %v2696_v63 = vmul.f32 %v5481_v57, %v2657_v5  ;;  %2738 = vmax.xlane.f32.xlu1 %v2737_v34  ;;  %v3606_v4 = vpop.f32.mrb[90].mxu0 }
 0x5a9   : > { %v5574_v61 = vadd.f32 %v5523_v52, %v2698_v49  ;;  %v2699_v60 = vmul.f32 %v5477_v32, %v3606_v4  ;;  %v2660_v27 = vpop.f32.mrb[91].mxu0 }
 0x5aa   : > { %v2697_v36 = vmul.f32 %v5475_v55, %v2660_v27  ;;  %2741 = vmax.xlane.f32.xlu0 %v2740_v62  ;;  %v5581_v19 = vadd.f32 %v5523_v52, %v2696_v63 }
 0x5ab   : > { %v5584_v10 = vadd.f32 %v5523_v52, %v2699_v60  ;;  %v2755_v57 = vsel %vm2724_vm4, %v5574_v61, -inf }
 0x5ac   : > { %2756 = vmax.xlane.f32.xlu1 %v2755_v57  ;;  %v5589_v56 = vadd.f32 %v5523_v52, %v2697_v36  ;;  %v2749_v21 = vsel %vm2724_vm4, %v5581_v19, -inf }
 0x5ad   : > { %v2758_v32 = vsel %vm2724_vm4, %v5584_v10, -inf }
 0x5ae   : > { %2759 = vmax.xlane.f32.xlu0 %v2758_v32  ;;  %v3609_v43 = vpop.f32.mrb[92].mxu0  ;;  %v2752_v7 = vsel %vm2724_vm4, %v5589_v56, -inf }
 0x5af   : > { %v2673_v55 = vpop.f32.mrb[93].mxu0  ;;  %v2702_v13 = vmul.f32 %v5489_v33, %v3609_v43 }
 0x5b0   : > { %v2700_v17 = vmul.f32 %v5493_v38, %v2673_v55  ;;  %2750 = vmax.xlane.f32.xlu1 %v2749_v21  ;;  %v3610_v50 = vpop.f32.mrb[94].mxu0 }
 0x5b1   : > { %v2676_v39 = vpop.f32.mrb[95].mxu0  ;;  %v2703_v31 = vmul.f32 %v5487_v29, %v3610_v50  ;;  %v5605_v53 = vadd.f32 %v5523_v52, %v2702_v13 }
 0x5b2   : > { %v5600_v45 = vadd.f32 %v5523_v52, %v2700_v17  ;;  %v2701_v47 = vmul.f32 %v5491_v24, %v2676_v39  ;;  %2753 = vmax.xlane.f32.xlu0 %v2752_v7 }
 0x5b3   : > { %v5613_v15 = vadd.f32 %v5523_v52, %v2703_v31  ;;  %v2767_v29 = vsel %vm2724_vm4, %v5605_v53, -inf }
 0x5b4   : > { %v5608_v33 = vadd.f32 %v5523_v52, %v2701_v47  ;;  %v2761_v38 = vsel %vm2724_vm4, %v5600_v45, -inf }
 0x5b5   : > { %2762 = vmax.xlane.f32.xlu1 %v2761_v38  ;;  %v2770_v24 = vsel %vm2724_vm4, %v5613_v15, -inf }
 0x5b6   : > { %v2764_v3 = vsel %vm2724_vm4, %v5608_v33, -inf }
 0x5b7   : > { %2765 = vmax.xlane.f32.xlu0 %v2764_v3 }
 0x5b9   : > { %2768 = vmax.xlane.f32.xlu1 %v2767_v29 }
 0x5bb   : > { %2771 = vmax.xlane.f32.xlu0 %v2770_v24 }
 0x629   : > { %v5621_v12 = vpop.xlane.xlu1 %2732 }
 0x62a   : > { %v2775_v22 = vsub.f32 %v5528_v40, %v5621_v12 }
 0x62b   : > { %v5625_v54 = vpop.xlane.xlu0 %2735 }
 0x62c   : > { %v2793_v52 = vmul.f32 1.442695, %v2775_v22  ;;  %v2776_v1 = vsub.f32 %v5536_v16, %v5625_v54 }
 0x62d   : > { %v5629_v0 = vpop.xlane.xlu1 %2726 }
 0x62e   : > { %3698 = vpow2.f32 %v2793_v52  ;;  %v2795_v9 = vmul.f32 1.442695, %v2776_v1  ;;  %v2773_v8 = vsub.f32 %v5533_v30, %v5629_v0 }
 0x62f   : > { %v5633_v18 = vpop.xlane.xlu0 %2729 }
 0x630   : > { %3700 = vpow2.f32 %v2795_v9  ;;  %v2789_v44 = vmul.f32 1.442695, %v2773_v8  ;;  %v2774_v28 = vsub.f32 %v5541_v2, %v5633_v18 }
 0x631   : > { %v5637_v35 = vpop.xlane.xlu1 %2744 }
 0x632   : > { %3702 = vpow2.f32 %v2789_v44  ;;  %v2791_v23 = vmul.f32 1.442695, %v2774_v28  ;;  %v2779_v46 = vsub.f32 %v5550_v37, %v5637_v35 }
 0x633   : > { %v5641_v41 = vpop.xlane.xlu0 %2747 }
 0x634   : > { %3704 = vpow2.f32 %v2791_v23  ;;  %v2801_v42 = vmul.f32 1.442695, %v2779_v46  ;;  %v2780_v20 = vsub.f32 %v5560_v25, %v5641_v41 }
 0x635   : > { %v5645_v58 = vpop.xlane.xlu1 %2738 }
 0x636   : > { %3706 = vpow2.f32 %v2801_v42  ;;  %v2803_v6 = vmul.f32 1.442695, %v2780_v20  ;;  %v2777_v48 = vsub.f32 %v5557_v59, %v5645_v58 }
 0x637   : > { %v5649_v26 = vpop.xlane.xlu0 %2741 }
 0x638   : > { %v3699_v11 = vpop.eup %3698  ;;  %3708 = vpow2.f32 %v2803_v6  ;;  %v2797_v51 = vmul.f32 1.442695, %v2777_v48  ;;  %v2778_v49 = vsub.f32 %v5565_v14, %v5649_v26 }
 0x639   : > { %v5653_v5 = vpop.xlane.xlu1 %2756  ;;  %v2827_v34 = vsel %vm2724_vm4, %v3699_v11, 0.0 }
 0x63a   : > { %v3701_v63 = vpop.eup %3700  ;;  %3710 = vpow2.f32 %v2797_v51  ;;  %v2799_v4 = vmul.f32 1.442695, %v2778_v49  ;;  %v2783_v60 = vsub.f32 %v5574_v61, %v5653_v5  ;;  %2828 = vadd.xlane.f32.xlu1 %v2827_v34 }
 0x63b   : > { %v5658_v27 = vpop.xlane.xlu0 %2759  ;;  %v2830_v62 = vsel %vm2724_vm4, %v3701_v63, 0.0 }
 0x63c   : > { %v3703_v36 = vpop.eup %3702  ;;  %3712 = vpow2.f32 %v2799_v4  ;;  %v2809_v57 = vmul.f32 1.442695, %v2783_v60  ;;  %v2784_v32 = vsub.f32 %v5584_v10, %v5658_v27  ;;  %2831 = vadd.xlane.f32.xlu0 %v2830_v62 }
 0x63d   : > { %v5663_v43 = vpop.xlane.xlu1 %2750  ;;  %v2821_v55 = vsel %vm2724_vm4, %v3703_v36, 0.0 }
 0x63e   : > { %v3705_v21 = vpop.eup %3704  ;;  %3714 = vpow2.f32 %v2809_v57  ;;  %v2811_v13 = vmul.f32 1.442695, %v2784_v32  ;;  %v2781_v17 = vsub.f32 %v5581_v19, %v5663_v43  ;;  %2822 = vadd.xlane.f32.xlu1 %v2821_v55 }
 0x63f   : > { %v5668_v50 = vpop.xlane.xlu0 %2753  ;;  %v2824_v39 = vsel %vm2724_vm4, %v3705_v21, 0.0 }
 0x640   : > { %v3707_v7 = vpop.eup %3706  ;;  %3716 = vpow2.f32 %v2811_v13  ;;  %v2805_v31 = vmul.f32 1.442695, %v2781_v17  ;;  %v2782_v47 = vsub.f32 %v5589_v56, %v5668_v50  ;;  %2825 = vadd.xlane.f32.xlu0 %v2824_v39 }
 0x641   : > { %v2839_v38 = vsel %vm2724_vm4, %v3707_v7, 0.0 }
 0x642   : > { %v3709_v3 = vpop.eup %3708  ;;  %3718 = vpow2.f32 %v2805_v31  ;;  %v2807_v29 = vmul.f32 1.442695, %v2782_v47  ;;  %2840 = vadd.xlane.f32.xlu1 %v2839_v38  ;;  %v5674_v24 = vpop.xlane.xlu1 %2762 }
 0x643   : > { %v2785_v22 = vsub.f32 %v5600_v45, %v5674_v24  ;;  %v2842_v52 = vsel %vm2724_vm4, %v3709_v3, 0.0 }
 0x644   : > { %v3711_v1 = vpop.eup %3710  ;;  %3720 = vpow2.f32 %v2807_v29  ;;  %2843 = vadd.xlane.f32.xlu0 %v2842_v52  ;;  %v5679_v9 = vpop.xlane.xlu0 %2765 }
 0x645   : > { %v2813_v8 = vmul.f32 1.442695, %v2785_v22  ;;  %v2786_v44 = vsub.f32 %v5608_v33, %v5679_v9  ;;  %v2833_v28 = vsel %vm2724_vm4, %v3711_v1, 0.0 }
 0x646   : > { %v3713_v23 = vpop.eup %3712  ;;  %2834 = vadd.xlane.f32.xlu1 %v2833_v28  ;;  %v5684_v46 = vpop.xlane.xlu1 %2768 }
 0x647   : > { %3722 = vpow2.f32 %v2813_v8  ;;  %v2815_v42 = vmul.f32 1.442695, %v2786_v44  ;;  %v2787_v20 = vsub.f32 %v5605_v53, %v5684_v46  ;;  %v2836_v6 = vsel %vm2724_vm4, %v3713_v23, 0.0 }
 0x648   : > { %v3715_v48 = vpop.eup %3714  ;;  %2837 = vadd.xlane.f32.xlu0 %v2836_v6  ;;  %v5689_v11 = vpop.xlane.xlu0 %2771 }
 0x649   : > { %3724 = vpow2.f32 %v2815_v42  ;;  %v2817_v51 = vmul.f32 1.442695, %v2787_v20  ;;  %v2788_v49 = vsub.f32 %v5613_v15, %v5689_v11  ;;  %v2851_v34 = vsel %vm2724_vm4, %v3715_v48, 0.0 }
 0x64a   : > { %v3717_v63 = vpop.eup %3716  ;;  %2852 = vadd.xlane.f32.xlu1 %v2851_v34 }
 0x64b   : > { %3726 = vpow2.f32 %v2817_v51  ;;  %v2819_v4 = vmul.f32 1.442695, %v2788_v49  ;;  %v2854_v60 = vsel %vm2724_vm4, %v3717_v63, 0.0 }
 0x64c   : > { %v3719_v62 = vpop.eup %3718  ;;  %2855 = vadd.xlane.f32.xlu0 %v2854_v60 }
 0x64d   : > { %3728 = vpow2.f32 %v2819_v4  ;;  %v2845_v36 = vsel %vm2724_vm4, %v3719_v62, 0.0 }
 0x64e   : > { %v3721_v57 = vpop.eup %3720  ;;  %2846 = vadd.xlane.f32.xlu1 %v2845_v36 }
 0x64f   : > { %v2848_v32 = vsel %vm2724_vm4, %v3721_v57, 0.0 }
 0x650   : > { %2849 = vadd.xlane.f32.xlu0 %v2848_v32 }
 0x651   : > { %v3723_v55 = vpop.eup %3722 }
 0x652   : > { %v2857_v21 = vsel %vm2724_vm4, %v3723_v55, 0.0 }
 0x653   : > { %v3725_v13 = vpop.eup %3724  ;;  %2858 = vadd.xlane.f32.xlu1 %v2857_v21 }
 0x654   : > { %v2860_v17 = vsel %vm2724_vm4, %v3725_v13, 0.0 }
 0x655   : > { %v3727_v39 = vpop.eup %3726  ;;  %2861 = vadd.xlane.f32.xlu0 %v2860_v17 }
 0x656   : > { %v2863_v7 = vsel %vm2724_vm4, %v3727_v39, 0.0 }
 0x657   : > { %v3729_v31 = vpop.eup %3728  ;;  %2864 = vadd.xlane.f32.xlu1 %v2863_v7 }
 0x658   : > { %v2866_v47 = vsel %vm2724_vm4, %v3729_v31, 0.0 }
 0x659   : > { %2867 = vadd.xlane.f32.xlu0 %v2866_v47 }
 0x6c7   : > { %v2829_v38 = vpop.xlane.xlu1 %2828 }
 0x6c8   : > { %3730 = vlog2.f32 %v2829_v38 }
 0x6c9   : > { %v2832_v3 = vpop.xlane.xlu0 %2831 }
 0x6ca   : > { %3732 = vlog2.f32 %v2832_v3 }
 0x6cb   : > { %v2823_v29 = vpop.xlane.xlu1 %2822 }
 0x6cc   : > { %3734 = vlog2.f32 %v2823_v29 }
 0x6cd   : > { %v2826_v22 = vpop.xlane.xlu0 %2825 }
 0x6ce   : > { %3736 = vlog2.f32 %v2826_v22 }
 0x6cf   : > { %v2841_v52 = vpop.xlane.xlu1 %2840 }
 0x6d0   : > { %3738 = vlog2.f32 %v2841_v52 }
 0x6d1   : > { %v2844_v1 = vpop.xlane.xlu0 %2843 }
 0x6d2   : > { %v3731_v8 = vpop.eup %3730  ;;  %3740 = vlog2.f32 %v2844_v1 }
 0x6d3   : > { %v2874_v44 = vmul.f32 0.6931472, %v3731_v8  ;;  %v2835_v28 = vpop.xlane.xlu1 %2834 }
 0x6d4   : > { %v3733_v23 = vpop.eup %3732  ;;  %3742 = vlog2.f32 %v2835_v28 }
 0x6d5   : > { %v2903_v42 = vadd.f32 %v2874_v44, %v5621_v12  ;;  %v2876_v20 = vmul.f32 0.6931472, %v3733_v23  ;;  %v2838_v6 = vpop.xlane.xlu0 %2837 }
 0x6d6   : > { %v3735_v48 = vpop.eup %3734  ;;  %3744 = vlog2.f32 %v2838_v6 }
 0x6d7   : > { %v2919_v51 = vsub.f32 %v5528_v40, %v2903_v42  ;;  %v2904_v49 = vadd.f32 %v2876_v20, %v5625_v54  ;;  %v2870_v34 = vmul.f32 0.6931472, %v3735_v48  ;;  %v2853_v63 = vpop.xlane.xlu1 %2852 }
 0x6d8   : > { %v3737_v4 = vpop.eup %3736  ;;  %3746 = vlog2.f32 %v2853_v63 }
 0x6d9   : > { %v2935_v12 = vsel %vm2724_vm4, %v2919_v51, 0.0  ;;  %v2920_v60 = vsub.f32 %v5536_v16, %v2904_v49  ;;  %v2901_v62 = vadd.f32 %v2870_v34, %v5629_v0  ;;  %v2872_v36 = vmul.f32 0.6931472, %v3737_v4  ;;  %v2856_v57 = vpop.xlane.xlu0 %2855 }
 0x6da   : > { %v3739_v32 = vpop.eup %3738  ;;  %2951 = vst [vmem:[%s5706_s26 + $0x10] sm:$0xff] %v2935_v12  ;;  %3748 = vlog2.f32 %v2856_v57 }
 0x6db   : > { %v2936_v40 = vsel %vm2724_vm4, %v2920_v60, 0.0  ;;  %v2917_v54 = vsub.f32 %v5533_v30, %v2901_v62  ;;  %v2902_v55 = vadd.f32 %v2872_v36, %v5633_v18  ;;  %v2882_v21 = vmul.f32 0.6931472, %v3739_v32  ;;  %v2847_v13 = vpop.xlane.xlu1 %2846 }
 0x6dc   : > { %v3741_v17 = vpop.eup %3740  ;;  %2952 = vst [vmem:[%s5706_s26 + $0x18] sm:$0xff] %v2936_v40  ;;  %3750 = vlog2.f32 %v2847_v13 }
 0x6dd   : > { %v2933_v16 = vsel %vm2724_vm4, %v2917_v54, 0.0  ;;  %v2918_v0 = vsub.f32 %v5541_v2, %v2902_v55  ;;  %v2907_v39 = vadd.f32 %v2882_v21, %v5637_v35  ;;  %v2884_v7 = vmul.f32 0.6931472, %v3741_v17  ;;  %v2850_v31 = vpop.xlane.xlu0 %2849 }
 0x6de   : > { %v3743_v47 = vpop.eup %3742  ;;  %2949 = vst [vmem:[%s5706_s26] sm:$0xff] %v2933_v16  ;;  %3752 = vlog2.f32 %v2850_v31 }
 0x6df   : > { %v2934_v30 = vsel %vm2724_vm4, %v2918_v0, 0.0  ;;  %v2923_v18 = vsub.f32 %v5550_v37, %v2907_v39  ;;  %v2908_v38 = vadd.f32 %v2884_v7, %v5641_v41  ;;  %v2878_v3 = vmul.f32 0.6931472, %v3743_v47 }
 0x6e0   : > { %v3745_v29 = vpop.eup %3744  ;;  %2950 = vst [vmem:[%s5706_s26 + $0x8] sm:$0xff] %v2934_v30  ;;  %v2859_v22 = vpop.xlane.xlu1 %2858 }
 0x6e1   : > { %v2939_v2 = vsel %vm2724_vm4, %v2923_v18, 0.0  ;;  %v2924_v35 = vsub.f32 %v5560_v25, %v2908_v38  ;;  %v2905_v52 = vadd.f32 %v2878_v3, %v5645_v58  ;;  %v2880_v1 = vmul.f32 0.6931472, %v3745_v29 }
 0x6e2   : > { %v3747_v8 = vpop.eup %3746  ;;  %2955 = vst [vmem:[%s5706_s26 + $0x30] sm:$0xff] %v2939_v2  ;;  %3754 = vlog2.f32 %v2859_v22  ;;  %v2862_v44 = vpop.xlane.xlu0 %2861 }
 0x6e3   : > { %v2940_v37 = vsel %vm2724_vm4, %v2924_v35, 0.0  ;;  %v2921_v41 = vsub.f32 %v5557_v59, %v2905_v52  ;;  %v2906_v28 = vadd.f32 %v2880_v1, %v5649_v26  ;;  %v2890_v23 = vmul.f32 0.6931472, %v3747_v8 }
 0x6e4   : > { %v3749_v42 = vpop.eup %3748  ;;  %2956 = vst [vmem:[%s5706_s26 + $0x38] sm:$0xff] %v2940_v37  ;;  %3756 = vlog2.f32 %v2862_v44  ;;  %v2865_v25 = vpop.xlane.xlu1 %2864 }
 0x6e5   : > { %v2937_v58 = vsel %vm2724_vm4, %v2921_v41, 0.0  ;;  %v2922_v20 = vsub.f32 %v5565_v14, %v2906_v28  ;;  %v2911_v6 = vadd.f32 %v2890_v23, %v5653_v5  ;;  %v2892_v48 = vmul.f32 0.6931472, %v3749_v42 }
 0x6e6   : > { %v3751_v51 = vpop.eup %3750  ;;  %2953 = vst [vmem:[%s5706_s26 + $0x20] sm:$0xff] %v2937_v58  ;;  %3758 = vlog2.f32 %v2865_v25  ;;  %v2868_v59 = vpop.xlane.xlu0 %2867 }
 0x6e7   : > { %v2938_v26 = vsel %vm2724_vm4, %v2922_v20, 0.0  ;;  %v2927_v49 = vsub.f32 %v5574_v61, %v2911_v6  ;;  %v2912_v34 = vadd.f32 %v2892_v48, %v5658_v27  ;;  %v2886_v63 = vmul.f32 0.6931472, %v3751_v51 }
 0x6e8   : > { %v3753_v4 = vpop.eup %3752  ;;  %2954 = vst [vmem:[%s5706_s26 + $0x28] sm:$0xff] %v2938_v26  ;;  %3760 = vlog2.f32 %v2868_v59 }
 0x6e9   : > { %v2943_v14 = vsel %vm2724_vm4, %v2927_v49, 0.0  ;;  %v2928_v5 = vsub.f32 %v5584_v10, %v2912_v34  ;;  %v2909_v12 = vadd.f32 %v2886_v63, %v5663_v43  ;;  %v2888_v60 = vmul.f32 0.6931472, %v3753_v4 }
 0x6ea   : > { %2959 = vst [vmem:[%s5706_s26 + $0x50] sm:$0xff] %v2943_v14 }
 0x6eb   : > { %v2944_v62 = vsel %vm2724_vm4, %v2928_v5, 0.0  ;;  %v2925_v61 = vsub.f32 %v5581_v19, %v2909_v12  ;;  %v2910_v27 = vadd.f32 %v2888_v60, %v5668_v50 }
 0x6ec   : > { %v3755_v36 = vpop.eup %3754  ;;  %2960 = vst [vmem:[%s5706_s26 + $0x58] sm:$0xff] %v2944_v62 }
 0x6ed   : > { %v2941_v57 = vsel %vm2724_vm4, %v2925_v61, 0.0  ;;  %v2926_v32 = vsub.f32 %v5589_v56, %v2910_v27  ;;  %v2894_v40 = vmul.f32 0.6931472, %v3755_v36 }
 0x6ee   : > { %v3757_v10 = vpop.eup %3756  ;;  %2957 = vst [vmem:[%s5706_s26 + $0x40] sm:$0xff] %v2941_v57 }
 0x6ef   : > { %v2942_v43 = vsel %vm2724_vm4, %v2926_v32, 0.0  ;;  %v2913_v54 = vadd.f32 %v2894_v40, %v5674_v24  ;;  %v2896_v55 = vmul.f32 0.6931472, %v3757_v10 }
 0x6f0   : > { %v3759_v21 = vpop.eup %3758  ;;  %2958 = vst [vmem:[%s5706_s26 + $0x48] sm:$0xff] %v2942_v43 }
 0x6f1   : > { %v2929_v19 = vsub.f32 %v5600_v45, %v2913_v54  ;;  %v2914_v50 = vadd.f32 %v2896_v55, %v5679_v9  ;;  %v2898_v13 = vmul.f32 0.6931472, %v3759_v21 }
 0x6f2   : > { %v3761_v56 = vpop.eup %3760 }
 0x6f3   : > { %v2945_v17 = vsel %vm2724_vm4, %v2929_v19, 0.0  ;;  %v2930_v16 = vsub.f32 %v5608_v33, %v2914_v50  ;;  %v2915_v0 = vadd.f32 %v2898_v13, %v5684_v46  ;;  %v2900_v39 = vmul.f32 0.6931472, %v3761_v56 }
 0x6f4   : > { %2961 = vst [vmem:[%s5706_s26 + $0x60] sm:$0xff] %v2945_v17 }
 0x6f5   : > { %v2946_v24 = vsel %vm2724_vm4, %v2930_v16, 0.0  ;;  %v2931_v7 = vsub.f32 %v5605_v53, %v2915_v0  ;;  %v2916_v31 = vadd.f32 %v2900_v39, %v5689_v11 }
 0x6f6   : > { %2962 = vst [vmem:[%s5706_s26 + $0x68] sm:$0xff] %v2946_v24 }
 0x6f7   : > { %v2947_v45 = vsel %vm2724_vm4, %v2931_v7, 0.0  ;;  %v2932_v9 = vsub.f32 %v5613_v15, %v2916_v31 }
 0x6f8   : > { %2963 = vst [vmem:[%s5706_s26 + $0x70] sm:$0xff] %v2947_v45 }
 0x6f9   : > { %v2948_v47 = vsel %vm2724_vm4, %v2932_v9, 0.0 }
 0x6fa   : > { %2964 = vst [vmem:[%s5706_s26 + $0x78] sm:$0xff] %v2948_v47 }
 0x6fb PF: > { %s16_s21 = sadd.s32 1, %s3768_s21  }
 0x6fc   : > { %p13_p5 = scmp.ge.s32.totalorder %s16_s21, 4  }
 0x6fe   :  { %15 = sbr.rel (!%p13_p5) target bundleno = 1 (0x1), region = 83 }

</bundles_post_ra>
